<compile_context>
chip_gen: v7x
topology: tpu7x:2x2x1
jax: 0.10.0
libtpu: 0.0.40
codegen_flags: <defaults>
</compile_context>

<pallas_src>
import functools
import math

import jax
import jax.numpy as jnp
from jax import lax
from jax.experimental import pallas as pl
from jax.experimental.pallas import tpu as pltpu


# ----------------------------- fused Pallas kernel -----------------------------

def _bottle2neck_kernel(xp_ref, mask_ref, w1_ref, b1_ref, w2_ref, b2_ref,
                        w3_ref, b3_ref, o_ref, *, h, w, nums, width):
    """Fused Bottle2neck forward for one image (stride=1, stype='normal').

    xp_ref  : (1, Cin, PP)  zero-padded image, PP=(H+2)*(W+2), channels-first
    mask_ref: (1, PP)       1.0 on interior pixels, 0.0 on the padding ring
    w1_ref  : (Cmid, Cin)   conv1 weight with BN1 scale folded in
    b1_ref  : (Cmid, 1)     folded BN1 bias
    w2_ref  : (nums, width, 9*width)  im2col 3x3 weights, BN scale folded in
    b2_ref  : (nums, width, 1)
    w3_ref  : (Cout, Cmid)  conv3 weight with BN3 scale folded in
    b3_ref  : (Cout, 1)
    o_ref   : (1, Cout, H*W) output (channels-first, data coords)
    """
    wp = w + 2
    pp = (h + 2) * wp
    prec = lax.Precision.HIGHEST   # exact f32 MXU passes (tiny kernel; keep it tight)

    xp = xp_ref[0]                                   # (Cin, PP)
    mask = mask_ref[...]                             # (1, PP)

    # conv1 (1x1) + folded BN + ReLU, evaluated at every padded position.
    out1 = jnp.dot(w1_ref[...], xp,
                   preferred_element_type=jnp.float32, precision=prec)
    out1 = jnp.maximum(out1 + b1_ref[...], 0.0)      # (Cmid, PP)

    # Hierarchical res2net 3x3 branch.  Each conv is ONE im2col matmul: the 9
    # taps are lane-shifted views of the zero-masked padded split, stacked along
    # sublanes.  Values computed at padding positions are garbage but are masked
    # before feeding the next conv and discarded at the final interior extract.
    zeros_slack = jnp.zeros((width, wp + 1), jnp.float32)
    sps = []
    sp = None
    for i in range(nums):
        g = out1[i * width:(i + 1) * width, :]       # aligned sublane slice
        spin = g if i == 0 else sp + g               # inter-scale add
        spin = spin * mask                           # zero the padding ring
        spin_sl = jnp.concatenate([zeros_slack, spin, zeros_slack], axis=1)
        patches = jnp.concatenate(
            [spin_sl[:, dy * wp + dx: dy * wp + dx + pp]
             for dy in range(3) for dx in range(3)],
            axis=0)                                  # (9*width, PP)
        sp = jnp.dot(w2_ref[i], patches,
                     preferred_element_type=jnp.float32, precision=prec)
        sp = jnp.maximum(sp + b2_ref[i], 0.0)        # (width, PP)
        sps.append(sp)

    # concat([sp_0 .. sp_{nums-1}, untouched last split]) along channels.
    tail = out1[nums * width:, :]
    cat = jnp.concatenate(sps + ([tail] if tail.shape[0] else []), axis=0)

    # conv3 (1x1) + folded BN + residual (downsample is None) + ReLU.
    y = jnp.dot(w3_ref[...], cat,
                preferred_element_type=jnp.float32, precision=prec)
    y = jnp.maximum(y + b3_ref[...] + xp, 0.0)       # (Cout, PP)

    # Extract interior columns (padded -> data coords); one lane-dense store.
    rows = [y[:, (r + 1) * wp + 1:(r + 1) * wp + 1 + w] for r in range(h)]
    o_ref[0] = jnp.concatenate(rows, axis=1).astype(o_ref.dtype)


# ----------------------------- wrapper -----------------------------

def prepare_params(p):
    """Fold BN scales into conv weights, rearrange to channels-first layouts."""
    w1f = p['s1'][:, None] * p['w1'].T                         # (Cmid, Cin)
    b1f = p['b1'][:, None]                                     # (Cmid, 1)
    nums, kh, kw, ci, co = p['w2'].shape
    w2f = jnp.stack(                                           # (nums, co, 9*ci)
        [p['s2'][i][:, None] * p['w2'][i].reshape(kh * kw * ci, co).T
         for i in range(nums)])
    b2f = p['b2'][:, :, None]                                  # (nums, co, 1)
    w3f = p['s3'][:, None] * p['w3'].T                         # (Cout, Cmid)
    b3f = p['b3'][:, None]
    return {'w1': w1f, 'b1': b1f, 'w2': w2f, 'b2': b2f, 'w3': w3f, 'b3': b3f}


def bottle2neck_forward(x_nchw, fp, *, width, scale, nums):
    """stride=1, stype='normal', downsample=None path of the PyTorch module."""
    # TODO(synk): stype='stage' AvgPool2d branch and non-None downsample are not
    # exercised in this configuration and are not implemented.
    n, cin, h, w = x_nchw.shape
    hp, wp = h + 2, w + 2
    pp = hp * wp
    c_mid = fp['w1'].shape[0]
    c_out = fp['w3'].shape[0]

    # Zero-pad once (halo for the in-kernel 3x3 convs) and flatten the padded
    # spatial dims into a lane-dense last axis.  NCHW needs no transpose.
    xp = jnp.pad(x_nchw, ((0, 0), (0, 0), (1, 1), (1, 1))).reshape(n, cin, pp)

    rr = jnp.arange(hp)[:, None]
    cc = jnp.arange(wp)[None, :]
    mask = (((rr >= 1) & (rr <= h) & (cc >= 1) & (cc <= w))
            .reshape(1, pp).astype(x_nchw.dtype))

    kernel = functools.partial(_bottle2neck_kernel,
                               h=h, w=w, nums=nums, width=width)

    out = pl.pallas_call(
        kernel,
        out_shape=jax.ShapeDtypeStruct((n, c_out, h * w), x_nchw.dtype),
        grid=(n,),
        in_specs=[
            pl.BlockSpec((1, cin, pp), lambda i: (i, 0, 0)),
            pl.BlockSpec((1, pp), lambda i: (0, 0)),
            pl.BlockSpec((c_mid, cin), lambda i: (0, 0)),
            pl.BlockSpec((c_mid, 1), lambda i: (0, 0)),
            pl.BlockSpec((nums, width, 9 * width), lambda i: (0, 0, 0)),
            pl.BlockSpec((nums, width, 1), lambda i: (0, 0, 0)),
            pl.BlockSpec((c_out, c_mid), lambda i: (0, 0)),
            pl.BlockSpec((c_out, 1), lambda i: (0, 0)),
        ],
        out_specs=pl.BlockSpec((1, c_out, h * w), lambda i: (i, 0, 0)),
        compiler_params=pltpu.CompilerParams(
            dimension_semantics=("parallel",)),   # batch -> both TCs on v7x
    )(xp, mask, fp['w1'], fp['b1'], fp['w2'], fp['b2'], fp['w3'], fp['b3'])

    return out.reshape(n, c_out, h, w)


# ----------------------------- pure-JAX reference -----------------------------

def ref_forward(x_nchw, p, *, width, scale, nums):
    dn = ('NHWC', 'HWIO', 'NHWC')
    prec = lax.Precision.HIGHEST
    x = jnp.transpose(x_nchw, (0, 2, 3, 1))
    out = lax.conv_general_dilated(x, p['w1'][None, None], (1, 1), 'VALID',
                                   dimension_numbers=dn, precision=prec)
    out = jnp.maximum(out * p['s1'] + p['b1'], 0.0)
    spx = [out[..., i * width:(i + 1) * width] for i in range(scale)]
    sps = []
    sp = None
    for i in range(nums):
        sp = spx[i] if i == 0 else sp + spx[i]
        sp = lax.conv_general_dilated(sp, p['w2'][i], (1, 1), ((1, 1), (1, 1)),
                                      dimension_numbers=dn, precision=prec)
        sp = jnp.maximum(sp * p['s2'][i] + p['b2'][i], 0.0)
        sps.append(sp)
    cat = jnp.concatenate(sps + [spx[nums]], axis=-1)
    y = lax.conv_general_dilated(cat, p['w3'][None, None], (1, 1), 'VALID',
                                 dimension_numbers=dn, precision=prec)
    y = jnp.maximum(y * p['s3'] + p['b3'] + x, 0.0)
    return jnp.transpose(y, (0, 3, 1, 2))


# ----------------------------- main -----------------------------

if __name__ == "__main__":
    # Bottle2neck(inplanes=32, planes=8, stride=1, downsample=None,
    #             baseWidth=64, scale=4, stype='normal')
    inplanes, planes = 32, 8
    baseWidth, scale_ = 64, 4
    expansion = 4
    width = int(math.floor(planes * (baseWidth / 64.0)))   # 8
    nums = scale_ - 1                                       # 3
    assert inplanes == planes * expansion  # required for downsample=None residual

    key = jax.random.PRNGKey(0)
    ks = jax.random.split(key, 12)

    def folded_bn(k, c):
        # Inference-mode BatchNorm folded into (scale, bias).
        # TODO(synk): training-mode batch statistics are not reproduced.
        k1, k2, k3, k4 = jax.random.split(k, 4)
        gamma = jax.random.uniform(k1, (c,), jnp.float32, 0.5, 1.5)
        beta = 0.1 * jax.random.normal(k2, (c,), jnp.float32)
        rmean = 0.1 * jax.random.normal(k3, (c,), jnp.float32)
        rvar = jax.random.uniform(k4, (c,), jnp.float32, 0.5, 1.5)
        s = gamma * lax.rsqrt(rvar + 1e-5)
        return s, beta - rmean * s

    p = {}
    p['w1'] = 0.1 * jax.random.normal(ks[0], (inplanes, width * scale_), jnp.float32)
    p['s1'], p['b1'] = folded_bn(ks[1], width * scale_)
    p['w2'] = 0.1 * jax.random.normal(ks[2], (nums, 3, 3, width, width), jnp.float32)
    s2, b2 = zip(*[folded_bn(ks[3 + i], width) for i in range(nums)])
    p['s2'], p['b2'] = jnp.stack(s2), jnp.stack(b2)
    p['w3'] = 0.1 * jax.random.normal(ks[6], (width * scale_, planes * expansion),
                                      jnp.float32)
    p['s3'], p['b3'] = folded_bn(ks[7], planes * expansion)

    x = jax.random.normal(ks[8], (2, inplanes, 16, 16), jnp.float32)

    fp = prepare_params(p)   # one-time param prep: BN folded, channels-first
    fwd = jax.jit(functools.partial(bottle2neck_forward,
                                    width=width, scale=scale_, nums=nums))
    out = jax.block_until_ready(fwd(x, fp))

    ref = ref_forward(x, p, width=width, scale=scale_, nums=nums)
    err = float(jnp.max(jnp.abs(out - ref)))
    assert out.shape == (2, planes * expansion, 16, 16), out.shape
    assert err < 1e-3, f"max abs err {err}"
    print("KERNEL_OK")
</pallas_src>

<mosaic_0001>
module attributes {stable_mosaic.version = 11 : i64} {
  func.func @_bottle2neck_kernel(%arg0: i32, %arg1: memref<1x32x324xf32, #tpu.memory_space<vmem>>, %arg2: memref<1x324xf32, #tpu.memory_space<vmem>>, %arg3: memref<32x32xf32, #tpu.memory_space<vmem>>, %arg4: memref<32x1xf32, #tpu.memory_space<vmem>>, %arg5: memref<3x8x72xf32, #tpu.memory_space<vmem>>, %arg6: memref<3x8x1xf32, #tpu.memory_space<vmem>>, %arg7: memref<32x32xf32, #tpu.memory_space<vmem>>, %arg8: memref<32x1xf32, #tpu.memory_space<vmem>>, %arg9: memref<1x32x256xf32, #tpu.memory_space<vmem>>) attributes {dimension_semantics = [#tpu.dimension_semantics<parallel>], iteration_bounds = array<i64: 2>, scalar_prefetch = 0 : i64, scratch_operands = 0 : i64, tpu.core_type = #tpu.core_type<tc>, window_params = [{transform_indices = @transform_0, window_bounds = array<i64: 1, 32, 324>}, {pipeline_mode = #tpu.pipeline_mode<synchronous>, transform_indices = @transform_1, window_bounds = array<i64: 1, 324>}, {pipeline_mode = #tpu.pipeline_mode<synchronous>, transform_indices = @transform_2, window_bounds = array<i64: 32, 32>}, {pipeline_mode = #tpu.pipeline_mode<synchronous>, transform_indices = @transform_3, window_bounds = array<i64: 32, 1>}, {pipeline_mode = #tpu.pipeline_mode<synchronous>, transform_indices = @transform_4, window_bounds = array<i64: 3, 8, 72>}, {pipeline_mode = #tpu.pipeline_mode<synchronous>, transform_indices = @transform_5, window_bounds = array<i64: 3, 8, 1>}, {pipeline_mode = #tpu.pipeline_mode<synchronous>, transform_indices = @transform_6, window_bounds = array<i64: 32, 32>}, {pipeline_mode = #tpu.pipeline_mode<synchronous>, transform_indices = @transform_7, window_bounds = array<i64: 32, 1>}, {transform_indices = @transform_8, window_bounds = array<i64: 1, 32, 256>}]} {
    %c0 = arith.constant 0 : index
    %c0_0 = arith.constant 0 : index
    %c0_1 = arith.constant 0 : index
    %0 = vector.load %arg1[%c0, %c0_0, %c0_1] : memref<1x32x324xf32, #tpu.memory_space<vmem>>, vector<1x32x324xf32>
    %1 = vector.shape_cast %0 : vector<1x32x324xf32> to vector<32x324xf32>
    %c0_2 = arith.constant 0 : index
    %c0_3 = arith.constant 0 : index
    %2 = vector.load %arg2[%c0_2, %c0_3] : memref<1x324xf32, #tpu.memory_space<vmem>>, vector<1x324xf32>
    %c0_4 = arith.constant 0 : index
    %c0_5 = arith.constant 0 : index
    %3 = vector.load %arg3[%c0_4, %c0_5] : memref<32x32xf32, #tpu.memory_space<vmem>>, vector<32x32xf32>
    %cst = arith.constant dense<0.000000e+00> : vector<32x324xf32>
    %4 = tpu.matmul %3, %1, %cst {dimension_numbers = #tpu.dot_dimension_numbers<[1], [0], [0], [1], [0, 0, 1, 1], [], []>, precision = #tpu.contract_precision<fp32>} : vector<32x32xf32>, vector<32x324xf32>, vector<32x324xf32> -> vector<32x324xf32>
    %c0_6 = arith.constant 0 : index
    %c0_7 = arith.constant 0 : index
    %5 = vector.load %arg4[%c0_6, %c0_7] : memref<32x1xf32, #tpu.memory_space<vmem>>, vector<32x1xf32>
    %6 = vector.broadcast %5 : vector<32x1xf32> to vector<32x324xf32>
    %7 = arith.addf %4, %6 : vector<32x324xf32>
    %cst_8 = arith.constant 0.000000e+00 : f32
    %8 = vector.broadcast %cst_8 : f32 to vector<32x324xf32>
    %9 = arith.maximumf %7, %8 : vector<32x324xf32>
    %cst_9 = arith.constant 0.000000e+00 : f32
    %10 = vector.broadcast %cst_9 : f32 to vector<8x19xf32>
    %11 = vector.extract_strided_slice %9 {offsets = [0, 0], sizes = [8, 324], strides = [1, 1]} : vector<32x324xf32> to vector<8x324xf32>
    %12 = vector.broadcast %2 : vector<1x324xf32> to vector<8x324xf32>
    %13 = arith.mulf %11, %12 : vector<8x324xf32>
    %14 = tpu.concatenate %10, %13, %10 in 1 : vector<8x19xf32>, vector<8x324xf32>, vector<8x19xf32> -> vector<8x362xf32>
    %15 = vector.extract_strided_slice %14 {offsets = [0, 0], sizes = [8, 324], strides = [1, 1]} : vector<8x362xf32> to vector<8x324xf32>
    %16 = vector.extract_strided_slice %14 {offsets = [0, 1], sizes = [8, 324], strides = [1, 1]} : vector<8x362xf32> to vector<8x324xf32>
    %17 = vector.extract_strided_slice %14 {offsets = [0, 2], sizes = [8, 324], strides = [1, 1]} : vector<8x362xf32> to vector<8x324xf32>
    %18 = vector.extract_strided_slice %14 {offsets = [0, 18], sizes = [8, 324], strides = [1, 1]} : vector<8x362xf32> to vector<8x324xf32>
    %19 = vector.extract_strided_slice %14 {offsets = [0, 19], sizes = [8, 324], strides = [1, 1]} : vector<8x362xf32> to vector<8x324xf32>
    %20 = vector.extract_strided_slice %14 {offsets = [0, 20], sizes = [8, 324], strides = [1, 1]} : vector<8x362xf32> to vector<8x324xf32>
    %21 = vector.extract_strided_slice %14 {offsets = [0, 36], sizes = [8, 324], strides = [1, 1]} : vector<8x362xf32> to vector<8x324xf32>
    %22 = vector.extract_strided_slice %14 {offsets = [0, 37], sizes = [8, 324], strides = [1, 1]} : vector<8x362xf32> to vector<8x324xf32>
    %23 = vector.extract_strided_slice %14 {offsets = [0, 38], sizes = [8, 324], strides = [1, 1]} : vector<8x362xf32> to vector<8x324xf32>
    %24 = tpu.concatenate %15, %16, %17, %18, %19, %20, %21, %22, %23 in 0 : vector<8x324xf32>, vector<8x324xf32>, vector<8x324xf32>, vector<8x324xf32>, vector<8x324xf32>, vector<8x324xf32>, vector<8x324xf32>, vector<8x324xf32>, vector<8x324xf32> -> vector<72x324xf32>
    %c0_10 = arith.constant 0 : index
    %c0_11 = arith.constant 0 : index
    %c0_12 = arith.constant 0 : index
    %25 = vector.load %arg5[%c0_10, %c0_11, %c0_12] : memref<3x8x72xf32, #tpu.memory_space<vmem>>, vector<1x8x72xf32>
    %26 = vector.shape_cast %25 : vector<1x8x72xf32> to vector<8x72xf32>
    %cst_13 = arith.constant dense<0.000000e+00> : vector<8x324xf32>
    %27 = tpu.matmul %26, %24, %cst_13 {dimension_numbers = #tpu.dot_dimension_numbers<[1], [0], [0], [1], [0, 0, 1, 1], [], []>, precision = #tpu.contract_precision<fp32>} : vector<8x72xf32>, vector<72x324xf32>, vector<8x324xf32> -> vector<8x324xf32>
    %c0_14 = arith.constant 0 : index
    %c0_15 = arith.constant 0 : index
    %c0_16 = arith.constant 0 : index
    %28 = vector.load %arg6[%c0_14, %c0_15, %c0_16] : memref<3x8x1xf32, #tpu.memory_space<vmem>>, vector<1x8x1xf32>
    %29 = vector.shape_cast %28 : vector<1x8x1xf32> to vector<8x1xf32>
    %30 = vector.broadcast %29 : vector<8x1xf32> to vector<8x324xf32>
    %31 = arith.addf %27, %30 : vector<8x324xf32>
    %cst_17 = arith.constant 0.000000e+00 : f32
    %32 = vector.broadcast %cst_17 : f32 to vector<8x324xf32>
    %33 = arith.maximumf %31, %32 : vector<8x324xf32>
    %34 = vector.extract_strided_slice %9 {offsets = [8, 0], sizes = [8, 324], strides = [1, 1]} : vector<32x324xf32> to vector<8x324xf32>
    %35 = arith.addf %33, %34 : vector<8x324xf32>
    %36 = vector.broadcast %2 : vector<1x324xf32> to vector<8x324xf32>
    %37 = arith.mulf %35, %36 : vector<8x324xf32>
    %38 = tpu.concatenate %10, %37, %10 in 1 : vector<8x19xf32>, vector<8x324xf32>, vector<8x19xf32> -> vector<8x362xf32>
    %39 = vector.extract_strided_slice %38 {offsets = [0, 0], sizes = [8, 324], strides = [1, 1]} : vector<8x362xf32> to vector<8x324xf32>
    %40 = vector.extract_strided_slice %38 {offsets = [0, 1], sizes = [8, 324], strides = [1, 1]} : vector<8x362xf32> to vector<8x324xf32>
    %41 = vector.extract_strided_slice %38 {offsets = [0, 2], sizes = [8, 324], strides = [1, 1]} : vector<8x362xf32> to vector<8x324xf32>
    %42 = vector.extract_strided_slice %38 {offsets = [0, 18], sizes = [8, 324], strides = [1, 1]} : vector<8x362xf32> to vector<8x324xf32>
    %43 = vector.extract_strided_slice %38 {offsets = [0, 19], sizes = [8, 324], strides = [1, 1]} : vector<8x362xf32> to vector<8x324xf32>
    %44 = vector.extract_strided_slice %38 {offsets = [0, 20], sizes = [8, 324], strides = [1, 1]} : vector<8x362xf32> to vector<8x324xf32>
    %45 = vector.extract_strided_slice %38 {offsets = [0, 36], sizes = [8, 324], strides = [1, 1]} : vector<8x362xf32> to vector<8x324xf32>
    %46 = vector.extract_strided_slice %38 {offsets = [0, 37], sizes = [8, 324], strides = [1, 1]} : vector<8x362xf32> to vector<8x324xf32>
    %47 = vector.extract_strided_slice %38 {offsets = [0, 38], sizes = [8, 324], strides = [1, 1]} : vector<8x362xf32> to vector<8x324xf32>
    %48 = tpu.concatenate %39, %40, %41, %42, %43, %44, %45, %46, %47 in 0 : vector<8x324xf32>, vector<8x324xf32>, vector<8x324xf32>, vector<8x324xf32>, vector<8x324xf32>, vector<8x324xf32>, vector<8x324xf32>, vector<8x324xf32>, vector<8x324xf32> -> vector<72x324xf32>
    %c1 = arith.constant 1 : index
    %c0_18 = arith.constant 0 : index
    %c0_19 = arith.constant 0 : index
    %49 = vector.load %arg5[%c1, %c0_18, %c0_19] : memref<3x8x72xf32, #tpu.memory_space<vmem>>, vector<1x8x72xf32>
    %50 = vector.shape_cast %49 : vector<1x8x72xf32> to vector<8x72xf32>
    %cst_20 = arith.constant dense<0.000000e+00> : vector<8x324xf32>
    %51 = tpu.matmul %50, %48, %cst_20 {dimension_numbers = #tpu.dot_dimension_numbers<[1], [0], [0], [1], [0, 0, 1, 1], [], []>, precision = #tpu.contract_precision<fp32>} : vector<8x72xf32>, vector<72x324xf32>, vector<8x324xf32> -> vector<8x324xf32>
    %c1_21 = arith.constant 1 : index
    %c0_22 = arith.constant 0 : index
    %c0_23 = arith.constant 0 : index
    %52 = vector.load %arg6[%c1_21, %c0_22, %c0_23] : memref<3x8x1xf32, #tpu.memory_space<vmem>>, vector<1x8x1xf32>
    %53 = vector.shape_cast %52 : vector<1x8x1xf32> to vector<8x1xf32>
    %54 = vector.broadcast %53 : vector<8x1xf32> to vector<8x324xf32>
    %55 = arith.addf %51, %54 : vector<8x324xf32>
    %cst_24 = arith.constant 0.000000e+00 : f32
    %56 = vector.broadcast %cst_24 : f32 to vector<8x324xf32>
    %57 = arith.maximumf %55, %56 : vector<8x324xf32>
    %58 = vector.extract_strided_slice %9 {offsets = [16, 0], sizes = [8, 324], strides = [1, 1]} : vector<32x324xf32> to vector<8x324xf32>
    %59 = arith.addf %57, %58 : vector<8x324xf32>
    %60 = vector.broadcast %2 : vector<1x324xf32> to vector<8x324xf32>
    %61 = arith.mulf %59, %60 : vector<8x324xf32>
    %62 = tpu.concatenate %10, %61, %10 in 1 : vector<8x19xf32>, vector<8x324xf32>, vector<8x19xf32> -> vector<8x362xf32>
    %63 = vector.extract_strided_slice %62 {offsets = [0, 0], sizes = [8, 324], strides = [1, 1]} : vector<8x362xf32> to vector<8x324xf32>
    %64 = vector.extract_strided_slice %62 {offsets = [0, 1], sizes = [8, 324], strides = [1, 1]} : vector<8x362xf32> to vector<8x324xf32>
    %65 = vector.extract_strided_slice %62 {offsets = [0, 2], sizes = [8, 324], strides = [1, 1]} : vector<8x362xf32> to vector<8x324xf32>
    %66 = vector.extract_strided_slice %62 {offsets = [0, 18], sizes = [8, 324], strides = [1, 1]} : vector<8x362xf32> to vector<8x324xf32>
    %67 = vector.extract_strided_slice %62 {offsets = [0, 19], sizes = [8, 324], strides = [1, 1]} : vector<8x362xf32> to vector<8x324xf32>
    %68 = vector.extract_strided_slice %62 {offsets = [0, 20], sizes = [8, 324], strides = [1, 1]} : vector<8x362xf32> to vector<8x324xf32>
    %69 = vector.extract_strided_slice %62 {offsets = [0, 36], sizes = [8, 324], strides = [1, 1]} : vector<8x362xf32> to vector<8x324xf32>
    %70 = vector.extract_strided_slice %62 {offsets = [0, 37], sizes = [8, 324], strides = [1, 1]} : vector<8x362xf32> to vector<8x324xf32>
    %71 = vector.extract_strided_slice %62 {offsets = [0, 38], sizes = [8, 324], strides = [1, 1]} : vector<8x362xf32> to vector<8x324xf32>
    %72 = tpu.concatenate %63, %64, %65, %66, %67, %68, %69, %70, %71 in 0 : vector<8x324xf32>, vector<8x324xf32>, vector<8x324xf32>, vector<8x324xf32>, vector<8x324xf32>, vector<8x324xf32>, vector<8x324xf32>, vector<8x324xf32>, vector<8x324xf32> -> vector<72x324xf32>
    %c2 = arith.constant 2 : index
    %c0_25 = arith.constant 0 : index
    %c0_26 = arith.constant 0 : index
    %73 = vector.load %arg5[%c2, %c0_25, %c0_26] : memref<3x8x72xf32, #tpu.memory_space<vmem>>, vector<1x8x72xf32>
    %74 = vector.shape_cast %73 : vector<1x8x72xf32> to vector<8x72xf32>
    %cst_27 = arith.constant dense<0.000000e+00> : vector<8x324xf32>
    %75 = tpu.matmul %74, %72, %cst_27 {dimension_numbers = #tpu.dot_dimension_numbers<[1], [0], [0], [1], [0, 0, 1, 1], [], []>, precision = #tpu.contract_precision<fp32>} : vector<8x72xf32>, vector<72x324xf32>, vector<8x324xf32> -> vector<8x324xf32>
    %c2_28 = arith.constant 2 : index
    %c0_29 = arith.constant 0 : index
    %c0_30 = arith.constant 0 : index
    %76 = vector.load %arg6[%c2_28, %c0_29, %c0_30] : memref<3x8x1xf32, #tpu.memory_space<vmem>>, vector<1x8x1xf32>
    %77 = vector.shape_cast %76 : vector<1x8x1xf32> to vector<8x1xf32>
    %78 = vector.broadcast %77 : vector<8x1xf32> to vector<8x324xf32>
    %79 = arith.addf %75, %78 : vector<8x324xf32>
    %cst_31 = arith.constant 0.000000e+00 : f32
    %80 = vector.broadcast %cst_31 : f32 to vector<8x324xf32>
    %81 = arith.maximumf %79, %80 : vector<8x324xf32>
    %82 = vector.extract_strided_slice %9 {offsets = [24, 0], sizes = [8, 324], strides = [1, 1]} : vector<32x324xf32> to vector<8x324xf32>
    %83 = tpu.concatenate %33, %57, %81, %82 in 0 : vector<8x324xf32>, vector<8x324xf32>, vector<8x324xf32>, vector<8x324xf32> -> vector<32x324xf32>
    %c0_32 = arith.constant 0 : index
    %c0_33 = arith.constant 0 : index
    %84 = vector.load %arg7[%c0_32, %c0_33] : memref<32x32xf32, #tpu.memory_space<vmem>>, vector<32x32xf32>
    %cst_34 = arith.constant dense<0.000000e+00> : vector<32x324xf32>
    %85 = tpu.matmul %84, %83, %cst_34 {dimension_numbers = #tpu.dot_dimension_numbers<[1], [0], [0], [1], [0, 0, 1, 1], [], []>, precision = #tpu.contract_precision<fp32>} : vector<32x32xf32>, vector<32x324xf32>, vector<32x324xf32> -> vector<32x324xf32>
    %c0_35 = arith.constant 0 : index
    %c0_36 = arith.constant 0 : index
    %86 = vector.load %arg8[%c0_35, %c0_36] : memref<32x1xf32, #tpu.memory_space<vmem>>, vector<32x1xf32>
    %87 = vector.broadcast %86 : vector<32x1xf32> to vector<32x324xf32>
    %88 = arith.addf %85, %87 : vector<32x324xf32>
    %89 = arith.addf %88, %1 : vector<32x324xf32>
    %cst_37 = arith.constant 0.000000e+00 : f32
    %90 = vector.broadcast %cst_37 : f32 to vector<32x324xf32>
    %91 = arith.maximumf %89, %90 : vector<32x324xf32>
    %92 = vector.extract_strided_slice %91 {offsets = [0, 19], sizes = [32, 16], strides = [1, 1]} : vector<32x324xf32> to vector<32x16xf32>
    %93 = vector.extract_strided_slice %91 {offsets = [0, 37], sizes = [32, 16], strides = [1, 1]} : vector<32x324xf32> to vector<32x16xf32>
    %94 = vector.extract_strided_slice %91 {offsets = [0, 55], sizes = [32, 16], strides = [1, 1]} : vector<32x324xf32> to vector<32x16xf32>
    %95 = vector.extract_strided_slice %91 {offsets = [0, 73], sizes = [32, 16], strides = [1, 1]} : vector<32x324xf32> to vector<32x16xf32>
    %96 = vector.extract_strided_slice %91 {offsets = [0, 91], sizes = [32, 16], strides = [1, 1]} : vector<32x324xf32> to vector<32x16xf32>
    %97 = vector.extract_strided_slice %91 {offsets = [0, 109], sizes = [32, 16], strides = [1, 1]} : vector<32x324xf32> to vector<32x16xf32>
    %98 = vector.extract_strided_slice %91 {offsets = [0, 127], sizes = [32, 16], strides = [1, 1]} : vector<32x324xf32> to vector<32x16xf32>
    %99 = vector.extract_strided_slice %91 {offsets = [0, 145], sizes = [32, 16], strides = [1, 1]} : vector<32x324xf32> to vector<32x16xf32>
    %100 = vector.extract_strided_slice %91 {offsets = [0, 163], sizes = [32, 16], strides = [1, 1]} : vector<32x324xf32> to vector<32x16xf32>
    %101 = vector.extract_strided_slice %91 {offsets = [0, 181], sizes = [32, 16], strides = [1, 1]} : vector<32x324xf32> to vector<32x16xf32>
    %102 = vector.extract_strided_slice %91 {offsets = [0, 199], sizes = [32, 16], strides = [1, 1]} : vector<32x324xf32> to vector<32x16xf32>
    %103 = vector.extract_strided_slice %91 {offsets = [0, 217], sizes = [32, 16], strides = [1, 1]} : vector<32x324xf32> to vector<32x16xf32>
    %104 = vector.extract_strided_slice %91 {offsets = [0, 235], sizes = [32, 16], strides = [1, 1]} : vector<32x324xf32> to vector<32x16xf32>
    %105 = vector.extract_strided_slice %91 {offsets = [0, 253], sizes = [32, 16], strides = [1, 1]} : vector<32x324xf32> to vector<32x16xf32>
    %106 = vector.extract_strided_slice %91 {offsets = [0, 271], sizes = [32, 16], strides = [1, 1]} : vector<32x324xf32> to vector<32x16xf32>
    %107 = vector.extract_strided_slice %91 {offsets = [0, 289], sizes = [32, 16], strides = [1, 1]} : vector<32x324xf32> to vector<32x16xf32>
    %108 = tpu.concatenate %92, %93, %94, %95, %96, %97, %98, %99, %100, %101, %102, %103, %104, %105, %106, %107 in 1 : vector<32x16xf32>, vector<32x16xf32>, vector<32x16xf32>, vector<32x16xf32>, vector<32x16xf32>, vector<32x16xf32>, vector<32x16xf32>, vector<32x16xf32>, vector<32x16xf32>, vector<32x16xf32>, vector<32x16xf32>, vector<32x16xf32>, vector<32x16xf32>, vector<32x16xf32>, vector<32x16xf32>, vector<32x16xf32> -> vector<32x256xf32>
    %c0_38 = arith.constant 0 : index
    %c0_39 = arith.constant 0 : index
    %c0_40 = arith.constant 0 : index
    %109 = vector.load %arg9[%c0_38, %c0_39, %c0_40] : memref<1x32x256xf32, #tpu.memory_space<vmem>>, vector<1x32x256xf32>
    %110 = vector.shape_cast %109 : vector<1x32x256xf32> to vector<32x256xf32>
    %111 = vector.shape_cast %108 : vector<32x256xf32> to vector<1x32x256xf32>
    tpu.vector_store %arg9[%c0_38, %c0_39, %c0_40], %111 {strides = array<i32>} : memref<1x32x256xf32, #tpu.memory_space<vmem>>, vector<1x32x256xf32>,
    return
  }
  func.func @transform_0(%arg0: i32) -> (i32, i32, i32) {
    %c0_i32 = arith.constant 0 : i32
    %c0_i32_0 = arith.constant 0 : i32
    %c0_i32_1 = arith.constant 0 : i32
    return %arg0, %c0_i32, %c0_i32_0 : i32, i32, i32
  }
  func.func @transform_1(%arg0: i32) -> (i32, i32) {
    %c0_i32 = arith.constant 0 : i32
    %c0_i32_0 = arith.constant 0 : i32
    %c0_i32_1 = arith.constant 0 : i32
    return %c0_i32, %c0_i32_0 : i32, i32
  }
  func.func @transform_2(%arg0: i32) -> (i32, i32) {
    %c0_i32 = arith.constant 0 : i32
    %c0_i32_0 = arith.constant 0 : i32
    %c0_i32_1 = arith.constant 0 : i32
    return %c0_i32, %c0_i32_0 : i32, i32
  }
  func.func @transform_3(%arg0: i32) -> (i32, i32) {
    %c0_i32 = arith.constant 0 : i32
    %c0_i32_0 = arith.constant 0 : i32
    %c0_i32_1 = arith.constant 0 : i32
    return %c0_i32, %c0_i32_0 : i32, i32
  }
  func.func @transform_4(%arg0: i32) -> (i32, i32, i32) {
    %c0_i32 = arith.constant 0 : i32
    %c0_i32_0 = arith.constant 0 : i32
    %c0_i32_1 = arith.constant 0 : i32
    %c0_i32_2 = arith.constant 0 : i32
    return %c0_i32, %c0_i32_0, %c0_i32_1 : i32, i32, i32
  }
  func.func @transform_5(%arg0: i32) -> (i32, i32, i32) {
    %c0_i32 = arith.constant 0 : i32
    %c0_i32_0 = arith.constant 0 : i32
    %c0_i32_1 = arith.constant 0 : i32
    %c0_i32_2 = arith.constant 0 : i32
    return %c0_i32, %c0_i32_0, %c0_i32_1 : i32, i32, i32
  }
  func.func @transform_6(%arg0: i32) -> (i32, i32) {
    %c0_i32 = arith.constant 0 : i32
    %c0_i32_0 = arith.constant 0 : i32
    %c0_i32_1 = arith.constant 0 : i32
    return %c0_i32, %c0_i32_0 : i32, i32
  }
  func.func @transform_7(%arg0: i32) -> (i32, i32) {
    %c0_i32 = arith.constant 0 : i32
    %c0_i32_0 = arith.constant 0 : i32
    %c0_i32_1 = arith.constant 0 : i32
    return %c0_i32, %c0_i32_0 : i32, i32
  }
  func.func @transform_8(%arg0: i32) -> (i32, i32, i32) {
    %c0_i32 = arith.constant 0 : i32
    %c0_i32_0 = arith.constant 0 : i32
    %c0_i32_1 = arith.constant 0 : i32
    return %arg0, %c0_i32, %c0_i32_0 : i32, i32, i32
  }
}

</mosaic_0001>

<bundles_post_ra>
// kernel: bottle2neck_forward.1
= control target key start
LH: loop header
LB: loop body
LE: loop exit
PB: predicated region body
PF: predicated region fallthrough
CT: control target
= control target key end

     0   :  { %s9347_s27 = smov 0   ;;  %s11836_s0 = inlined_call_operand.vmem [shape: f32[2,32,324], index: 0, kind: input, shape index: {}]   ;;  %s11837_s1 = inlined_call_operand.vmem [shape: f32[1,324], index: 1, kind: input, shape index: {}]   ;;  %s11838_s2 = inlined_call_operand.vmem [shape: f32[32,32], index: 2, kind: input, shape index: {}]   ;;  %s11839_s3 = inlined_call_operand.vmem [shape: f32[32,1], index: 3, kind: input, shape index: {}]   ;;  %s11840_s4 = inlined_call_operand.vmem [shape: f32[3,8,72], index: 4, kind: input, shape index: {}]   ;;  %s11841_s5 = inlined_call_operand.vmem [shape: f32[3,8,1], index: 5, kind: input, shape index: {}]   ;;  %s11842_s6 = inlined_call_operand.vmem [shape: f32[32,32], index: 6, kind: input, shape index: {}]   ;;  %s11843_s7 = inlined_call_operand.vmem [shape: f32[32,1], index: 7, kind: input, shape index: {}]   ;;  %s11844_s8 = inlined_call_operand.vmem [shape: f32[2,32,256], index: 8, kind: output, shape index: {}]  }
   0x1 LB: > { %s7471_s28 = sadd.s32 4294967295, %s9273_s27   ;;  %p7475_p0 = scmp.ge.s32.totalorder %s9273_s27, 1  ;;  %s9273_s27 = sphi %s9347_s27, %s18_s27  }
   0x2   : > { %p262_p1 = scmp.lt.s32.totalorder %s9273_s27, 3 }
   0x4   : > { %p263_p2 = pnand %p7475_p0, %p262_p1 }
   0x6   : > { %266 = sbr.rel (%p263_p2) target bundleno = 2663 (0xa67), region = 52 }
   0xd   : > { %p296_p3 = scmp.lt.s32.totalorder %s7471_s28, 1  ;;  %v319_v0 = vld [vmem:[%s11838_s2] sm:$0xff]  ;;  %vm347_vm0 = vcmask 261120   ;;  %v320_v1 = vld [vmem:[%s11838_s2 + $0x8] sm:$0xff]  ;;  %v321_v2 = vld [vmem:[%s11838_s2 + $0x10] sm:$0xff]  ;;  %v11851_v3 = vmov 0.0  }
   0xe   : > { %432 = vmatprep.mubr.f32.mxu0 %v11851_v3  ;;  %v349_v4 = vsel %vm347_vm0, %v319_v0, 0  ;;  %v352_v5 = vsel %vm347_vm0, %v320_v1, 0  ;;  %v355_v6 = vsel %vm347_vm0, %v321_v2, 0  ;;  %v322_v7 = vld [vmem:[%s11838_s2 + $0x18] sm:$0xff]  ;;  %v323_v8 = vld [vmem:[%s11839_s3] sm:$0xff]  ;;  %v9276_v13 = vmov 0  }
   0xf   : > { %s12206_s28 = smov (!%p296_p3, %s7471_s28), 1  ;;  %v9376_v9 = vand.u32 4294901760, %v349_v4  ;;  %v9378_v10 = vand.u32 4294901760, %v352_v5  ;;  %v9380_v11 = vand.u32 4294901760, %v355_v6  ;;  %v358_v12 = vsel %vm347_vm0, %v322_v7, 0  ;;  %9253 = vset.pattern.permute.xlu0 %v9276_v13  ;;  %9254 = vset.pattern.permute.xlu1 %v9276_v13  ;;  %s9277_s23 = smov 19  }
  0x10   : > { %v9383_v14 = vand.u32 4294901760, %v358_v12  ;;  %329 = vperm.xlu0 %9253, %v323_v8   ;;  %s9217_s17 = smul.u32 96, %s12206_s28  ;;  %vm1704_vm1 = vcmask 154624   ;;  %s9278_s24 = smov 126   ;;  %vm1711_vm2 = vcmask 711680   ;;  %vm9286_vm3 = vmmov 0  }
  0x11   : > { %v9387_v15 = vsub.f32 %v349_v4, %v9376_v9  ;;  %v9390_v16 = vsub.f32 %v352_v5, %v9378_v10  ;;  %v9393_v17 = vsub.f32 %v355_v6, %v9380_v11  ;;  %s9279_s25 = smov 127   ;;  %s9280_s26 = smov 109   ;;  %vm1818_vm4 = vcmask 588800  }
  0x12   : > { %v9396_v18 = vsub.f32 %v358_v12, %v9383_v14  ;;  %s9401_s20 = scalar_lea.vmem %s11836_s0, %s9217_s17  ;;  %s9281_s29 = smov 110   ;;  %vm1733_vm5 = vcmask 1031168   ;;  %vm1721_vm6 = vcmask 1039360   ;;  %vm1745_vm7 = vcmask 900096  }
  0x13   : > { %v9404_v19 = vand.u32 4294901760, %v9387_v15  ;;  %v9407_v20 = vand.u32 4294901760, %v9390_v16  ;;  %v307_v21 = vld [vmem:[%s9401_s20 + $0x8] sm:$0xff]  ;;  %v310_v22 = vld [vmem:[%s9401_s20 + $0x20] sm:$0xff]  ;;  %v308_v23 = vld [vmem:[%s9401_s20 + $0x10] sm:$0xff]  ;;  %v9413_v24 = vand.u32 4294901760, %v9393_v17 }
  0x14   : > { %v9416_v25 = vand.u32 4294901760, %v9396_v18  ;;  %v360_v26 = vand.u32 4294901760, %v307_v21  ;;  %v364_v27 = vand.u32 4294901760, %v310_v22  ;;  %v311_v28 = vld [vmem:[%s9401_s20 + $0x28] sm:$0xff]  ;;  %v1051_v29 = vand.u32 4294901760, %v308_v23  ;;  %v306_v30 = vld [vmem:[%s9401_s20] sm:$0xff] }
  0x15   : > { %v309_v31 = vld [vmem:[%s9401_s20 + $0x18] sm:$0xff]  ;;  %v436_v32 = vsub.f32 %v9387_v15, %v9404_v19  ;;  %v1054_v33 = vand.u32 4294901760, %v311_v28  ;;  %v362_v34 = vand.u32 4294901760, %v306_v30  ;;  %v316_v37 = vld [vmem:[%s9401_s20 + $0x50] sm:$0xff]  ;;  %v314_v38 = vld [vmem:[%s9401_s20 + $0x40] sm:$0xff]  ;;  %v447_v39 = vsub.f32 %v9390_v16, %v9407_v20  ;;  %s9282_s30 = smov 108  }
  0x16   : > { %v366_v35 = vand.u32 4294901760, %v309_v31  ;;  %v313_v36 = vld [vmem:[%s9401_s20 + $0x38] sm:$0xff]  ;;  %v9428_v40 = vpack.c.bf16 %v364_v27, %v360_v26  ;;  %v9430_v41 = vsub.f32 %v307_v21, %v360_v26  ;;  %v9432_v42 = vsub.f32 %v310_v22, %v364_v27  ;;  %v312_v45 = vld [vmem:[%s9401_s20 + $0x30] sm:$0xff]  ;;  %v315_v46 = vld [vmem:[%s9401_s20 + $0x48] sm:$0xff]  ;;  %s9284_s9 = smov 92   ;;  %s9285_s10 = smov 91  }
  0x17   : > { %v368_v43 = vand.u32 4294901760, %v313_v36  ;;  %v317_v44 = vld [vmem:[%s9401_s20 + $0x58] sm:$0xff]  ;;  %v9437_v47 = vpack.c.bf16 %v1054_v33, %v1051_v29  ;;  %v9441_v49 = vsub.f32 %v306_v30, %v362_v34  ;;  %v372_v51 = vand.u32 4294901760, %v316_v37  ;;  %s9287_s11 = smov 90   ;;  %s9289_s14 = smov 81  }
  0x18   : > { %v9439_v48 = vpack.c.bf16 %v366_v35, %v362_v34  ;;  %v9443_v50 = vsub.f32 %v309_v31, %v366_v35  ;;  %8309 = vmatprep.subr.bf16.mxu0 %v9428_v40  ;;  %v1057_v53 = vand.u32 4294901760, %v314_v38  ;;  %v1060_v54 = vand.u32 4294901760, %v317_v44  ;;  %s9290_s15 = smov 79   ;;  %s9292_s16 = smov 107  }
  0x19   : > { %v9446_v52 = vsub.f32 %v313_v36, %v368_v43  ;;  %8357 = vmatprep.subr.bf16.mxu1 %v9437_v47  ;;  %v370_v55 = vand.u32 4294901760, %v312_v45  ;;  %v374_v56 = vand.u32 4294901760, %v315_v46  ;;  %v437_v57 = vand.u32 4294901760, %v436_v32  ;;  %s9293_s17 = smov 105   ;;  %s9294_s18 = smov 103  }
  0x1a   : > { %8311 = vmatpush1.bf16.msra.mxu0 %v9439_v48  ;;  %v479_v58 = vand.u32 4294901760, %v9430_v41  ;;  %8359 = vmatpush3.bf16.msra.mxu1 %v9437_v47  ;;  %v9452_v59 = vpack.c.bf16 %v372_v51, %v368_v43  ;;  %v9454_v60 = vsub.f32 %v316_v37, %v372_v51  ;;  %v9456_v61 = vpack.c.bf16 %v1060_v54, %v1057_v53  ;;  %s9295_s19 = smov 101   ;;  %s9296_s21 = smov 99  }
  0x1b   : > { %v491_v62 = vand.u32 4294901760, %v9432_v42  ;;  %v9459_v63 = vpack.c.bf16 %v374_v56, %v370_v55  ;;  %v9461_v0 = vsub.f32 %v312_v45, %v370_v55  ;;  %v9463_v1 = vsub.f32 %v315_v46, %v374_v56  ;;  %7770 = vmatprep.mubr.f32.mxu1 %v437_v57  ;;  %s9297_s22 = smov 95   ;;  %s9298_s12 = smov 93  }
  0x1c   : > { %v480_v2 = vsub.f32 %v9430_v41, %v479_v58  ;;  %8313 = vmatprep.subr.bf16.mxu0 %v9452_v59  ;;  %8361 = vmatprep.subr.bf16.mxu1 %v9456_v61  ;;  %v448_v5 = vand.u32 4294901760, %v447_v39  ;;  %v9473_v6 = vsub.f32 %v308_v23, %v1051_v29  ;;  %v9475_v7 = vsub.f32 %v311_v28, %v1054_v33  ;;  %s9299_s13 = smov 89  }
  0x1d   : > { %v492_v4 = vsub.f32 %v9432_v42, %v491_v62  ;;  %v485_v12 = vand.u32 4294901760, %v9441_v49  ;;  %v497_v13 = vand.u32 4294901760, %v9443_v50  ;;  %v458_v21 = vsub.f32 %v9393_v17, %v9413_v24 }
  0x1e   : > { %8315 = vmatpush1.bf16.msra.mxu0 %v9459_v63  ;;  %v481_v8 = vand.u32 4294901760, %v480_v2  ;;  %8363 = vmatpush3.bf16.msra.mxu1 %v9456_v61  ;;  %v1162_v26 = vand.u32 4294901760, %v9473_v6  ;;  %v1169_v23 = vand.u32 4294901760, %v9475_v7  ;;  %v469_v27 = vsub.f32 %v9396_v18, %v9416_v25 }
  0x1f   : > { %v493_v22 = vand.u32 4294901760, %v492_v4  ;;  %v486_v28 = vsub.f32 %v9441_v49, %v485_v12  ;;  %v498_v29 = vsub.f32 %v9443_v50, %v497_v13  ;;  %v459_v30 = vand.u32 4294901760, %v458_v21 }
  0x20   : > { %v9493_v31 = vsub.f32 %v314_v38, %v1057_v53  ;;  %v1163_v33 = vsub.f32 %v9473_v6, %v1162_v26  ;;  %v1170_v34 = vsub.f32 %v9475_v7, %v1169_v23  ;;  %v470_v35 = vand.u32 4294901760, %v469_v27 }
  0x21   : > { %438 = vmatmul.mubr.f32.vlgmr.msra.gmra.mrb[0].mxu0 %v437_v57  ;;  %v8316_v32 = vpack.c.bf16 %v493_v22, %v481_v8  ;;  %7771 = vmatmul.mubr.f32.vlgmr.msra.gmra.mrb[0].mxu1 %v448_v5  ;;  %v487_v36 = vand.u32 4294901760, %v486_v28  ;;  %v499_v37 = vand.u32 4294901760, %v498_v29  ;;  %v9503_v38 = vsub.f32 %v317_v44, %v1060_v54 }
  0x22   : > { %443 = vmatprep.mubr.f32.mxu0 %v11851_v3  ;;  %v1176_v39 = vand.u32 4294901760, %v9493_v31  ;;  %v1164_v43 = vand.u32 4294901760, %v1163_v33  ;;  %v1171_v45 = vand.u32 4294901760, %v1170_v34  ;;  %7773 = vmatprep.mubr.f32.mxu1 %v459_v30  ;;  %v503_v46 = vand.u32 4294901760, %v9446_v52 }
  0x23   : > { %8317 = vmatprep.subr.bf16.mxu0 %v8316_v32  ;;  %v515_v51 = vand.u32 4294901760, %v9454_v60  ;;  %v8318_v53 = vpack.c.bf16 %v499_v37, %v487_v36  ;;  %v1183_v56 = vand.u32 4294901760, %v9503_v38  ;;  %v509_v2 = vand.u32 4294901760, %v9461_v0 }
  0x24   : > { %v1177_v55 = vsub.f32 %v9493_v31, %v1176_v39  ;;  %v8364_v57 = vpack.c.bf16 %v1171_v45, %v1164_v43  ;;  %v504_v44 = vsub.f32 %v9446_v52, %v503_v46  ;;  %v521_v21 = vand.u32 4294901760, %v9463_v1 }
  0x25   : > { %449 = vmatmul.mubr.f32.gmra.mrb[2].mxu0 %v448_v5  ;;  %v516_v54 = vsub.f32 %v9454_v60, %v515_v51  ;;  %7774 = vmatmul.mubr.f32.gmra.mrb[2].mxu1 %v470_v35  ;;  %v1184_v8 = vsub.f32 %v9503_v38, %v1183_v56  ;;  %v510_v27 = vsub.f32 %v9461_v0, %v509_v2  ;;  %vm1757_vm8 = vcmask 891904  }
  0x26   : > { %8319 = vmatpush1.bf16.msra.mxu0 %v8318_v53  ;;  %v1178_v4 = vand.u32 4294901760, %v1177_v55  ;;  %8365 = vmatprep.subr.bf16.mxu1 %v8364_v57  ;;  %v505_v5 = vand.u32 4294901760, %v504_v44  ;;  %v522_v29 = vsub.f32 %v9463_v1, %v521_v21  ;;  %v8372_v36 = vpack.c.bf16 %v9475_v7, %v9473_v6 }
  0x27   : > { %454 = vmatprep.mubr.f32.mxu0 %v11851_v3  ;;  %v517_v22 = vand.u32 4294901760, %v516_v54  ;;  %8367 = vmatpush3.bf16.msra.mxu1 %v8364_v57  ;;  %v1185_v28 = vand.u32 4294901760, %v1184_v8  ;;  %v511_v33 = vand.u32 4294901760, %v510_v27  ;;  %v8324_v43 = vpack.c.bf16 %v9432_v42, %v9430_v41  ;;  %v324_v8 = vld [vmem:[%s11839_s3 + $0x8] sm:$0xff] }
  0x28   : > { %7784 = vmatprep.mubr.f32.mxu1 %v9376_v9  ;;  %v523_v37 = vand.u32 4294901760, %v522_v29  ;;  %v8326_v53 = vpack.c.bf16 %v9443_v50, %v9441_v49  ;;  %v8328_v55 = vpack.c.bf16 %v9454_v60, %v9446_v52  ;;  %v8388_v57 = vpack.c.bf16 %v1169_v23, %v1162_v26 }
  0x29   : > { %460 = vmatmul.mubr.f32.gmra.mrb[4].mxu0 %v459_v30  ;;  %v8320_v32 = vpack.c.bf16 %v517_v22, %v505_v5  ;;  %v8368_v34 = vpack.c.bf16 %v1185_v28, %v1178_v4  ;;  %v8376_v30 = vpack.c.bf16 %v9503_v38, %v9493_v31  ;;  %v8392_v44 = vpack.c.bf16 %v1183_v56, %v1176_v39  ;;  %v1811_v22 = vld [vmem:[%s11840_s4] sm:$0xff] }
  0x2a   : > { %465 = vmatprep.mubr.f32.mxu0 %v11851_v3  ;;  %v8322_v45 = vpack.c.bf16 %v523_v37, %v511_v33  ;;  %v8340_v6 = vpack.c.bf16 %v491_v62, %v479_v58  ;;  %v11853_v4 = vmov 0.0|0.0   ;;  %v1820_v29 = vsel %vm1818_vm4, %v1811_v22, 0 }
  0x2b   : > { %8321 = vmatprep.subr.bf16.mxu0 %v8320_v32  ;;  %8369 = vmatprep.subr.bf16.mxu1 %v8368_v34  ;;  %vm1769_vm9 = vcmask 883712   ;;  %vm1781_vm10 = vcmask 752640   ;;  %vm1793_vm11 = vcmask 744448   ;;  %vm1805_vm12 = vcmask 736256  }
  0x2c   : > { %8371 = vmatpush3.bf16.msra.mxu1 %v8368_v34  ;;  %8323 = vmatpush1.bf16.msra.mxu0 %v8322_v45  ;;  %vm7346_vm13 = vcmask 130048   ;;  %vm7355_vm14 = vcmask 392192   ;;  %vm7212_vm15 = vcmask 793600  }
  0x2d   : > { %471 = vmatmul.mubr.f32.gmra.mrb[6].mxu0 %v470_v35  ;;  %8373 = vmatprep.subr.bf16.mxu1 %v8372_v36  ;;  %v8330_v35 = vpack.c.bf16 %v9463_v1, %v9461_v0 }
  0x2e   : > { %581 = vmatprep.mubr.f32.mxu0 %v11851_v3  ;;  %8325 = vmatprep.subr.bf16.mxu0 %v8324_v43 }
  0x2f   : > { %7785 = vmatmul.mubr.f32.vlgmr.msra.gmra.mrb[0].mxu1 %v9378_v10 }
  0x30   : > { %8375 = vmatpush3.bf16.msra.mxu1 %v8372_v36  ;;  %7787 = vmatprep.mubr.f32.mxu1 %v9380_v11  ;;  %v9747_v36 = vand.u32 4294901760, %v1820_v29 }
  0x31   : > { %8377 = vmatprep.subr.bf16.mxu1 %v8376_v30  ;;  %583 = vmatmul.mubr.f32.vlgmr.msra.gmra.mrb[0].mxu0 %v9376_v9 }
  0x32   : > { %8327 = vmatpush1.bf16.msra.mxu0 %v8326_v53  ;;  %588 = vmatprep.mubr.f32.mxu0 %v11851_v3 }
  0x33   : > { %7788 = vmatmul.mubr.f32.gmra.mrb[2].mxu1 %v9383_v14  ;;  %8329 = vmatprep.subr.bf16.mxu0 %v8328_v55 }
  0x34   : > { %8379 = vmatpush3.bf16.msra.mxu1 %v8376_v30  ;;  %7798 = vmatprep.mubr.f32.mxu1 %v9387_v15 }
  0x35   : > { %8381 = vmatprep.subr.bf16.mxu1 %v9437_v47  ;;  %590 = vmatmul.mubr.f32.gmra.mrb[2].mxu0 %v9378_v10 }
  0x36   : > { %595 = vmatprep.mubr.f32.mxu0 %v11851_v3  ;;  %8331 = vmatpush1.bf16.msra.mxu0 %v8330_v35 }
  0x37   : > { %7799 = vmatmul.mubr.f32.vlgmr.msra.gmra.mrb[0].mxu1 %v9390_v16  ;;  %8333 = vmatprep.subr.bf16.mxu0 %v9428_v40 }
  0x38   : > { %8383 = vmatpush3.bf16.msra.mxu1 %v9437_v47  ;;  %7801 = vmatprep.mubr.f32.mxu1 %v9393_v17 }
  0x39   : > { %8385 = vmatprep.subr.bf16.mxu1 %v9456_v61  ;;  %597 = vmatmul.mubr.f32.gmra.mrb[4].mxu0 %v9380_v11 }
  0x3a   : > { %602 = vmatprep.mubr.f32.mxu0 %v11851_v3 }
  0x3b   : > { %7802 = vmatmul.mubr.f32.gmra.mrb[2].mxu1 %v9396_v18 }
  0x3c   : > { %8387 = vmatpush3.bf16.msra.mxu1 %v9456_v61  ;;  %7812 = vmatprep.mubr.f32.mxu1 %v9404_v19 }
  0x3d   : > { %8389 = vmatprep.subr.bf16.mxu1 %v8388_v57  ;;  %604 = vmatmul.mubr.f32.gmra.mrb[6].mxu0 %v9383_v14 }
  0x3e   : > { %690 = vmatprep.mubr.f32.mxu0 %v11851_v3 }
  0x3f   : > { %7813 = vmatmul.mubr.f32.vlgmr.msra.gmra.mrb[0].mxu1 %v9407_v20 }
  0x40   : > { %8391 = vmatpush3.bf16.msra.mxu1 %v8388_v57  ;;  %7815 = vmatprep.mubr.f32.mxu1 %v9413_v24  ;;  %v9764_v57 = vsub.f32 %v1820_v29, %v9747_v36 }
  0x41   : > { %8393 = vmatprep.subr.bf16.mxu1 %v8392_v44  ;;  %693 = vmatmul.mubr.f32.vlgmr.msra.gmra.mrb[0].mxu0 %v9387_v15  ;;  %v8342_v15 = vpack.c.bf16 %v497_v13, %v485_v12 }
  0x42   : > { %8335 = vmatpush1.bf16.msra.mxu0 %v9439_v48  ;;  %698 = vmatprep.mubr.f32.mxu0 %v11851_v3 }
  0x43   : > { %7816 = vmatmul.mubr.f32.gmra.mrb[2].mxu1 %v9416_v25  ;;  %8337 = vmatprep.subr.bf16.mxu0 %v9452_v59 }
  0x44   : > { %8395 = vmatpush3.bf16.msra.mxu1 %v8392_v44  ;;  %7826 = vmatprep.mubr.f32.mxu1 %v9376_v9 }
  0x45   : > { %8397 = vmatprep.subr.bf16.mxu1 %v9437_v47  ;;  %701 = vmatmul.mubr.f32.gmra.mrb[2].mxu0 %v9390_v16  ;;  %v8344_v16 = vpack.c.bf16 %v515_v51, %v503_v46 }
  0x46   : > { %706 = vmatprep.mubr.f32.mxu0 %v11851_v3  ;;  %8339 = vmatpush1.bf16.msra.mxu0 %v9459_v63 }
  0x47   : > { %7827 = vmatmul.mubr.f32.vlgmr.msra.gmra.mrb[0].mxu1 %v9378_v10  ;;  %8341 = vmatprep.subr.bf16.mxu0 %v8340_v6 }
  0x48   : > { %8399 = vmatpush3.bf16.msra.mxu1 %v9437_v47  ;;  %7829 = vmatprep.mubr.f32.mxu1 %v9380_v11 }
  0x49   : > { %8401 = vmatprep.subr.bf16.mxu1 %v9456_v61  ;;  %709 = vmatmul.mubr.f32.gmra.mrb[4].mxu0 %v9393_v17  ;;  %v8346_v17 = vpack.c.bf16 %v521_v21, %v509_v2 }
  0x4a   : > { %714 = vmatprep.mubr.f32.mxu0 %v11851_v3 }
  0x4b   : > { %7830 = vmatmul.mubr.f32.gmra.mrb[2].mxu1 %v9383_v14 }
  0x4c   : > { %8403 = vmatpush3.bf16.msra.mxu1 %v9456_v61  ;;  %7840 = vmatprep.mubr.f32.mxu1 %v9376_v9 }
  0x4d   : > { %717 = vmatmul.mubr.f32.gmra.mrb[6].mxu0 %v9396_v18  ;;  %v1677_v18 = vlaneseq }
  0x4e   : > { %795 = vmatprep.mubr.f32.mxu0 %v11851_v3 }
  0x4f   : > { %7841 = vmatmul.mubr.f32.vlgmr.msra.gmra.mrb[0].mxu1 %v9378_v10 }
  0x50   : > { %7843 = vmatprep.mubr.f32.mxu1 %v9380_v11 }
  0x51   : > { %799 = vmatmul.mubr.f32.vlgmr.msra.gmra.mrb[0].mxu0 %v9404_v19  ;;  %v1678_v19 = vshrl.u32 %v1677_v18, 7 }
  0x52   : > { %8343 = vmatpush1.bf16.msra.mxu0 %v8342_v15  ;;  %804 = vmatprep.mubr.f32.mxu0 %v11851_v3 }
  0x53   : > { %7844 = vmatmul.mubr.f32.gmra.mrb[2].mxu1 %v9383_v14  ;;  %8345 = vmatprep.subr.bf16.mxu0 %v8344_v16  ;;  %v1683_v49 = vsub.s32 1, %v1678_v19 }
  0x54   : > { %1904 = vmatprep.mubr.f32.mxu1 %v11851_v3 }
  0x55   : > { %808 = vmatmul.mubr.f32.gmra.mrb[2].mxu0 %v9407_v20  ;;  %v1687_v20 = vsub.s32 2, %v1678_v19 }
  0x56   : > { %813 = vmatprep.mubr.f32.mxu0 %v11851_v3  ;;  %8347 = vmatpush1.bf16.msra.mxu0 %v8346_v17  ;;  %v1812_v17 = vld [vmem:[%s11841_s5] sm:$0xff] }
  0x57   : > { %8349 = vmatprep.subr.bf16.mxu0 %v9428_v40 }
  0x59   : > { %817 = vmatmul.mubr.f32.gmra.mrb[4].mxu0 %v9413_v24 }
  0x5a   : > { %822 = vmatprep.mubr.f32.mxu0 %v11851_v3 }
  0x5d   : > { %826 = vmatmul.mubr.f32.gmra.mrb[6].mxu0 %v9416_v25 }
  0x5e   : > { %920 = vmatprep.mubr.f32.mxu0 %v11851_v3 }
  0x61   : > { %922 = vmatmul.mubr.f32.vlgmr.msra.gmra.mrb[0].mxu0 %v9376_v9 }
  0x62   : > { %8351 = vmatpush1.bf16.msra.mxu0 %v9439_v48  ;;  %927 = vmatprep.mubr.f32.mxu0 %v11851_v3  ;;  %v1679_v48 = vsub.s32 0, %v1678_v19 }
  0x63   : > { %8353 = vmatprep.subr.bf16.mxu0 %v9452_v59 }
  0x65   : > { %929 = vmatmul.mubr.f32.gmra.mrb[2].mxu0 %v9378_v10 }
  0x66   : > { %934 = vmatprep.mubr.f32.mxu0 %v11851_v3  ;;  %8355 = vmatpush1.bf16.msra.mxu0 %v9459_v63 }
  0x67   : > { %8500 = vmatprep.subr.bf16.mxu0 %v11853_v4 }
  0x69   : > { %936 = vmatmul.mubr.f32.gmra.mrb[4].mxu0 %v9380_v11 }
  0x6a   : > { %941 = vmatprep.mubr.f32.mxu0 %v11851_v3 }
  0x6d   : > { %943 = vmatmul.mubr.f32.gmra.mrb[6].mxu0 %v9383_v14 }
  0x6e   : > { %1021 = vmatprep.mubr.f32.mxu0 %v11851_v3 }
  0x71   : > { %1023 = vmatmul.mubr.f32.vlgmr.msra.gmra.mrb[0].mxu0 %v9376_v9  ;;  %v318_v9 = vld [vmem:[%s11837_s1] sm:$0x7] }
  0x72   : > { %1028 = vmatprep.mubr.f32.mxu0 %v11851_v3  ;;  %v9648_v41 = vrot.slane %v318_v9, %v1687_v20  ;;  %v9656_v58 = vrot.slane %v318_v9, %v1679_v48  ;;  %v9658_v61 = vrot.slane %v318_v9, %v1683_v49  ;;  %v9777_v9 = vand.u32 4294901760, %v9764_v57 }
  0x74   : > { %11967 = vst [vmem:[#allocation3_spill] sm:$0xff] %v9648_v41  ;;  %11970 = vst [vmem:[#allocation6_spill] sm:$0xff] %v9656_v58 }
  0x75   : > { %1030 = vmatmul.mubr.f32.gmra.mrb[2].mxu0 %v9378_v10  ;;  %11971 = vst [vmem:[#allocation7_spill] sm:$0xff] %v9658_v61  ;;  %11978 = vst [vmem:[#allocation14_spill] sm:$0xff] %v9777_v9 }
  0x76   : > { %1035 = vmatprep.mubr.f32.mxu0 %v11851_v3 }
  0x79   : > { %1037 = vmatmul.mubr.f32.gmra.mrb[4].mxu0 %v9380_v11 }
  0x7a   : > { %1042 = vmatprep.mubr.f32.mxu0 %v11851_v3 }
  0x7d   : > { %1044 = vmatmul.mubr.f32.gmra.mrb[6].mxu0 %v9383_v14 }
  0x7e   : > { %7864 = vmatprep.mubr.msk.f32.mxu0 %vm9286_vm3, %v11851_v3 }
  0x8f   : > { %v330_v24 = vpop.permute.xlu0 %329 }
 0x122   : > { %v9646_v25 = vpop.f32.mrb[0].mxu1 }
 0x123   : > { %11966 = vst [vmem:[#allocation2_spill] sm:$0xff] %v9646_v25  ;;  %v1642_v40 = vpop.f32.mrb[1].mxu1 }
 0x124   : > { %v9013_v10 = vadd.f32 %v1642_v40, %v330_v24 }
 0x126   : > { %v1666_v42 = vmax.f32 %v9013_v10, 0.0  ;;  %v9650_v11 = vpop.f32.mrb[2].mxu1 }
 0x127   : > { %11968 = vst [vmem:[#allocation4_spill] sm:$0xff] %v9650_v11  ;;  %v9652_v47 = vpop.f32.mrb[3].mxu1 }
 0x128   : > { %11969 = vst [vmem:[#allocation5_spill] sm:$0xff] %v9652_v47  ;;  %v1694_v14 = vmul.f32 %v9648_v41, %v1666_v42 }
 0x12a   : > { %1702 = vrot.lane.b32.xlu1 %v1694_v14, %s9277_s23 }
 0x144   : > { %v1024_v50 = vpop.f32.mrb[0].mxu0 }
 0x145   : > { %v9004_v52 = vadd.f32 %v1024_v50, %v330_v24  ;;  %v1026_v59 = vpop.f32.mrb[1].mxu0 }
 0x146   : > { %v9005_v60 = vadd.f32 %v1026_v59, %v330_v24  ;;  %v1908_v59 = vsub.f32 %v9764_v57, %v9777_v9 }
 0x147   : > { %v1664_v62 = vmax.f32 %v9004_v52, 0.0 }
 0x148   : > { %v1665_v63 = vmax.f32 %v9005_v60, 0.0  ;;  %v9660_v0 = vpop.f32.mrb[2].mxu0  ;;  %v9819_v22 = vand.u32 4294901760, %v1908_v59 }
 0x149   : > { %11972 = vst [vmem:[#allocation8_spill] sm:$0xff] %v9660_v0  ;;  %v1692_v1 = vmul.f32 %v9656_v58, %v1664_v62  ;;  %v9663_v7 = vpop.f32.mrb[3].mxu0 }
 0x14a   : > { %11973 = vst [vmem:[#allocation9_spill] sm:$0xff] %v9663_v7  ;;  %v1693_v12 = vmul.f32 %v9658_v61, %v1665_v63 }
 0x14b   : > { %1698 = vrot.lane.b32.xlu1 %v1692_v1, %s9277_s23 }
 0x14c   : > { %v9667_v13 = vpop.f32.mrb[4].mxu0  ;;  %1700 = vrot.lane.b32.xlu0 %v1693_v12, %s9277_s23 }
 0x14d   : > { %11974 = vst [vmem:[#allocation10_spill] sm:$0xff] %v9667_v13  ;;  %v9670_v26 = vpop.f32.mrb[5].mxu0 }
 0x14e   : > { %11975 = vst [vmem:[#allocation11_spill] sm:$0xff] %v9670_v26 }
 0x150   : > { %v9672_v23 = vpop.f32.mrb[6].mxu0 }
 0x151   : > { %11976 = vst [vmem:[#allocation12_spill] sm:$0xff] %v9672_v23  ;;  %v9674_v31 = vpop.f32.mrb[7].mxu0 }
 0x152   : > { %11977 = vst [vmem:[#allocation13_spill] sm:$0xff] %v9674_v31 }
 0x19c   : > { %v1703_v39 = vpop.permute.xlu1 %1702 }
 0x1bd   : > { %v1699_v38 = vpop.permute.xlu1 %1698 }
 0x1be   : > { %v9677_v46 = vsel %vm1704_vm1, 0.0, %v1699_v38  ;;  %v1701_v51 = vpop.permute.xlu0 %1700 }
 0x1bf   : > { %1727 = vrot.lane.b32.xlu1 %v9677_v46, %s9278_s24  ;;  %1715 = vrot.lane.b32.xlu0 %v9677_v46, %s9279_s25  ;;  %v9688_v56 = vsel %vm1704_vm1, %v1699_v38, %v1701_v51  ;;  %v1706_v54 = vsel %vm1704_vm1, %v1701_v51, %v1703_v39  ;;  %v1824_v32 = vand.u32 4294901760, %v9677_v46 }
 0x1c0   : > { %v9700_v2 = vsel %vm1711_vm2, %v1706_v54, 0.0  ;;  %v1822_v34 = vand.u32 4294901760, %v9688_v56 }
 0x1c1   : > { %v2496_v33 = vand.u32 4294901760, %v9700_v2  ;;  %v9751_v30 = vsub.f32 %v9677_v46, %v1824_v32 }
 0x1c2   : > { %v9761_v55 = vsub.f32 %v9688_v56, %v1822_v34 }
 0x1c3   : > { %1751 = vrot.lane.b32.xlu1 %v9677_v46, %s9280_s26  ;;  %1739 = vrot.lane.b32.xlu0 %v9677_v46, %s9281_s29  ;;  %v9756_v53 = vsub.f32 %v9700_v2, %v2496_v33  ;;  %v11846_v16 = vand.u32 4294901760, %v9751_v30 }
 0x1c4   : > { %v11847_v19 = vand.u32 4294901760, %v9761_v55 }
 0x1c5   : > { %v11848_v18 = vand.u32 4294901760, %v9756_v53  ;;  %v9784_v14 = vsub.f32 %v9751_v30, %v11846_v16 }
 0x1c6   : > { %v9794_v50 = vsub.f32 %v9761_v55, %v11847_v19 }
 0x1c7   : > { %1763 = vrot.lane.b32.xlu0 %v9677_v46, %s9282_s30  ;;  %1729 = vrot.lane.b32.xlu1 %v9688_v56, %s9278_s24  ;;  %v9789_v49 = vsub.f32 %v9756_v53, %v11848_v18  ;;  %v11991_v9 = vand.u32 4294901760, %v9784_v14 }
 0x1cb   : > { %1741 = vrot.lane.b32.xlu1 %v9688_v56, %s9281_s29  ;;  %1717 = vrot.lane.b32.xlu0 %v9688_v56, %s9279_s25 }
 0x1cf   : > { %1753 = vrot.lane.b32.xlu1 %v9688_v56, %s9280_s26  ;;  %1731 = vrot.lane.b32.xlu0 %v9700_v2, %s9278_s24 }
 0x1d3   : > { %1765 = vrot.lane.b32.xlu1 %v9688_v56, %s9282_s30  ;;  %1743 = vrot.lane.b32.xlu0 %v9700_v2, %s9281_s29 }
 0x1d7   : > { %1719 = vrot.lane.b32.xlu1 %v9700_v2, %s9279_s25  ;;  %1755 = vrot.lane.b32.xlu0 %v9700_v2, %s9280_s26 }
 0x1db   : > { %1777 = vrot.lane.b32.xlu1 %v9688_v56, %s9284_s9  ;;  %1767 = vrot.lane.b32.xlu0 %v9700_v2, %s9282_s30 }
 0x1df   : > { %1789 = vrot.lane.b32.xlu1 %v9688_v56, %s9285_s10  ;;  %1779 = vrot.lane.b32.xlu0 %v9700_v2, %s9284_s9 }
 0x1e3   : > { %1775 = vrot.lane.b32.xlu1 %v9677_v46, %s9284_s9  ;;  %1791 = vrot.lane.b32.xlu0 %v9700_v2, %s9285_s10 }
 0x1e7   : > { %1801 = vrot.lane.b32.xlu1 %v9688_v56, %s9287_s11  ;;  %1787 = vrot.lane.b32.xlu0 %v9677_v46, %s9285_s10 }
 0x1eb   : > { %1799 = vrot.lane.b32.xlu1 %v9677_v46, %s9287_s11  ;;  %1803 = vrot.lane.b32.xlu0 %v9700_v2, %s9287_s11 }
 0x1ef   : > { %334 = vperm.xlu0 %9253, %v324_v8   ;;  %1815 = vperm.xlu1 %9254, %v1812_v17  }
 0x231   : > { %v1728_v21 = vpop.permute.xlu1 %1727  ;;  %v1716_v5 = vpop.permute.xlu0 %1715 }
 0x235   : > { %v1752_v27 = vpop.permute.xlu1 %1751  ;;  %v1740_v28 = vpop.permute.xlu0 %1739 }
 0x239   : > { %v1764_v37 = vpop.permute.xlu0 %1763  ;;  %v1730_v43 = vpop.permute.xlu1 %1729 }
 0x23a   : > { %v1734_v45 = vsel %vm1733_vm5, %v1728_v21, %v1730_v43 }
 0x23b   : > { %v1832_v35 = vand.u32 4294901760, %v1734_v45 }
 0x23d   : > { %v1742_v44 = vpop.permute.xlu1 %1741  ;;  %v1718_v6 = vpop.permute.xlu0 %1717  ;;  %v9773_v20 = vsub.f32 %v1734_v45, %v1832_v35 }
 0x23e   : > { %v1722_v15 = vsel %vm1721_vm6, %v1716_v5, %v1718_v6  ;;  %v1746_v24 = vsel %vm1745_vm7, %v1740_v28, %v1742_v44 }
 0x23f   : > { %v1828_v40 = vand.u32 4294901760, %v1722_v15  ;;  %v1836_v48 = vand.u32 4294901760, %v1746_v24  ;;  %v11845_v52 = vand.u32 4294901760, %v9773_v20 }
 0x241   : > { %v1754_v10 = vpop.permute.xlu1 %1753  ;;  %v9779_v42 = vpop.permute.xlu0 %1731  ;;  %v9799_v60 = vsub.f32 %v1722_v15, %v1828_v40  ;;  %v9807_v38 = vsub.f32 %v1746_v24, %v1836_v48  ;;  %v9815_v8 = vsub.f32 %v9773_v20, %v11845_v52  ;;  %v9825_v17 = vpack.c.bf16 %v1828_v40, %v1824_v32 }
 0x242   : > { %v9802_v1 = vsel %vm1757_vm8, %v1752_v27, %v1754_v10  ;;  %v1735_v12 = vsel %vm1733_vm5, %v1730_v43, %v9779_v42  ;;  %v2502_v39 = vand.u32 4294901760, %v9779_v42  ;;  %v9821_v27 = vpack.c.bf16 %v1836_v48, %v1832_v35 }
 0x243   : > { %v11849_v28 = vand.u32 4294901760, %v9799_v60  ;;  %v1840_v29 = vand.u32 4294901760, %v9802_v1  ;;  %v1830_v15 = vand.u32 4294901760, %v1735_v12  ;;  %v11850_v59 = vand.u32 4294901760, %v9807_v38 }
 0x244   : > { %11979 = vst [vmem:[#allocation15_spill] sm:$0xff] %v9821_v27  ;;  %v9828_v24 = vsub.f32 %v9779_v42, %v2502_v39 }
 0x245   : > { %v1766_v62 = vpop.permute.xlu1 %1765  ;;  %v1744_v63 = vpop.permute.xlu0 %1743  ;;  %v9845_v40 = vsub.f32 %v9802_v1, %v1840_v29  ;;  %v9851_v46 = vsub.f32 %v1735_v12, %v1830_v15  ;;  %v9862_v1 = vsub.f32 %v9807_v38, %v11850_v59 }
 0x246   : > { %v1770_v21 = vsel %vm1769_vm9, %v1764_v37, %v1766_v62  ;;  %v1747_v5 = vsel %vm1745_vm7, %v1742_v44, %v1744_v63  ;;  %v2505_v16 = vand.u32 4294901760, %v1744_v63  ;;  %v11855_v2 = vand.u32 4294901760, %v9828_v24 }
 0x247   : > { %v1844_v35 = vand.u32 4294901760, %v1770_v21  ;;  %v1834_v52 = vand.u32 4294901760, %v1747_v5 }
 0x248   : > { %v9870_v12 = vsub.f32 %v1744_v63, %v2505_v16 }
 0x249   : > { %v1720_v43 = vpop.permute.xlu1 %1719  ;;  %v1756_v45 = vpop.permute.xlu0 %1755  ;;  %v9864_v56 = vsub.f32 %v1770_v21, %v1844_v35  ;;  %v9878_v54 = vsub.f32 %v1747_v5, %v1834_v52 }
 0x24a   : > { %v1723_v37 = vsel %vm1721_vm6, %v1718_v6, %v1720_v43  ;;  %v2499_v44 = vand.u32 4294901760, %v1720_v43  ;;  %v9842_v6 = vsub.f32 %v9799_v60, %v11849_v28  ;;  %v2508_v21 = vand.u32 4294901760, %v1756_v45 }
 0x24b   : > { %v1826_v48 = vand.u32 4294901760, %v1723_v37  ;;  %v11994_v14 = vand.u32 4294901760, %v9870_v12 }
 0x24c   : > { %v9832_v19 = vsub.f32 %v1720_v43, %v2499_v44  ;;  %v9836_v18 = vpack.c.bf16 %v2499_v44, %v2496_v33  ;;  %v1759_v33 = vsel %vm1757_vm8, %v1754_v10, %v1756_v45 }
 0x24d   : > { %v1778_v42 = vpop.permute.xlu1 %1777  ;;  %v1768_v51 = vpop.permute.xlu0 %1767  ;;  %v9849_v43 = vpack.c.bf16 %v1826_v48, %v1822_v34  ;;  %v9857_v28 = vsub.f32 %v1723_v37, %v1826_v48  ;;  %v9868_v34 = vpack.c.bf16 %v1834_v52, %v1830_v15  ;;  %v9874_v48 = vpack.c.bf16 %v2505_v16, %v2502_v39 }
 0x24e   : > { %v1771_v44 = vsel %vm1769_vm9, %v1766_v62, %v1768_v51  ;;  %8502 = vmatpush3.bf16.msra.mxu0 %v9836_v18  ;;  %v2511_v37 = vand.u32 4294901760, %v1768_v51  ;;  %v1838_v15 = vand.u32 4294901760, %v1759_v33  ;;  %v1938_v62 = vand.u32 4294901760, %v9842_v6 }
 0x24f   : > { %8405 = vmatprep.subr.bf16.mxu1 %v9849_v43  ;;  %8503 = vmatprep.subr.bf16.mxu0 %v11853_v4  ;;  %v1842_v10 = vand.u32 4294901760, %v1771_v44  ;;  %11980 = vst [vmem:[#allocation16_spill] sm:$0xff] %v9874_v48  ;;  %v9887_v16 = vsub.f32 %v9828_v24, %v11855_v2  ;;  %v9889_v39 = vpack.c.bf16 %v1844_v35, %v1840_v29  ;;  %v11982_v52 = vmov 0.0|0.0  }
 0x250   : > { %8407 = vmatpush1.bf16.msra.mxu1 %v9825_v17  ;;  %v9899_v23 = vpack.c.bf16 %v2511_v37, %v2508_v21  ;;  %v11985_v29 = vand.u32 4294901760, %v9832_v19  ;;  %v9904_v2 = vsub.f32 %v1756_v45, %v2508_v21  ;;  %v9906_v59 = vsub.f32 %v1768_v51, %v2511_v37 }
 0x251   : > { %v1790_v32 = vpop.permute.xlu1 %1789  ;;  %v1780_v3 = vpop.permute.xlu0 %1779  ;;  %8409 = vmatprep.subr.bf16.mxu1 %v9868_v34  ;;  %11981 = vst [vmem:[#allocation17_spill] sm:$0xff] %v9889_v39  ;;  %v9893_v5 = vpack.c.bf16 %v1842_v10, %v1838_v15  ;;  %v9909_v63 = vsub.f32 %v1771_v44, %v1842_v10  ;;  %v11987_v51 = vand.u32 4294901760, %v9864_v56  ;;  %v11988_v21 = vand.u32 4294901760, %v9851_v46 }
 0x252   : > { %8505 = vmatpush3.bf16.msra.mxu0 %v9874_v48  ;;  %v1783_v4 = vsel %vm1781_vm10, %v1778_v42, %v1780_v3  ;;  %11984 = vst [vmem:[#allocation19_spill] sm:$0xff] %v9899_v23  ;;  %v2590_v35 = vsub.f32 %v9832_v19, %v11985_v29  ;;  %v2514_v26 = vand.u32 4294901760, %v1780_v3  ;;  %v11986_v29 = vand.u32 4294901760, %v9857_v28 }
 0x253   : > { %8506 = vmatprep.subr.bf16.mxu0 %v11982_v52  ;;  %11983 = vst [vmem:[#allocation18_spill] sm:$0xff] %v9893_v5  ;;  %v9920_v37 = vsub.f32 %v9864_v56, %v11987_v51  ;;  %v1846_v44 = vand.u32 4294901760, %v1783_v4  ;;  %v1943_v6 = vsub.f32 %v9851_v46, %v11988_v21  ;;  %v9927_v61 = vsub.f32 %v1759_v33, %v1838_v15 }
 0x254   : > { %8411 = vmatpush1.bf16.msra.mxu1 %v9821_v27  ;;  %v1931_v45 = vsub.f32 %v9857_v28, %v11986_v29  ;;  %v2591_v41 = vand.u32 4294901760, %v2590_v35  ;;  %v11992_v21 = vand.u32 4294901760, %v9878_v54 }
 0x255   : > { %v1776_v31 = vpop.permute.xlu1 %1775  ;;  %v1792_v11 = vpop.permute.xlu0 %1791  ;;  %8413 = vmatprep.subr.bf16.mxu1 %v9893_v5  ;;  %v11993_v5 = vmov 0.0  }
 0x256   : > { %v1795_v13 = vsel %vm1793_vm11, %v1790_v32, %v1792_v11  ;;  %v2517_v47 = vand.u32 4294901760, %v1792_v11  ;;  %8508 = vmatpush3.bf16.msra.mxu0 %v9899_v23  ;;  %v1782_v58 = vsel %vm1781_vm10, %v1776_v31, %v1778_v42  ;;  %v8422_v23 = vpack.c.bf16 %v1938_v62, %v11991_v9 }
 0x257   : > { %8509 = vmatprep.subr.bf16.mxu0 %v11982_v52  ;;  %v1850_v10 = vand.u32 4294901760, %v1795_v13  ;;  %v1955_v31 = vsub.f32 %v9878_v54, %v11992_v21  ;;  %v1932_v15 = vand.u32 4294901760, %v1931_v45  ;;  %v1848_v51 = vand.u32 4294901760, %v1782_v58 }
 0x258   : > { %8415 = vmatpush1.bf16.msra.mxu1 %v9889_v39  ;;  %v9930_v29 = vpack.c.bf16 %v2517_v47, %v2514_v26  ;;  %v1944_v9 = vand.u32 4294901760, %v1943_v6  ;;  %v2604_v62 = vsub.f32 %v9870_v12, %v11994_v14  ;;  %v9949_v21 = vsub.f32 %v1780_v3, %v2514_v26 }
 0x259   : > { %v1802_v7 = vpop.permute.xlu1 %1801  ;;  %v1788_v0 = vpop.permute.xlu0 %1787  ;;  %v9933_v25 = vpack.c.bf16 %v1850_v10, %v1846_v44  ;;  %v9951_v42 = vsub.f32 %v1792_v11, %v2517_v47  ;;  %v11878_v45 = vand.u32 4294901760, %v9927_v61  ;;  %v1956_v48 = vand.u32 4294901760, %v1955_v31 }
 0x25a   : > { %11989 = vst [vmem:[#allocation20_spill] sm:$0xff] %v9930_v29  ;;  %v1794_v33 = vsel %vm1793_vm11, %v1788_v0, %v1790_v32  ;;  %8511 = vmatpush3.bf16.msra.mxu0 %v9930_v29  ;;  %v11995_v0 = vand.u32 4294901760, %v9789_v49  ;;  %v9958_v29 = vsub.f32 %v1783_v4, %v1846_v44  ;;  %v11996_v47 = vand.u32 4294901760, %v9909_v63 }
 0x25b   : > { %11990 = vst [vmem:[#allocation21_spill] sm:$0xff] %v9933_v25  ;;  %v1852_v39 = vand.u32 4294901760, %v1794_v33  ;;  %8417 = vmatprep.subr.bf16.mxu1 %v9933_v25  ;;  %7862 = vmatprep.subr.mxu0 %v11993_v5  ;;  %v9960_v25 = vsub.f32 %v1795_v13, %v1850_v10  ;;  %v2598_v13 = vand.u32 4294901760, %v9887_v16  ;;  %v2605_v4 = vand.u32 4294901760, %v2604_v62 }
 0x25c   : > { %v8513_v32 = vpack.c.bf16 %v2591_v41, %v11995_v0  ;;  %v1979_v41 = vsub.f32 %v9909_v63, %v11996_v47  ;;  %v11997_v49 = vand.u32 4294901760, %v9906_v59  ;;  %v11879_v10 = vand.u32 4294901760, %v9951_v42 }
 0x25d   : > { %v9956_v35 = vpack.c.bf16 %v1852_v39, %v1848_v51  ;;  %v1800_v6 = vpop.permute.xlu1 %1799  ;;  %v1804_v27 = vpop.permute.xlu0 %1803  ;;  %v9969_v26 = vsub.f32 %v1794_v33, %v1852_v39  ;;  %v11998_v31 = vand.u32 4294901760, %v9794_v50  ;;  %v1967_v39 = vsub.f32 %v9927_v61, %v11878_v45 }
 0x25e   : > { %v1806_v14 = vsel %vm1805_vm12, %v1800_v6, %v1802_v7  ;;  %v1807_v3 = vsel %vm1805_vm12, %v1802_v7, %v1804_v27  ;;  %v9964_v11 = vand.u32 4294901760, %v1804_v27  ;;  %v2618_v44 = vsub.f32 %v9906_v59, %v11997_v49 }
 0x25f   : > { %8419 = vmatpush1.bf16.msra.mxu1 %v9956_v35  ;;  %v9977_v7 = vand.u32 4294901760, %v1807_v3  ;;  %v8420_v0 = vpack.c.bf16 %v1932_v15, %v11998_v31  ;;  %v9986_v33 = vsub.f32 %v1782_v58, %v1848_v51  ;;  %v9988_v62 = vand.u32 4294901760, %v1806_v14 }
 0x260   : > { %7863 = vmatpush3.msra.mxu0 %v9964_v11  ;;  %v11999_v6 = vand.u32 4294901760, %v9904_v2  ;;  %v8424_v50 = vpack.c.bf16 %v1956_v48, %v1944_v9  ;;  %v1980_v15 = vand.u32 4294901760, %v1979_v41  ;;  %v1990_v49 = vand.u32 4294901760, %v9958_v29 }
 0x261   : > { %8512 = vmatprep.subr.bf16.mxu0 %v11982_v52  ;;  %7865 = vmatmul.mubr.f32.vlgmr.msra.gmra.mrb[8].mxu0 %v9819_v22  ;;  %v2002_v58 = vand.u32 4294901760, %v9960_v25  ;;  %v11880_v51 = vand.u32 4294901760, %v9969_v26  ;;  %v10000_v31 = vsub.f32 %v1804_v27, %v9964_v11  ;;  %v8516_v45 = vpack.c.bf16 %v2605_v4, %v2598_v13 }
 0x262   : > { %v2611_v47 = vsub.f32 %v9904_v2, %v11999_v6  ;;  %1855 = vmatprep.subr.mxu1 %v9977_v7  ;;  %8514 = vmatpush3.bf16.msra.mxu0 %v8513_v32  ;;  %v2619_v6 = vand.u32 4294901760, %v2618_v44  ;;  %v10005_v16 = vsub.f32 %v1807_v3, %v9977_v7  ;;  %v1968_v48 = vand.u32 4294901760, %v1967_v39 }
 0x263   : > { %1857 = vmatpush1.msra.mxu1 %v9988_v62  ;;  %8515 = vmatprep.subr.bf16.mxu0 %v11982_v52  ;;  %v2632_v9 = vsub.f32 %v9951_v42, %v11879_v10  ;;  %v2003_v27 = vsub.f32 %v9960_v25, %v2002_v58  ;;  %v12000_v32 = vand.u32 4294901760, %v9845_v40  ;;  %v1996_v13 = vand.u32 4294901760, %v9986_v33 }
 0x264   : > { %8421 = vmatprep.subr.bf16.mxu1 %v8420_v0  ;;  %1910 = vmatmul.mubr.f32.vlgmr.msra.gmra.mrb[4].mxu1 %v9819_v22  ;;  %v12001_v3 = vand.u32 4294901760, %v9815_v8  ;;  %v12002_v22 = vand.u32 4294901760, %v9862_v1  ;;  %v2612_v44 = vand.u32 4294901760, %v2611_v47  ;;  %v8428_v0 = vpack.c.bf16 %v1980_v15, %v1968_v48 }
 0x265   : > { %v1973_v41 = vsub.f32 %v9845_v40, %v12000_v32  ;;  %8423 = vmatpush1.bf16.msra.mxu1 %v8422_v23  ;;  %7885 = vmatprep.mubr.msk.f32.mxu0 %vm9286_vm3, %v11993_v5  ;;  %v12003_v39 = vand.u32 4294901760, %v9949_v21  ;;  %v1991_v23 = vsub.f32 %v9958_v29, %v1990_v49  ;;  %v2009_v8 = vsub.f32 %v9969_v26, %v11880_v51 }
 0x266   : > { %v8426_v4 = vpack.c.bf16 %v12002_v22, %v12001_v3  ;;  %8425 = vmatprep.subr.bf16.mxu1 %v8424_v50  ;;  %8517 = vmatpush3.bf16.msra.mxu0 %v8516_v45  ;;  %v10034_v1 = vsub.f32 %v1806_v14, %v9988_v62  ;;  %v8519_v47 = vpack.c.bf16 %v2619_v6, %v2612_v44  ;;  %v1986_v45 = vand.u32 4294901760, %v9920_v37 }
 0x267   : > { %v2625_v10 = vsub.f32 %v9949_v21, %v12003_v39  ;;  %8518 = vmatprep.subr.bf16.mxu0 %v11982_v52  ;;  %2070 = vmatprep.mubr.f32.mxu1 %v11993_v5  ;;  %v2633_v50 = vand.u32 4294901760, %v2632_v9  ;;  %v2004_v15 = vand.u32 4294901760, %v2003_v27  ;;  %v2014_v48 = vand.u32 4294901760, %v10005_v16 }
 0x268   : > { %v2638_v32 = vand.u32 4294901760, %v10000_v31  ;;  %v1997_v3 = vsub.f32 %v9986_v33, %v1996_v13  ;;  %v1974_v14 = vand.u32 4294901760, %v1973_v41  ;;  %v1992_v6 = vand.u32 4294901760, %v1991_v23 }
 0x269   : > { %8427 = vmatpush1.bf16.msra.mxu1 %v8426_v4  ;;  %v2626_v22 = vand.u32 4294901760, %v2625_v10  ;;  %v2010_v44 = vand.u32 4294901760, %v2009_v8  ;;  %v2020_v37 = vand.u32 4294901760, %v10034_v1  ;;  %v2015_v51 = vsub.f32 %v10005_v16, %v2014_v48 }
 0x26a   : > { %8429 = vmatprep.subr.bf16.mxu1 %v8428_v0  ;;  %8520 = vmatpush3.bf16.msra.mxu0 %v8519_v47  ;;  %v8430_v39 = vpack.c.bf16 %v1986_v45, %v1974_v14  ;;  %v8432_v27 = vpack.c.bf16 %v2004_v15, %v1992_v6  ;;  %v2639_v41 = vsub.f32 %v10000_v31, %v2638_v32  ;;  %v1998_v4 = vand.u32 4294901760, %v1997_v3 }
 0x26b   : > { %8521 = vmatprep.subr.bf16.mxu0 %v11982_v52  ;;  %v8522_v9 = vpack.c.bf16 %v2633_v50, %v2626_v22  ;;  %v2021_v10 = vsub.f32 %v10034_v1, %v2020_v37  ;;  %v2016_v23 = vand.u32 4294901760, %v2015_v51  ;;  %v8525_v47 = vpack.c.bf16 %v9832_v19, %v9756_v53 }
 0x26c   : > { %v8434_v0 = vpack.c.bf16 %v2010_v44, %v1998_v4  ;;  %v2640_v8 = vand.u32 4294901760, %v2639_v41  ;;  %v8436_v50 = vpack.c.bf16 %v9857_v28, %v9761_v55  ;;  %v8438_v51 = vpack.c.bf16 %v9799_v60, %v9751_v30  ;;  %v12004_v41 = vld [vmem:[#allocation16_spill] sm:$0xff]  ;;  %v12005_v4 = vld [vmem:[#allocation15_spill] sm:$0xff] }
 0x26d   : > { %8431 = vmatpush1.bf16.msra.mxu1 %v8430_v39  ;;  %v2022_v45 = vand.u32 4294901760, %v2021_v10  ;;  %v8440_v15 = vpack.c.bf16 %v9878_v54, %v9851_v46  ;;  %v8528_v3 = vpack.c.bf16 %v9870_v12, %v9828_v24  ;;  %v8442_v14 = vpack.c.bf16 %v9807_v38, %v9773_v20  ;;  %v12006_v10 = vld [vmem:[#allocation18_spill] sm:$0xff] }
 0x26e   : > { %8523 = vmatpush3.bf16.msra.mxu0 %v8522_v9  ;;  %8433 = vmatprep.subr.bf16.mxu1 %v8432_v27  ;;  %v8444_v22 = vpack.c.bf16 %v9909_v63, %v9927_v61  ;;  %v8531_v6 = vpack.c.bf16 %v9906_v59, %v9904_v2  ;;  %v8446_v44 = vpack.c.bf16 %v9864_v56, %v9845_v40 }
 0x26f   : > { %7883 = vmatprep.subr.mxu0 %v11993_v5  ;;  %v8448_v39 = vpack.c.bf16 %v9960_v25, %v9958_v29  ;;  %v8534_v9 = vpack.c.bf16 %v9951_v42, %v9949_v21  ;;  %v8450_v27 = vpack.c.bf16 %v9969_v26, %v9986_v33  ;;  %v335_v25 = vpop.permute.xlu0 %334 }
 0x271   : > { %8435 = vmatpush1.bf16.msra.mxu1 %v8434_v0  ;;  %v12007_v0 = vld [vmem:[#allocation19_spill] sm:$0xff] }
 0x272   : > { %2017 = vmatprep.subr.mxu1 %v2016_v23  ;;  %7884 = vmatpush3.msra.mxu0 %v2640_v8  ;;  %v12008_v23 = vld [vmem:[#allocation17_spill] sm:$0xff]  ;;  %v12010_v8 = vld [vmem:[#allocation20_spill] sm:$0xff] }
 0x273   : > { %8524 = vmatprep.subr.bf16.mxu0 %v11982_v52  ;;  %7886 = vmatmul.mubr.f32.vlgmr.msra.gmra.mrb[8].mxu0 %v9747_v36 }
 0x274   : > { %8526 = vmatpush3.bf16.msra.mxu0 %v8525_v47  ;;  %7906 = vmatprep.mubr.msk.f32.mxu0 %vm9286_vm3, %v11993_v5  ;;  %v12011_v47 = vand.u32 4294901760, %v9756_v53  ;;  %v12016_v53 = vand.u32 4294901760, %v9751_v30  ;;  %v12022_v30 = vand.u32 4294901760, %v9773_v20  ;;  %v12028_v20 = vand.u32 4294901760, %v9845_v40 }
 0x275   : > { %2023 = vmatpush1.msra.mxu1 %v2022_v45  ;;  %8527 = vmatprep.subr.bf16.mxu0 %v11982_v52  ;;  %v12012_v45 = vand.u32 4294901760, %v9832_v19  ;;  %v12017_v19 = vand.u32 4294901760, %v9799_v60  ;;  %v12023_v60 = vand.u32 4294901760, %v9807_v38  ;;  %v12029_v38 = vand.u32 4294901760, %v9864_v56 }
 0x276   : > { %8437 = vmatprep.subr.bf16.mxu1 %v8436_v50  ;;  %2072 = vmatmul.mubr.f32.vlgmr.msra.gmra.mrb[4].mxu1 %v9747_v36  ;;  %v12032_v40 = vand.u32 4294901760, %v9969_v26 }
 0x277   : > { %8439 = vmatpush1.bf16.msra.mxu1 %v8438_v51  ;;  %2178 = vmatprep.mubr.f32.mxu1 %v11993_v5  ;;  %v8549_v50 = vpack.c.bf16 %v12012_v45, %v12011_v47  ;;  %v12013_v51 = vld [vmem:[#allocation14_spill] sm:$0xff]  ;;  %v12027_v47 = vand.u32 4294901760, %v9906_v59  ;;  %v12031_v59 = vand.u32 4294901760, %v9951_v42 }
 0x278   : > { %8441 = vmatprep.subr.bf16.mxu1 %v8440_v15  ;;  %8529 = vmatpush3.bf16.msra.mxu0 %v8528_v3  ;;  %v12014_v15 = vand.u32 4294901760, %v9761_v55  ;;  %v12015_v3 = vand.u32 4294901760, %v9857_v28  ;;  %v12018_v55 = vand.u32 4294901760, %v9851_v46  ;;  %v12019_v28 = vand.u32 4294901760, %v9878_v54 }
 0x279   : > { %8530 = vmatprep.subr.bf16.mxu0 %v11982_v52  ;;  %v12024_v46 = vand.u32 4294901760, %v9927_v61  ;;  %v12025_v54 = vand.u32 4294901760, %v9909_v63  ;;  %v8480_v61 = vpack.c.bf16 %v2002_v58, %v1990_v49  ;;  %v8482_v56 = vpack.c.bf16 %v12032_v40, %v1996_v13 }
 0x27b   : > { %8443 = vmatpush1.bf16.msra.mxu1 %v8442_v14  ;;  %v8468_v14 = vpack.c.bf16 %v12015_v3, %v12014_v15 }
 0x27c   : > { %8445 = vmatprep.subr.bf16.mxu1 %v8444_v22  ;;  %8532 = vmatpush3.bf16.msra.mxu0 %v8531_v6  ;;  %v8470_v22 = vpack.c.bf16 %v12017_v19, %v12016_v53  ;;  %v8472_v6 = vpack.c.bf16 %v12019_v28, %v12018_v55  ;;  %v325_v55 = vld [vmem:[%s11839_s3 + $0x10] sm:$0xff] }
 0x27d   : > { %8533 = vmatprep.subr.bf16.mxu0 %v11982_v52 }
 0x27f   : > { %8447 = vmatpush1.bf16.msra.mxu1 %v8446_v44  ;;  %v12020_v44 = vand.u32 4294901760, %v9828_v24  ;;  %v8476_v24 = vpack.c.bf16 %v12025_v54, %v12024_v46 }
 0x280   : > { %8449 = vmatprep.subr.bf16.mxu1 %v8448_v39  ;;  %8535 = vmatpush3.bf16.msra.mxu0 %v8534_v9  ;;  %v12021_v39 = vand.u32 4294901760, %v9870_v12  ;;  %v12026_v12 = vand.u32 4294901760, %v9904_v2  ;;  %v12030_v2 = vand.u32 4294901760, %v9949_v21 }
 0x281   : > { %7904 = vmatprep.subr.mxu0 %v11993_v5 }
 0x282   : > { %v8552_v9 = vpack.c.bf16 %v12021_v39, %v12020_v44  ;;  %v8555_v45 = vpack.c.bf16 %v12027_v47, %v12026_v12  ;;  %v8558_v63 = vpack.c.bf16 %v12031_v59, %v12030_v2  ;;  %v7479_v44 = vld [vmem:[%s11840_s4 + $0x8] sm:$0xff] }
 0x283   : > { %8451 = vmatpush1.bf16.msra.mxu1 %v8450_v27  ;;  %v8474_v27 = vpack.c.bf16 %v12023_v60, %v12022_v30  ;;  %v3170_v30 = vsel %vm1818_vm4, %v7479_v44, 0 }
 0x284   : > { %2128 = vmatprep.subr.mxu1 %v10005_v16  ;;  %7905 = vmatpush3.msra.mxu0 %v10000_v31  ;;  %v10302_v54 = vand.u32 4294901760, %v3170_v30 }
 0x285   : > { %8536 = vmatprep.subr.bf16.mxu0 %v11982_v52  ;;  %7907 = vmatmul.mubr.f32.vlgmr.msra.gmra.mrb[8].mxu0 %v9764_v57 }
 0x286   : > { %8538 = vmatpush3.bf16.msra.mxu0 %v9836_v18  ;;  %7927 = vmatprep.mubr.msk.f32.mxu0 %vm9286_vm3, %v11993_v5 }
 0x287   : > { %2131 = vmatpush1.msra.mxu1 %v10034_v1  ;;  %8539 = vmatprep.subr.bf16.mxu0 %v11982_v52 }
 0x288   : > { %8453 = vmatprep.subr.bf16.mxu1 %v9849_v43  ;;  %2181 = vmatmul.mubr.f32.vlgmr.msra.gmra.mrb[4].mxu1 %v9764_v57  ;;  %v12009_v57 = vld [vmem:[#allocation21_spill] sm:$0xff] }
 0x289   : > { %8455 = vmatpush1.bf16.msra.mxu1 %v9825_v17  ;;  %2269 = vmatprep.mubr.f32.mxu1 %v11993_v5 }
 0x28a   : > { %8457 = vmatprep.subr.bf16.mxu1 %v9868_v34  ;;  %8541 = vmatpush3.bf16.msra.mxu0 %v12004_v41 }
 0x28b   : > { %8542 = vmatprep.subr.bf16.mxu0 %v11982_v52 }
 0x28d   : > { %8459 = vmatpush1.bf16.msra.mxu1 %v12005_v4 }
 0x28e   : > { %8461 = vmatprep.subr.bf16.mxu1 %v12006_v10  ;;  %8544 = vmatpush3.bf16.msra.mxu0 %v12007_v0 }
 0x28f   : > { %8545 = vmatprep.subr.bf16.mxu0 %v11982_v52 }
 0x291   : > { %8463 = vmatpush1.bf16.msra.mxu1 %v12008_v23 }
 0x292   : > { %8465 = vmatprep.subr.bf16.mxu1 %v12009_v57  ;;  %8547 = vmatpush3.bf16.msra.mxu0 %v12010_v8 }
 0x293   : > { %7925 = vmatprep.subr.mxu0 %v11993_v5 }
 0x295   : > { %8467 = vmatpush1.bf16.msra.mxu1 %v9956_v35 }
 0x296   : > { %2220 = vmatprep.subr.mxu1 %v9977_v7  ;;  %7926 = vmatpush3.msra.mxu0 %v9964_v11 }
 0x297   : > { %8548 = vmatprep.subr.bf16.mxu0 %v11982_v52  ;;  %7928 = vmatmul.mubr.f32.vlgmr.msra.gmra.mrb[8].mxu0 %v12013_v51 }
 0x298   : > { %8550 = vmatpush3.bf16.msra.mxu0 %v8549_v50  ;;  %7948 = vmatprep.mubr.msk.f32.mxu0 %vm9286_vm3, %v11993_v5  ;;  %v8478_v50 = vpack.c.bf16 %v12029_v38, %v12028_v20 }
 0x299   : > { %2222 = vmatpush1.msra.mxu1 %v9988_v62  ;;  %8551 = vmatprep.subr.bf16.mxu0 %v11982_v52 }
 0x29a   : > { %8469 = vmatprep.subr.bf16.mxu1 %v8468_v14  ;;  %2273 = vmatmul.mubr.f32.vlgmr.msra.gmra.mrb[4].mxu1 %v12013_v51 }
 0x29b   : > { %8471 = vmatpush1.bf16.msra.mxu1 %v8470_v22  ;;  %2397 = vmatprep.mubr.f32.mxu1 %v11993_v5  ;;  %v7480_v22 = vld [vmem:[%s11841_s5 + $0x8] sm:$0xff] }
 0x29c   : > { %8473 = vmatprep.subr.bf16.mxu1 %v8472_v6  ;;  %8553 = vmatpush3.bf16.msra.mxu0 %v8552_v9 }
 0x29d   : > { %8554 = vmatprep.subr.bf16.mxu0 %v11982_v52 }
 0x29f   : > { %8475 = vmatpush1.bf16.msra.mxu1 %v8474_v27 }
 0x2a0   : > { %8477 = vmatprep.subr.bf16.mxu1 %v8476_v24  ;;  %8556 = vmatpush3.bf16.msra.mxu0 %v8555_v45 }
 0x2a1   : > { %8557 = vmatprep.subr.bf16.mxu0 %v11982_v52 }
 0x2a3   : > { %8479 = vmatpush1.bf16.msra.mxu1 %v8478_v50 }
 0x2a4   : > { %8481 = vmatprep.subr.bf16.mxu1 %v8480_v61  ;;  %8559 = vmatpush3.bf16.msra.mxu0 %v8558_v63  ;;  %v10317_v61 = vsub.f32 %v3170_v30, %v10302_v54 }
 0x2a5   : > { %7946 = vmatprep.subr.mxu0 %v11993_v5 }
 0x2a7   : > { %8483 = vmatpush1.bf16.msra.mxu1 %v8482_v56 }
 0x2a8   : > { %2346 = vmatprep.subr.mxu1 %v2014_v48  ;;  %7947 = vmatpush3.msra.mxu0 %v2638_v32  ;;  %v12039_v32 = vld [vmem:[#allocation3_spill] sm:$0xff] }
 0x2a9   : > { %8560 = vmatprep.subr.bf16.mxu0 %v11982_v52  ;;  %7949 = vmatmul.mubr.f32.vlgmr.msra.gmra.mrb[8].mxu0 %v9747_v36 }
 0x2aa   : > { %8562 = vmatpush3.bf16.msra.mxu0 %v9836_v18  ;;  %7969 = vmatprep.mubr.msk.f32.mxu0 %vm9286_vm3, %v11993_v5  ;;  %v1816_v18 = vpop.permute.xlu1 %1815 }
 0x2ab   : > { %2350 = vmatpush1.msra.mxu1 %v2020_v37  ;;  %8563 = vmatprep.subr.bf16.mxu0 %v11982_v52 }
 0x2ac   : > { %8485 = vmatprep.subr.bf16.mxu1 %v9849_v43  ;;  %2399 = vmatmul.mubr.f32.vlgmr.msra.gmra.mrb[4].mxu1 %v9747_v36 }
 0x2ad   : > { %8487 = vmatpush1.bf16.msra.mxu1 %v9825_v17  ;;  %2487 = vmatprep.mubr.f32.mxu1 %v11993_v5  ;;  %v12033_v17 = vld [vmem:[#allocation2_spill] sm:$0xff] }
 0x2ae   : > { %8489 = vmatprep.subr.bf16.mxu1 %v9868_v34  ;;  %8565 = vmatpush3.bf16.msra.mxu0 %v12004_v41  ;;  %v9012_v43 = vadd.f32 %v12033_v17, %v335_v25 }
 0x2af   : > { %8566 = vmatprep.subr.bf16.mxu0 %v11982_v52 }
 0x2b1   : > { %8491 = vmatpush1.bf16.msra.mxu1 %v12005_v4 }
 0x2b2   : > { %8493 = vmatprep.subr.bf16.mxu1 %v12006_v10  ;;  %8568 = vmatpush3.bf16.msra.mxu0 %v12007_v0  ;;  %v12040_v10 = vld [vmem:[#allocation7_spill] sm:$0xff] }
 0x2b3   : > { %8569 = vmatprep.subr.bf16.mxu0 %v11982_v52 }
 0x2b5   : > { %8495 = vmatpush1.bf16.msra.mxu1 %v12008_v23  ;;  %v12041_v23 = vld [vmem:[#allocation6_spill] sm:$0xff] }
 0x2b6   : > { %8497 = vmatprep.subr.bf16.mxu1 %v12009_v57  ;;  %8571 = vmatpush3.bf16.msra.mxu0 %v12010_v8 }
 0x2b7   : > { %7967 = vmatprep.subr.mxu0 %v11993_v5 }
 0x2b9   : > { %8499 = vmatpush1.bf16.msra.mxu1 %v9956_v35  ;;  %v12034_v35 = vld [vmem:[#allocation8_spill] sm:$0xff] }
 0x2ba   : > { %2438 = vmatprep.subr.mxu1 %v9977_v7  ;;  %7968 = vmatpush3.msra.mxu0 %v9964_v11  ;;  %v9006_v21 = vadd.f32 %v12034_v35, %v335_v25  ;;  %v12035_v11 = vld [vmem:[#allocation9_spill] sm:$0xff]  ;;  %v1669_v7 = vmax.f32 %v9012_v43, 0.0  ;;  %v10327_v43 = vand.u32 4294901760, %v10317_v61 }
 0x2bb   : > { %7970 = vmatmul.mubr.f32.vlgmr.msra.gmra.mrb[8].mxu0 %v9747_v36  ;;  %8668 = vmatprep.subr.bf16.mxu0 %v11982_v52  ;;  %v9007_v26 = vadd.f32 %v12035_v11, %v335_v25 }
 0x2bc   : > { %7990 = vmatprep.mubr.msk.f32.mxu0 %vm9286_vm3, %v11993_v5  ;;  %v1667_v31 = vmax.f32 %v9006_v21, 0.0  ;;  %12042 = vst [vmem:[#allocation19_spill] sm:$0xff] %v10327_v43 }
 0x2bd   : > { %2440 = vmatpush1.msra.mxu1 %v9988_v62  ;;  %v1668_v1 = vmax.f32 %v9007_v26, 0.0 }
 0x2be   : > { %2489 = vmatmul.mubr.f32.vlgmr.msra.gmra.mrb[4].mxu1 %v9747_v36 }
 0x2bf   : > { %3254 = vmatprep.mubr.f32.mxu1 %v11993_v5 }
 0x38e   : > { %v3041_v34 = vpop.f32.mrb[8].mxu0 }
 0x38f   : > { %v9018_v29 = vadd.f32 %v3041_v34, %v1816_v18  ;;  %v7971_v42 = vpop.f32.mrb[9].mxu0 }
 0x391   : > { %v10216_v16 = vmax.f32 %v9018_v29, 0.0  ;;  %v2490_v33 = vpop.f32.mrb[4].mxu1 }
 0x392   : > { %v9016_v62 = vadd.f32 %v2490_v33, %v1816_v18  ;;  %v2492_v49 = vpop.f32.mrb[5].mxu1  ;;  %v3258_v33 = vsub.f32 %v10317_v61, %v10327_v43 }
 0x393   : > { %12036 = vst [vmem:[#allocation16_spill] sm:$0xff] %v10216_v16  ;;  %v3050_v36 = vadd.f32 %v10216_v16, %v1669_v7  ;;  %v9017_v58 = vadd.f32 %v2492_v49, %v1816_v18 }
 0x394   : > { %v10219_v13 = vmax.f32 %v9016_v62, 0.0 }
 0x395   : > { %v10221_v48 = vmax.f32 %v9017_v58, 0.0  ;;  %v3053_v37 = vmul.f32 %v3050_v36, %v12039_v32 }
 0x396   : > { %12037 = vst [vmem:[#allocation15_spill] sm:$0xff] %v10219_v13  ;;  %v3048_v41 = vadd.f32 %v10219_v13, %v1667_v31 }
 0x397   : > { %12038 = vst [vmem:[#allocation18_spill] sm:$0xff] %v10221_v48  ;;  %v3049_v4 = vadd.f32 %v10221_v48, %v1668_v1  ;;  %3061 = vrot.lane.b32.xlu1 %v3053_v37, %s9277_s23 }
 0x398   : > { %v3051_v57 = vmul.f32 %v3048_v41, %v12041_v23 }
 0x399   : > { %v3052_v0 = vmul.f32 %v3049_v4, %v12040_v10 }
 0x39b   : > { %3059 = vrot.lane.b32.xlu0 %v3052_v0, %s9277_s23 }
 0x39f   : > { %3057 = vrot.lane.b32.xlu0 %v3051_v57, %s9277_s23 }
 0x409   : > { %v3062_v14 = vpop.permute.xlu1 %3061 }
 0x40d   : > { %v3060_v8 = vpop.permute.xlu0 %3059 }
 0x40e   : > { %v3064_v53 = vsel %vm1704_vm1, %v3060_v8, %v3062_v14 }
 0x40f   : > { %v10255_v19 = vsel %vm1711_vm2, %v3064_v53, 0.0 }
 0x410   : > { %v3846_v27 = vand.u32 4294901760, %v10255_v19 }
 0x411   : > { %v3058_v51 = vpop.permute.xlu0 %3057 }
 0x412   : > { %v10232_v15 = vsel %vm1704_vm1, 0.0, %v3058_v51  ;;  %v10243_v3 = vsel %vm1704_vm1, %v3058_v51, %v3060_v8  ;;  %v10309_v20 = vsub.f32 %v10255_v19, %v3846_v27 }
 0x413   : > { %3083 = vrot.lane.b32.xlu0 %v10232_v15, %s9278_s24  ;;  %3072 = vrot.lane.b32.xlu1 %v10232_v15, %s9279_s25  ;;  %v3174_v60 = vand.u32 4294901760, %v10232_v15  ;;  %v3172_v46 = vand.u32 4294901760, %v10243_v3 }
 0x414   : > { %v11886_v40 = vand.u32 4294901760, %v10309_v20 }
 0x415   : > { %v10306_v45 = vsub.f32 %v10232_v15, %v3174_v60  ;;  %v10314_v38 = vsub.f32 %v10243_v3, %v3172_v46 }
 0x416   : > { %v10332_v21 = vsub.f32 %v10309_v20, %v11886_v40 }
 0x417   : > { %3105 = vrot.lane.b32.xlu0 %v10232_v15, %s9280_s26  ;;  %3094 = vrot.lane.b32.xlu1 %v10232_v15, %s9281_s29  ;;  %v11885_v56 = vand.u32 4294901760, %v10314_v38  ;;  %v11884_v25 = vand.u32 4294901760, %v10306_v45 }
 0x419   : > { %v10337_v11 = vsub.f32 %v10314_v38, %v11885_v56  ;;  %v10342_v26 = vsub.f32 %v10306_v45, %v11884_v25 }
 0x41b   : > { %3116 = vrot.lane.b32.xlu1 %v10232_v15, %s9282_s30  ;;  %3085 = vrot.lane.b32.xlu0 %v10243_v3, %s9278_s24 }
 0x41f   : > { %3096 = vrot.lane.b32.xlu0 %v10243_v3, %s9281_s29  ;;  %3074 = vrot.lane.b32.xlu1 %v10243_v3, %s9279_s25 }
 0x423   : > { %3107 = vrot.lane.b32.xlu0 %v10243_v3, %s9280_s26  ;;  %3087 = vrot.lane.b32.xlu1 %v10255_v19, %s9278_s24 }
 0x427   : > { %3118 = vrot.lane.b32.xlu0 %v10243_v3, %s9282_s30  ;;  %3098 = vrot.lane.b32.xlu1 %v10255_v19, %s9281_s29 }
 0x42b   : > { %3076 = vrot.lane.b32.xlu0 %v10255_v19, %s9279_s25  ;;  %3109 = vrot.lane.b32.xlu1 %v10255_v19, %s9280_s26 }
 0x42f   : > { %3129 = vrot.lane.b32.xlu0 %v10243_v3, %s9284_s9  ;;  %3120 = vrot.lane.b32.xlu1 %v10255_v19, %s9282_s30 }
 0x433   : > { %3140 = vrot.lane.b32.xlu0 %v10243_v3, %s9285_s10  ;;  %3131 = vrot.lane.b32.xlu1 %v10255_v19, %s9284_s9 }
 0x437   : > { %3127 = vrot.lane.b32.xlu0 %v10232_v15, %s9284_s9  ;;  %3142 = vrot.lane.b32.xlu1 %v10255_v19, %s9285_s10 }
 0x43b   : > { %3151 = vrot.lane.b32.xlu0 %v10243_v3, %s9287_s11  ;;  %3138 = vrot.lane.b32.xlu1 %v10232_v15, %s9285_s10 }
 0x43f   : > { %3149 = vrot.lane.b32.xlu0 %v10232_v15, %s9287_s11  ;;  %3153 = vrot.lane.b32.xlu1 %v10255_v19, %s9287_s11  ;;  %v10365_v15 = vand.u32 4294901760, %v3258_v33 }
 0x443   : > { %3166 = vperm.xlu0 %9253, %v7480_v22   ;;  %339 = vperm.xlu1 %9254, %v325_v55  }
 0x485   : > { %v3084_v28 = vpop.permute.xlu0 %3083  ;;  %v3073_v6 = vpop.permute.xlu1 %3072 }
 0x489   : > { %v3106_v39 = vpop.permute.xlu0 %3105  ;;  %v3095_v9 = vpop.permute.xlu1 %3094 }
 0x48d   : > { %v3117_v24 = vpop.permute.xlu1 %3116  ;;  %v3086_v12 = vpop.permute.xlu0 %3085 }
 0x48e   : > { %v3089_v47 = vsel %vm1733_vm5, %v3084_v28, %v3086_v12 }
 0x48f   : > { %v3182_v50 = vand.u32 4294901760, %v3089_v47 }
 0x491   : > { %v3097_v2 = vpop.permute.xlu0 %3096  ;;  %v3075_v59 = vpop.permute.xlu1 %3074  ;;  %v10323_v18 = vsub.f32 %v3089_v47, %v3182_v50 }
 0x492   : > { %v3078_v63 = vsel %vm1721_vm6, %v3073_v6, %v3075_v59  ;;  %v3100_v17 = vsel %vm1745_vm7, %v3095_v9, %v3097_v2 }
 0x493   : > { %v3178_v34 = vand.u32 4294901760, %v3078_v63  ;;  %v3186_v35 = vand.u32 4294901760, %v3100_v17  ;;  %v11881_v7 = vand.u32 4294901760, %v10323_v18 }
 0x495   : > { %v3108_v29 = vpop.permute.xlu0 %3107  ;;  %v3088_v42 = vpop.permute.xlu1 %3087  ;;  %v10347_v62 = vsub.f32 %v3078_v63, %v3178_v34  ;;  %v10353_v37 = vsub.f32 %v3100_v17, %v3186_v35  ;;  %v10361_v57 = vsub.f32 %v10323_v18, %v11881_v7  ;;  %v10367_v14 = vpack.c.bf16 %v3186_v35, %v3182_v50 }
 0x496   : > { %v10350_v58 = vsel %vm1757_vm8, %v3106_v39, %v3108_v29  ;;  %v3090_v31 = vsel %vm1733_vm5, %v3086_v12, %v3088_v42  ;;  %v3852_v1 = vand.u32 4294901760, %v3088_v42  ;;  %v10371_v6 = vpack.c.bf16 %v3178_v34, %v3174_v60 }
 0x497   : > { %12043 = vst [vmem:[#allocation17_spill] sm:$0xff] %v10367_v14  ;;  %v11883_v53 = vand.u32 4294901760, %v10347_v62  ;;  %v3190_v19 = vand.u32 4294901760, %v10350_v58  ;;  %v3180_v28 = vand.u32 4294901760, %v3090_v31  ;;  %v11882_v30 = vand.u32 4294901760, %v10353_v37 }
 0x498   : > { %v10373_v44 = vsub.f32 %v3088_v42, %v3852_v1 }
 0x499   : > { %v3119_v49 = vpop.permute.xlu0 %3118  ;;  %v3099_v36 = vpop.permute.xlu1 %3098  ;;  %v10385_v60 = vsub.f32 %v10347_v62, %v11883_v53  ;;  %v10394_v33 = vsub.f32 %v3090_v31, %v3180_v28 }
 0x49a   : > { %v3122_v8 = vsel %vm1769_vm9, %v3117_v24, %v3119_v49  ;;  %v3101_v51 = vsel %vm1745_vm7, %v3097_v2, %v3099_v36  ;;  %v3855_v50 = vand.u32 4294901760, %v3099_v36 }
 0x49b   : > { %v3194_v24 = vand.u32 4294901760, %v3122_v8  ;;  %v3184_v47 = vand.u32 4294901760, %v3101_v51  ;;  %v3288_v40 = vand.u32 4294901760, %v10385_v60 }
 0x49c   : > { %v10413_v31 = vsub.f32 %v3099_v36, %v3855_v50 }
 0x49d   : > { %v3077_v22 = vpop.permute.xlu0 %3076  ;;  %v3110_v55 = vpop.permute.xlu1 %3109  ;;  %v10407_v3 = vsub.f32 %v3122_v8, %v3194_v24  ;;  %v10421_v56 = vsub.f32 %v3101_v51, %v3184_v47 }
 0x49e   : > { %v3079_v39 = vsel %vm1721_vm6, %v3075_v59, %v3077_v22  ;;  %v3849_v9 = vand.u32 4294901760, %v3077_v22  ;;  %v10388_v59 = vsub.f32 %v10350_v58, %v3190_v19  ;;  %v10405_v58 = vsub.f32 %v10353_v37, %v11882_v30 }
 0x49f   : > { %v3176_v12 = vand.u32 4294901760, %v3079_v39  ;;  %v3858_v8 = vand.u32 4294901760, %v3110_v55 }
 0x4a0   : > { %v10377_v2 = vsub.f32 %v3077_v22, %v3849_v9  ;;  %v10379_v63 = vpack.c.bf16 %v3849_v9, %v3846_v27  ;;  %v11887_v27 = vand.u32 4294901760, %v10373_v44  ;;  %v3112_v22 = vsel %vm1757_vm8, %v3108_v29, %v3110_v55 }
 0x4a1   : > { %v3130_v34 = vpop.permute.xlu0 %3129  ;;  %v3121_v42 = vpop.permute.xlu1 %3120  ;;  %v10392_v35 = vpack.c.bf16 %v3176_v12, %v3172_v46  ;;  %v10400_v7 = vsub.f32 %v3079_v39, %v3176_v12  ;;  %v10411_v46 = vpack.c.bf16 %v3184_v47, %v3180_v28  ;;  %v10417_v12 = vpack.c.bf16 %v3855_v50, %v3852_v1 }
 0x4a2   : > { %v3123_v9 = vsel %vm1769_vm9, %v3119_v49, %v3121_v42  ;;  %8670 = vmatpush3.bf16.msra.mxu0 %v10379_v63  ;;  %v11888_v49 = vand.u32 4294901760, %v10377_v2  ;;  %v3861_v39 = vand.u32 4294901760, %v3121_v42  ;;  %v3188_v28 = vand.u32 4294901760, %v3112_v22 }
 0x4a3   : > { %8573 = vmatprep.subr.bf16.mxu1 %v10392_v35  ;;  %8671 = vmatprep.subr.bf16.mxu0 %v11982_v52  ;;  %v3192_v29 = vand.u32 4294901760, %v3123_v9  ;;  %12044 = vst [vmem:[#allocation21_spill] sm:$0xff] %v10417_v12  ;;  %v10430_v1 = vsub.f32 %v10373_v44, %v11887_v27  ;;  %v10432_v50 = vpack.c.bf16 %v3194_v24, %v3190_v19 }
 0x4a4   : > { %8575 = vmatpush1.bf16.msra.mxu1 %v10371_v6  ;;  %v10442_v41 = vpack.c.bf16 %v3861_v39, %v3858_v8  ;;  %v3940_v19 = vsub.f32 %v10377_v2, %v11888_v49  ;;  %v10447_v24 = vsub.f32 %v3110_v55, %v3858_v8  ;;  %v10449_v27 = vsub.f32 %v3121_v42, %v3861_v39 }
 0x4a5   : > { %v3141_v53 = vpop.permute.xlu0 %3140  ;;  %v3132_v25 = vpop.permute.xlu1 %3131  ;;  %8577 = vmatprep.subr.bf16.mxu1 %v10411_v46  ;;  %12045 = vst [vmem:[#allocation20_spill] sm:$0xff] %v10432_v50  ;;  %v10436_v51 = vpack.c.bf16 %v3192_v29, %v3188_v28  ;;  %v10452_v47 = vsub.f32 %v3123_v9, %v3192_v29  ;;  %v12048_v49 = vand.u32 4294901760, %v10400_v7  ;;  %v12049_v42 = vand.u32 4294901760, %v10407_v3 }
 0x4a6   : > { %8673 = vmatpush3.bf16.msra.mxu0 %v10417_v12  ;;  %v3134_v60 = vsel %vm1781_vm10, %v3130_v34, %v3132_v25  ;;  %12047 = vst [vmem:[#allocation2_spill] sm:$0xff] %v10442_v41  ;;  %v3864_v30 = vand.u32 4294901760, %v3132_v25  ;;  %v12050_v8 = vand.u32 4294901760, %v10394_v33  ;;  %v10470_v32 = vsub.f32 %v3112_v22, %v3188_v28 }
 0x4a7   : > { %8674 = vmatprep.subr.bf16.mxu0 %v11982_v52  ;;  %12046 = vst [vmem:[#allocation14_spill] sm:$0xff] %v10436_v51  ;;  %v3281_v55 = vsub.f32 %v10400_v7, %v12048_v49  ;;  %v10463_v39 = vsub.f32 %v10407_v3, %v12049_v42  ;;  %v3196_v9 = vand.u32 4294901760, %v3134_v60  ;;  %v3941_v48 = vand.u32 4294901760, %v3940_v19 }
 0x4a8   : > { %8579 = vmatpush1.bf16.msra.mxu1 %v10367_v14  ;;  %v3293_v4 = vsub.f32 %v10394_v33, %v12050_v8  ;;  %v12054_v8 = vand.u32 4294901760, %v10421_v56 }
 0x4a9   : > { %v3128_v0 = vpop.permute.xlu0 %3127  ;;  %v3143_v17 = vpop.permute.xlu1 %3142  ;;  %8581 = vmatprep.subr.bf16.mxu1 %v10436_v51  ;;  %v3282_v28 = vand.u32 4294901760, %v3281_v55  ;;  %v11911_v55 = vand.u32 4294901760, %v10470_v32 }
 0x4aa   : > { %v3145_v36 = vsel %vm1793_vm11, %v3141_v53, %v3143_v17  ;;  %v3867_v23 = vand.u32 4294901760, %v3143_v17  ;;  %8676 = vmatpush3.bf16.msra.mxu0 %v10442_v41  ;;  %v3133_v10 = vsel %vm1781_vm10, %v3128_v0, %v3130_v34  ;;  %v12053_v41 = vand.u32 4294901760, %v10342_v26 }
 0x4ab   : > { %8677 = vmatprep.subr.bf16.mxu0 %v11982_v52  ;;  %v3200_v29 = vand.u32 4294901760, %v3145_v36  ;;  %v3305_v0 = vsub.f32 %v10421_v56, %v12054_v8  ;;  %v3198_v42 = vand.u32 4294901760, %v3133_v10  ;;  %v12055_v26 = vand.u32 4294901760, %v10413_v31 }
 0x4ac   : > { %8583 = vmatpush1.bf16.msra.mxu1 %v10432_v50  ;;  %v10473_v49 = vpack.c.bf16 %v3867_v23, %v3864_v30  ;;  %v8590_v51 = vpack.c.bf16 %v3288_v40, %v12053_v41  ;;  %v3294_v40 = vand.u32 4294901760, %v3293_v4  ;;  %v10492_v8 = vsub.f32 %v3132_v25, %v3864_v30 }
 0x4ad   : > { %v3152_v13 = vpop.permute.xlu0 %3151  ;;  %v3139_v16 = vpop.permute.xlu1 %3138  ;;  %v10476_v43 = vpack.c.bf16 %v3200_v29, %v3196_v9  ;;  %v3954_v41 = vsub.f32 %v10413_v31, %v12055_v26  ;;  %v10494_v34 = vsub.f32 %v3143_v17, %v3867_v23  ;;  %v3306_v12 = vand.u32 4294901760, %v3305_v0 }
 0x4ae   : > { %12051 = vst [vmem:[#allocation8_spill] sm:$0xff] %v10473_v49  ;;  %v3144_v22 = vsel %vm1793_vm11, %v3139_v16, %v3141_v53  ;;  %8679 = vmatpush3.bf16.msra.mxu0 %v10473_v49  ;;  %v12056_v16 = vand.u32 4294901760, %v10332_v21  ;;  %v10501_v49 = vsub.f32 %v3134_v60, %v3196_v9  ;;  %v12057_v21 = vand.u32 4294901760, %v10452_v47 }
 0x4af   : > { %12052 = vst [vmem:[#allocation9_spill] sm:$0xff] %v10476_v43  ;;  %v3202_v50 = vand.u32 4294901760, %v3144_v22  ;;  %8585 = vmatprep.subr.bf16.mxu1 %v10476_v43  ;;  %7988 = vmatprep.subr.mxu0 %v11993_v5  ;;  %v10503_v43 = vsub.f32 %v3145_v36, %v3200_v29  ;;  %v3948_v17 = vand.u32 4294901760, %v10430_v1  ;;  %v3955_v36 = vand.u32 4294901760, %v3954_v41 }
 0x4b0   : > { %v8681_v53 = vpack.c.bf16 %v3941_v48, %v12056_v16  ;;  %v3329_v48 = vsub.f32 %v10452_v47, %v12057_v21  ;;  %v12058_v60 = vand.u32 4294901760, %v10449_v27  ;;  %v11912_v29 = vand.u32 4294901760, %v10494_v34 }
 0x4b1   : > { %v10499_v19 = vpack.c.bf16 %v3202_v50, %v3198_v42  ;;  %v3150_v4 = vpop.permute.xlu0 %3149  ;;  %v3154_v14 = vpop.permute.xlu1 %3153  ;;  %v10512_v30 = vsub.f32 %v3144_v22, %v3202_v50  ;;  %v12059_v0 = vand.u32 4294901760, %v10337_v11  ;;  %v3317_v50 = vsub.f32 %v10470_v32, %v11911_v55 }
 0x4b2   : > { %v3155_v26 = vsel %vm1805_vm12, %v3150_v4, %v3152_v13  ;;  %v3156_v25 = vsel %vm1805_vm12, %v3152_v13, %v3154_v14  ;;  %v10507_v23 = vand.u32 4294901760, %v3154_v14  ;;  %v3968_v9 = vsub.f32 %v10449_v27, %v12058_v60 }
 0x4b3   : > { %8587 = vmatpush1.bf16.msra.mxu1 %v10499_v19  ;;  %v10520_v13 = vand.u32 4294901760, %v3156_v25  ;;  %v8588_v16 = vpack.c.bf16 %v3282_v28, %v12059_v0  ;;  %v10529_v22 = vsub.f32 %v3133_v10, %v3198_v42  ;;  %v10531_v41 = vand.u32 4294901760, %v3155_v26 }
 0x4b4   : > { %7989 = vmatpush3.msra.mxu0 %v10507_v23  ;;  %v12060_v4 = vand.u32 4294901760, %v10447_v24  ;;  %v8592_v11 = vpack.c.bf16 %v3306_v12, %v3294_v40  ;;  %v3330_v28 = vand.u32 4294901760, %v3329_v48  ;;  %v3340_v60 = vand.u32 4294901760, %v10501_v49 }
 0x4b5   : > { %8680 = vmatprep.subr.bf16.mxu0 %v11982_v52  ;;  %7991 = vmatmul.mubr.f32.vlgmr.msra.gmra.mrb[10].mxu0 %v10365_v15  ;;  %v3352_v10 = vand.u32 4294901760, %v10503_v43  ;;  %v11913_v42 = vand.u32 4294901760, %v10512_v30  ;;  %v10543_v0 = vsub.f32 %v3154_v14, %v10507_v23  ;;  %v8684_v55 = vpack.c.bf16 %v3955_v36, %v3948_v17 }
 0x4b6   : > { %v3961_v21 = vsub.f32 %v10447_v24, %v12060_v4  ;;  %3205 = vmatprep.subr.mxu1 %v10520_v13  ;;  %8682 = vmatpush3.bf16.msra.mxu0 %v8681_v53  ;;  %v3969_v4 = vand.u32 4294901760, %v3968_v9  ;;  %v10548_v1 = vsub.f32 %v3156_v25, %v10520_v13  ;;  %v3318_v12 = vand.u32 4294901760, %v3317_v50 }
 0x4b7   : > { %3207 = vmatpush1.msra.mxu1 %v10531_v41  ;;  %8683 = vmatprep.subr.bf16.mxu0 %v11982_v52  ;;  %v3982_v40 = vsub.f32 %v10494_v34, %v11912_v29  ;;  %v3353_v14 = vsub.f32 %v10503_v43, %v3352_v10  ;;  %v12061_v53 = vand.u32 4294901760, %v10388_v59  ;;  %v3346_v17 = vand.u32 4294901760, %v10529_v22 }
 0x4b8   : > { %8589 = vmatprep.subr.bf16.mxu1 %v8588_v16  ;;  %3260 = vmatmul.mubr.f32.vlgmr.msra.gmra.mrb[6].mxu1 %v10365_v15  ;;  %v12062_v25 = vand.u32 4294901760, %v10361_v57  ;;  %v12063_v15 = vand.u32 4294901760, %v10405_v58  ;;  %v3962_v9 = vand.u32 4294901760, %v3961_v21  ;;  %v8596_v16 = vpack.c.bf16 %v3330_v28, %v3318_v12 }
 0x4b9   : > { %v3323_v48 = vsub.f32 %v10388_v59, %v12061_v53  ;;  %8591 = vmatpush1.bf16.msra.mxu1 %v8590_v51  ;;  %8011 = vmatprep.mubr.msk.f32.mxu0 %vm9286_vm3, %v11993_v5  ;;  %v12064_v50 = vand.u32 4294901760, %v10492_v8  ;;  %v3341_v51 = vsub.f32 %v10501_v49, %v3340_v60  ;;  %v3359_v57 = vsub.f32 %v10512_v30, %v11913_v42 }
 0x4ba   : > { %v8594_v36 = vpack.c.bf16 %v12063_v15, %v12062_v25  ;;  %8593 = vmatprep.subr.bf16.mxu1 %v8592_v11  ;;  %8685 = vmatpush3.bf16.msra.mxu0 %v8684_v55  ;;  %v10577_v58 = vsub.f32 %v3155_v26, %v10531_v41  ;;  %v8687_v21 = vpack.c.bf16 %v3969_v4, %v3962_v9  ;;  %v3336_v55 = vand.u32 4294901760, %v10463_v39 }
 0x4bb   : > { %v3975_v29 = vsub.f32 %v10492_v8, %v12064_v50  ;;  %8686 = vmatprep.subr.bf16.mxu0 %v11982_v52  ;;  %3420 = vmatprep.mubr.f32.mxu1 %v11993_v5  ;;  %v3983_v11 = vand.u32 4294901760, %v3982_v40  ;;  %v3354_v28 = vand.u32 4294901760, %v3353_v14  ;;  %v3364_v12 = vand.u32 4294901760, %v10548_v1 }
 0x4bc   : > { %v3988_v53 = vand.u32 4294901760, %v10543_v0  ;;  %v3347_v25 = vsub.f32 %v10529_v22, %v3346_v17  ;;  %v3324_v26 = vand.u32 4294901760, %v3323_v48  ;;  %v3342_v4 = vand.u32 4294901760, %v3341_v51 }
 0x4bd   : > { %8595 = vmatpush1.bf16.msra.mxu1 %v8594_v36  ;;  %v3976_v15 = vand.u32 4294901760, %v3975_v29  ;;  %v3360_v9 = vand.u32 4294901760, %v3359_v57  ;;  %v3370_v39 = vand.u32 4294901760, %v10577_v58  ;;  %v3365_v42 = vsub.f32 %v10548_v1, %v3364_v12 }
 0x4be   : > { %8597 = vmatprep.subr.bf16.mxu1 %v8596_v16  ;;  %8688 = vmatpush3.bf16.msra.mxu0 %v8687_v21  ;;  %v8598_v50 = vpack.c.bf16 %v3336_v55, %v3324_v26  ;;  %v8600_v14 = vpack.c.bf16 %v3354_v28, %v3342_v4  ;;  %v3989_v48 = vsub.f32 %v10543_v0, %v3988_v53  ;;  %v3348_v36 = vand.u32 4294901760, %v3347_v25 }
 0x4bf   : > { %8689 = vmatprep.subr.bf16.mxu0 %v11982_v52  ;;  %v8690_v40 = vpack.c.bf16 %v3983_v11, %v3976_v15  ;;  %v3371_v29 = vsub.f32 %v10577_v58, %v3370_v39  ;;  %v3366_v51 = vand.u32 4294901760, %v3365_v42  ;;  %v8693_v21 = vpack.c.bf16 %v10377_v2, %v10309_v20 }
 0x4c0   : > { %v8602_v16 = vpack.c.bf16 %v3360_v9, %v3348_v36  ;;  %v3990_v57 = vand.u32 4294901760, %v3989_v48  ;;  %v8604_v11 = vpack.c.bf16 %v10400_v7, %v10314_v38  ;;  %v8606_v42 = vpack.c.bf16 %v10347_v62, %v10306_v45  ;;  %v12065_v48 = vld [vmem:[#allocation21_spill] sm:$0xff] }
 0x4c1   : > { %8599 = vmatpush1.bf16.msra.mxu1 %v8598_v50  ;;  %v3372_v55 = vand.u32 4294901760, %v3371_v29  ;;  %v8608_v28 = vpack.c.bf16 %v10421_v56, %v10394_v33  ;;  %v8696_v25 = vpack.c.bf16 %v10413_v31, %v10373_v44  ;;  %v8610_v26 = vpack.c.bf16 %v10353_v37, %v10323_v18  ;;  %v12066_v36 = vld [vmem:[#allocation17_spill] sm:$0xff]  ;;  %v12067_v29 = vld [vmem:[#allocation14_spill] sm:$0xff] }
 0x4c2   : > { %8691 = vmatpush3.bf16.msra.mxu0 %v8690_v40  ;;  %8601 = vmatprep.subr.bf16.mxu1 %v8600_v14  ;;  %v8612_v15 = vpack.c.bf16 %v10452_v47, %v10470_v32  ;;  %v8699_v4 = vpack.c.bf16 %v10449_v27, %v10447_v24  ;;  %v8614_v9 = vpack.c.bf16 %v10407_v3, %v10388_v59 }
 0x4c3   : > { %8009 = vmatprep.subr.mxu0 %v11993_v5  ;;  %v8616_v50 = vpack.c.bf16 %v10503_v43, %v10501_v49  ;;  %v8702_v40 = vpack.c.bf16 %v10494_v34, %v10492_v8  ;;  %v8618_v14 = vpack.c.bf16 %v10512_v30, %v10529_v22  ;;  %v12094_v43 = vld [vmem:[#allocation16_spill] sm:$0xff] }
 0x4c5   : > { %8603 = vmatpush1.bf16.msra.mxu1 %v8602_v16  ;;  %v12068_v16 = vld [vmem:[#allocation2_spill] sm:$0xff] }
 0x4c6   : > { %3367 = vmatprep.subr.mxu1 %v3366_v51  ;;  %8010 = vmatpush3.msra.mxu0 %v3990_v57  ;;  %v12069_v51 = vld [vmem:[#allocation20_spill] sm:$0xff] }
 0x4c7   : > { %8692 = vmatprep.subr.bf16.mxu0 %v11982_v52  ;;  %8012 = vmatmul.mubr.f32.vlgmr.msra.gmra.mrb[10].mxu0 %v10302_v54  ;;  %v12071_v57 = vld [vmem:[#allocation8_spill] sm:$0xff] }
 0x4c8   : > { %8694 = vmatpush3.bf16.msra.mxu0 %v8693_v21  ;;  %8032 = vmatprep.mubr.msk.f32.mxu0 %vm9286_vm3, %v11993_v5  ;;  %v12072_v21 = vand.u32 4294901760, %v10309_v20  ;;  %v12077_v20 = vand.u32 4294901760, %v10306_v45  ;;  %v12083_v45 = vand.u32 4294901760, %v10323_v18  ;;  %v12089_v18 = vand.u32 4294901760, %v10388_v59 }
 0x4c9   : > { %3373 = vmatpush1.msra.mxu1 %v3372_v55  ;;  %8695 = vmatprep.subr.bf16.mxu0 %v11982_v52  ;;  %v12073_v55 = vand.u32 4294901760, %v10377_v2  ;;  %v12078_v2 = vand.u32 4294901760, %v10347_v62  ;;  %v12084_v62 = vand.u32 4294901760, %v10353_v37  ;;  %v12090_v37 = vand.u32 4294901760, %v10407_v3 }
 0x4ca   : > { %8605 = vmatprep.subr.bf16.mxu1 %v8604_v11  ;;  %3422 = vmatmul.mubr.f32.vlgmr.msra.gmra.mrb[6].mxu1 %v10302_v54  ;;  %v12093_v59 = vand.u32 4294901760, %v10512_v30  ;;  %v3167_v30 = vpop.permute.xlu0 %3166 }
 0x4cb   : > { %8607 = vmatpush1.bf16.msra.mxu1 %v8606_v42  ;;  %3528 = vmatprep.mubr.f32.mxu1 %v11993_v5  ;;  %v8717_v11 = vpack.c.bf16 %v12073_v55, %v12072_v21  ;;  %v12074_v42 = vld [vmem:[#allocation19_spill] sm:$0xff]  ;;  %v12088_v21 = vand.u32 4294901760, %v10449_v27  ;;  %v12092_v27 = vand.u32 4294901760, %v10494_v34 }
 0x4cc   : > { %8609 = vmatprep.subr.bf16.mxu1 %v8608_v28  ;;  %8697 = vmatpush3.bf16.msra.mxu0 %v8696_v25  ;;  %v12075_v28 = vand.u32 4294901760, %v10314_v38  ;;  %v12076_v25 = vand.u32 4294901760, %v10400_v7  ;;  %v12079_v38 = vand.u32 4294901760, %v10394_v33  ;;  %v12080_v7 = vand.u32 4294901760, %v10421_v56  ;;  %v12096_v34 = vld [vmem:[#allocation15_spill] sm:$0xff] }
 0x4cd   : > { %8698 = vmatprep.subr.bf16.mxu0 %v11982_v52  ;;  %v12085_v56 = vand.u32 4294901760, %v10470_v32  ;;  %v12086_v33 = vand.u32 4294901760, %v10452_v47  ;;  %v8648_v32 = vpack.c.bf16 %v3352_v10, %v3340_v60  ;;  %v12091_v47 = vand.u32 4294901760, %v10492_v8  ;;  %v12097_v8 = vld [vmem:[#allocation18_spill] sm:$0xff]  ;;  %v12099_v10 = vld [vmem:[#allocation11_spill] sm:$0xff] }
 0x4ce   : > { %v8650_v3 = vpack.c.bf16 %v12093_v59, %v3346_v17 }
 0x4cf   : > { %8611 = vmatpush1.bf16.msra.mxu1 %v8610_v26  ;;  %v8636_v26 = vpack.c.bf16 %v12076_v25, %v12075_v28 }
 0x4d0   : > { %8613 = vmatprep.subr.bf16.mxu1 %v8612_v15  ;;  %8700 = vmatpush3.bf16.msra.mxu0 %v8699_v4  ;;  %v8638_v15 = vpack.c.bf16 %v12078_v2, %v12077_v20  ;;  %v8640_v4 = vpack.c.bf16 %v12080_v7, %v12079_v38  ;;  %v12105_v20 = vld [vmem:[#allocation3_spill] sm:$0xff] }
 0x4d1   : > { %8701 = vmatprep.subr.bf16.mxu0 %v11982_v52 }
 0x4d3   : > { %8615 = vmatpush1.bf16.msra.mxu1 %v8614_v9  ;;  %v12081_v9 = vand.u32 4294901760, %v10373_v44  ;;  %v8644_v44 = vpack.c.bf16 %v12086_v33, %v12085_v56  ;;  %v12109_v56 = vld [vmem:[#allocation7_spill] sm:$0xff] }
 0x4d4   : > { %8617 = vmatprep.subr.bf16.mxu1 %v8616_v50  ;;  %8703 = vmatpush3.bf16.msra.mxu0 %v8702_v40  ;;  %v12082_v50 = vand.u32 4294901760, %v10413_v31  ;;  %v12087_v31 = vand.u32 4294901760, %v10447_v24  ;;  %v8726_v24 = vpack.c.bf16 %v12092_v27, %v12091_v47 }
 0x4d5   : > { %8030 = vmatprep.subr.mxu0 %v11993_v5 }
 0x4d6   : > { %v8720_v40 = vpack.c.bf16 %v12082_v50, %v12081_v9  ;;  %v8723_v55 = vpack.c.bf16 %v12088_v21, %v12087_v31 }
 0x4d7   : > { %8619 = vmatpush1.bf16.msra.mxu1 %v8618_v14  ;;  %v8642_v14 = vpack.c.bf16 %v12084_v62, %v12083_v45 }
 0x4d8   : > { %3478 = vmatprep.subr.mxu1 %v10548_v1  ;;  %8031 = vmatpush3.msra.mxu0 %v10543_v0 }
 0x4d9   : > { %8704 = vmatprep.subr.bf16.mxu0 %v11982_v52  ;;  %8033 = vmatmul.mubr.f32.vlgmr.msra.gmra.mrb[10].mxu0 %v10317_v61 }
 0x4da   : > { %8706 = vmatpush3.bf16.msra.mxu0 %v10379_v63  ;;  %8053 = vmatprep.mubr.msk.f32.mxu0 %vm9286_vm3, %v11993_v5 }
 0x4db   : > { %3481 = vmatpush1.msra.mxu1 %v10577_v58  ;;  %8707 = vmatprep.subr.bf16.mxu0 %v11982_v52 }
 0x4dc   : > { %8621 = vmatprep.subr.bf16.mxu1 %v10392_v35  ;;  %3531 = vmatmul.mubr.f32.vlgmr.msra.gmra.mrb[6].mxu1 %v10317_v61  ;;  %v12070_v61 = vld [vmem:[#allocation9_spill] sm:$0xff] }
 0x4dd   : > { %8623 = vmatpush1.bf16.msra.mxu1 %v10371_v6  ;;  %3619 = vmatprep.mubr.f32.mxu1 %v11993_v5 }
 0x4de   : > { %8625 = vmatprep.subr.bf16.mxu1 %v10411_v46  ;;  %8709 = vmatpush3.bf16.msra.mxu0 %v12065_v48 }
 0x4df   : > { %8710 = vmatprep.subr.bf16.mxu0 %v11982_v52 }
 0x4e1   : > { %8627 = vmatpush1.bf16.msra.mxu1 %v12066_v36 }
 0x4e2   : > { %8629 = vmatprep.subr.bf16.mxu1 %v12067_v29  ;;  %8712 = vmatpush3.bf16.msra.mxu0 %v12068_v16 }
 0x4e3   : > { %8713 = vmatprep.subr.bf16.mxu0 %v11982_v52 }
 0x4e5   : > { %8631 = vmatpush1.bf16.msra.mxu1 %v12069_v51 }
 0x4e6   : > { %8633 = vmatprep.subr.bf16.mxu1 %v12070_v61  ;;  %8715 = vmatpush3.bf16.msra.mxu0 %v12071_v57 }
 0x4e7   : > { %8051 = vmatprep.subr.mxu0 %v11993_v5 }
 0x4e9   : > { %8635 = vmatpush1.bf16.msra.mxu1 %v10499_v19 }
 0x4ea   : > { %3570 = vmatprep.subr.mxu1 %v10520_v13  ;;  %8052 = vmatpush3.msra.mxu0 %v10507_v23 }
 0x4eb   : > { %8716 = vmatprep.subr.bf16.mxu0 %v11982_v52  ;;  %8054 = vmatmul.mubr.f32.vlgmr.msra.gmra.mrb[10].mxu0 %v12074_v42 }
 0x4ec   : > { %8718 = vmatpush3.bf16.msra.mxu0 %v8717_v11  ;;  %8074 = vmatprep.mubr.msk.f32.mxu0 %vm9286_vm3, %v11993_v5  ;;  %v8646_v11 = vpack.c.bf16 %v12090_v37, %v12089_v18 }
 0x4ed   : > { %3572 = vmatpush1.msra.mxu1 %v10531_v41  ;;  %8719 = vmatprep.subr.bf16.mxu0 %v11982_v52 }
 0x4ee   : > { %8637 = vmatprep.subr.bf16.mxu1 %v8636_v26  ;;  %3623 = vmatmul.mubr.f32.vlgmr.msra.gmra.mrb[6].mxu1 %v12074_v42 }
 0x4ef   : > { %8639 = vmatpush1.bf16.msra.mxu1 %v8638_v15  ;;  %3747 = vmatprep.mubr.f32.mxu1 %v11993_v5 }
 0x4f0   : > { %8641 = vmatprep.subr.bf16.mxu1 %v8640_v4  ;;  %8721 = vmatpush3.bf16.msra.mxu0 %v8720_v40 }
 0x4f1   : > { %8722 = vmatprep.subr.bf16.mxu0 %v11982_v52 }
 0x4f3   : > { %8643 = vmatpush1.bf16.msra.mxu1 %v8642_v14 }
 0x4f4   : > { %8645 = vmatprep.subr.bf16.mxu1 %v8644_v44  ;;  %8724 = vmatpush3.bf16.msra.mxu0 %v8723_v55 }
 0x4f5   : > { %8725 = vmatprep.subr.bf16.mxu0 %v11982_v52 }
 0x4f7   : > { %8647 = vmatpush1.bf16.msra.mxu1 %v8646_v11 }
 0x4f8   : > { %8649 = vmatprep.subr.bf16.mxu1 %v8648_v32  ;;  %8727 = vmatpush3.bf16.msra.mxu0 %v8726_v24 }
 0x4f9   : > { %8072 = vmatprep.subr.mxu0 %v11993_v5 }
 0x4fb   : > { %8651 = vmatpush1.bf16.msra.mxu1 %v8650_v3  ;;  %v12112_v3 = vld [vmem:[#allocation6_spill] sm:$0xff] }
 0x4fc   : > { %3696 = vmatprep.subr.mxu1 %v3364_v12  ;;  %8073 = vmatpush3.msra.mxu0 %v3988_v53 }
 0x4fd   : > { %8728 = vmatprep.subr.bf16.mxu0 %v11982_v52  ;;  %8075 = vmatmul.mubr.f32.vlgmr.msra.gmra.mrb[10].mxu0 %v10302_v54 }
 0x4fe   : > { %8730 = vmatpush3.bf16.msra.mxu0 %v10379_v63  ;;  %8095 = vmatprep.mubr.msk.f32.mxu0 %vm9286_vm3, %v11993_v5  ;;  %v340_v63 = vpop.permute.xlu1 %339 }
 0x4ff   : > { %3700 = vmatpush1.msra.mxu1 %v3370_v39  ;;  %8731 = vmatprep.subr.bf16.mxu0 %v11982_v52  ;;  %v9009_v0 = vadd.f32 %v12099_v10, %v340_v63 }
 0x500   : > { %8653 = vmatprep.subr.bf16.mxu1 %v10392_v35  ;;  %3749 = vmatmul.mubr.f32.vlgmr.msra.gmra.mrb[6].mxu1 %v10302_v54 }
 0x501   : > { %8655 = vmatpush1.bf16.msra.mxu1 %v10371_v6  ;;  %3837 = vmatprep.mubr.f32.mxu1 %v11993_v5  ;;  %v11919_v6 = vand.u32 4294901760, %v12094_v43  ;;  %v1671_v28 = vmax.f32 %v9009_v0, 0.0 }
 0x502   : > { %8657 = vmatprep.subr.bf16.mxu1 %v10411_v46  ;;  %8733 = vmatpush3.bf16.msra.mxu0 %v12065_v48  ;;  %v12095_v46 = vld [vmem:[#allocation5_spill] sm:$0xff] }
 0x503   : > { %8734 = vmatprep.subr.bf16.mxu0 %v11982_v52  ;;  %v6589_v35 = vsub.f32 %v12094_v43, %v11919_v6  ;;  %v9015_v49 = vadd.f32 %v12095_v46, %v340_v63 }
 0x505   : > { %8659 = vmatpush1.bf16.msra.mxu1 %v12066_v36  ;;  %v6590_v60 = vand.u32 4294901760, %v6589_v35  ;;  %v1672_v17 = vmax.f32 %v9015_v49, 0.0 }
 0x506   : > { %8661 = vmatprep.subr.bf16.mxu1 %v12067_v29  ;;  %8736 = vmatpush3.bf16.msra.mxu0 %v12068_v16 }
 0x507   : > { %8737 = vmatprep.subr.bf16.mxu0 %v11982_v52  ;;  %v6591_v42 = vsub.f32 %v6589_v35, %v6590_v60 }
 0x509   : > { %8663 = vmatpush1.bf16.msra.mxu1 %v12069_v51  ;;  %v6592_v44 = vand.u32 4294901760, %v6591_v42  ;;  %v5752_v42 = vld [vmem:[%s11843_s7] sm:$0xff] }
 0x50a   : > { %8665 = vmatprep.subr.bf16.mxu1 %v12070_v61  ;;  %8739 = vmatpush3.bf16.msra.mxu0 %v12071_v57 }
 0x50b   : > { %8093 = vmatprep.subr.mxu0 %v11993_v5 }
 0x50d   : > { %8667 = vmatpush1.bf16.msra.mxu1 %v10499_v19  ;;  %v11915_v19 = vand.u32 4294901760, %v12096_v34 }
 0x50e   : > { %3788 = vmatprep.subr.mxu1 %v10520_v13  ;;  %8094 = vmatpush3.msra.mxu0 %v10507_v23  ;;  %v11917_v23 = vand.u32 4294901760, %v12097_v8 }
 0x50f   : > { %8096 = vmatmul.mubr.f32.vlgmr.msra.gmra.mrb[10].mxu0 %v10302_v54  ;;  %8836 = vmatprep.subr.bf16.mxu0 %v11982_v52  ;;  %v10770_v53 = vsub.f32 %v12096_v34, %v11915_v19 }
 0x510   : > { %8116 = vmatprep.mubr.msk.f32.mxu0 %vm9286_vm3, %v11993_v5  ;;  %v10775_v39 = vsub.f32 %v12097_v8, %v11917_v23 }
 0x511   : > { %3790 = vmatpush1.msra.mxu1 %v10531_v41  ;;  %12101 = vst [vmem:[#allocation17_spill] sm:$0xff] %v10770_v53  ;;  %v5913_v15 = vand.u32 4294901760, %v10770_v53 }
 0x512   : > { %3839 = vmatmul.mubr.f32.vlgmr.msra.gmra.mrb[6].mxu1 %v10302_v54  ;;  %v12098_v54 = vld [vmem:[#allocation10_spill] sm:$0xff]  ;;  %12102 = vst [vmem:[#allocation14_spill] sm:$0xff] %v10775_v39  ;;  %v5907_v4 = vand.u32 4294901760, %v10775_v39 }
 0x513   : > { %4604 = vmatprep.mubr.f32.mxu1 %v11993_v5  ;;  %v9008_v41 = vadd.f32 %v12098_v54, %v340_v63  ;;  %v5914_v55 = vsub.f32 %v10770_v53, %v5913_v15 }
 0x514   : > { %v5908_v32 = vsub.f32 %v10775_v39, %v5907_v4 }
 0x515   : > { %v1670_v61 = vmax.f32 %v9008_v41, 0.0 }
 0x5e2   : > { %v4391_v13 = vpop.f32.mrb[10].mxu0 }
 0x5e3   : > { %v9021_v1 = vadd.f32 %v4391_v13, %v3167_v30  ;;  %v8097_v22 = vpop.f32.mrb[11].mxu0 }
 0x5e5   : > { %v10765_v58 = vmax.f32 %v9021_v1, 0.0  ;;  %v3840_v12 = vpop.f32.mrb[6].mxu1  ;;  %v5909_v1 = vand.u32 4294901760, %v5908_v32 }
 0x5e6   : > { %v9019_v48 = vadd.f32 %v3840_v12, %v3167_v30  ;;  %v3842_v36 = vpop.f32.mrb[7].mxu1 }
 0x5e7   : > { %12100 = vst [vmem:[#allocation21_spill] sm:$0xff] %v10765_v58  ;;  %v4400_v29 = vadd.f32 %v10765_v58, %v1672_v17  ;;  %v11918_v16 = vand.u32 4294901760, %v10765_v58  ;;  %v9020_v51 = vadd.f32 %v3842_v36, %v3167_v30  ;;  %v5915_v30 = vand.u32 4294901760, %v5914_v55 }
 0x5e8   : > { %v10779_v57 = vmax.f32 %v9019_v48, 0.0 }
 0x5e9   : > { %v6596_v25 = vsub.f32 %v10765_v58, %v11918_v16  ;;  %v10784_v26 = vmax.f32 %v9020_v51, 0.0  ;;  %v4403_v2 = vmul.f32 %v4400_v29, %v12105_v20  ;;  %v7482_v29 = vld [vmem:[%s11841_s5 + $0x10] sm:$0xff]  ;;  %v326_v51 = vld [vmem:[%s11839_s3 + $0x18] sm:$0xff] }
 0x5ea   : > { %12103 = vst [vmem:[#allocation2_spill] sm:$0xff] %v10779_v57  ;;  %v4398_v38 = vadd.f32 %v10779_v57, %v1670_v61  ;;  %v11914_v7 = vand.u32 4294901760, %v10779_v57  ;;  %v5753_v61 = vld [vmem:[%s11843_s7 + $0x8] sm:$0xff] }
 0x5eb   : > { %12104 = vst [vmem:[#allocation20_spill] sm:$0xff] %v10784_v26  ;;  %v4399_v9 = vadd.f32 %v10784_v26, %v1671_v28  ;;  %v11916_v50 = vand.u32 4294901760, %v10784_v26  ;;  %4411 = vrot.lane.b32.xlu0 %v4403_v2, %s9277_s23  ;;  %v6597_v40 = vand.u32 4294901760, %v6596_v25  ;;  %v10794_v45 = vpack.c.bf16 %v6596_v25, %v6589_v35  ;;  %v5755_v28 = vld [vmem:[%s11843_s7 + $0x18] sm:$0xff] }
 0x5ec   : > { %v10799_v62 = vsub.f32 %v10779_v57, %v11914_v7  ;;  %v4401_v63 = vmul.f32 %v4398_v38, %v12112_v3 }
 0x5ed   : > { %12106 = vst [vmem:[#allocation9_spill] sm:$0xff] %v10794_v45  ;;  %v10804_v14 = vsub.f32 %v10784_v26, %v11916_v50  ;;  %v4402_v33 = vmul.f32 %v4399_v9, %v12109_v56  ;;  %v6598_v31 = vsub.f32 %v6596_v25, %v6597_v40  ;;  %v10811_v37 = vpack.c.bf16 %v6597_v40, %v6590_v60  ;;  %v5754_v25 = vld [vmem:[%s11843_s7 + $0x10] sm:$0xff] }
 0x5ee   : > { %12107 = vst [vmem:[#allocation8_spill] sm:$0xff] %v10799_v62  ;;  %v5925_v21 = vand.u32 4294901760, %v10799_v62 }
 0x5ef   : > { %12108 = vst [vmem:[#allocation19_spill] sm:$0xff] %v10804_v14  ;;  %12110 = vst [vmem:[#allocation5_spill] sm:$0xff] %v10811_v37  ;;  %4409 = vrot.lane.b32.xlu1 %v4402_v33, %s9277_s23  ;;  %v6599_v11 = vand.u32 4294901760, %v6598_v31  ;;  %v5919_v47 = vand.u32 4294901760, %v10804_v14 }
 0x5f0   : > { %v5926_v24 = vsub.f32 %v10799_v62, %v5925_v21  ;;  %v10819_v59 = vpack.c.bf16 %v5925_v21, %v5913_v15 }
 0x5f1   : > { %v10822_v35 = vpack.c.bf16 %v6599_v11, %v6592_v44  ;;  %v5920_v46 = vsub.f32 %v10804_v14, %v5919_v47  ;;  %v10825_v49 = vpack.c.bf16 %v5919_v47, %v5907_v4  ;;  %v7481_v4 = vld [vmem:[%s11840_s4 + $0x10] sm:$0xff] }
 0x5f2   : > { %12111 = vst [vmem:[#allocation10_spill] sm:$0xff] %v10819_v59  ;;  %v5927_v13 = vand.u32 4294901760, %v5926_v24  ;;  %v4520_v44 = vsel %vm1818_vm4, %v7481_v4, 0  ;;  %vm7375_vm4 = vcmask 916480  }
 0x5f3   : > { %12113 = vst [vmem:[#allocation11_spill] sm:$0xff] %v10822_v35  ;;  %12114 = vst [vmem:[#allocation3_spill] sm:$0xff] %v10825_v49  ;;  %4407 = vrot.lane.b32.xlu1 %v4401_v63, %s9277_s23  ;;  %v5921_v22 = vand.u32 4294901760, %v5920_v46  ;;  %v10916_v55 = vand.u32 4294901760, %v4520_v44  ;;  %s9300_s23 = smov 87  }
 0x5f4   : > { %v10828_v54 = vpack.c.bf16 %v5927_v13, %v5915_v30 }
 0x5f5   : > { %v10830_v41 = vpack.c.bf16 %v5921_v22, %v5909_v1  ;;  %v10936_v22 = vsub.f32 %v4520_v44, %v10916_v55 }
 0x5f6   : > { %12115 = vst [vmem:[#allocation7_spill] sm:$0xff] %v10828_v54 }
 0x5f7   : > { %12116 = vst [vmem:[#allocation6_spill] sm:$0xff] %v10830_v41 }
 0x65d   : > { %v4412_v12 = vpop.permute.xlu0 %4411 }
 0x661   : > { %v4410_v60 = vpop.permute.xlu1 %4409 }
 0x662   : > { %v4414_v48 = vsel %vm1704_vm1, %v4410_v60, %v4412_v12 }
 0x663   : > { %v10856_v36 = vsel %vm1711_vm2, %v4414_v48, 0.0  ;;  %vm7365_vm2 = vcmask 654336  }
 0x664   : > { %v11925_v33 = vand.u32 4294901760, %v10856_v36 }
 0x665   : > { %v4408_v10 = vpop.permute.xlu1 %4407 }
 0x666   : > { %v10833_v0 = vsel %vm1704_vm1, 0.0, %v4408_v10  ;;  %v10844_v17 = vsel %vm1704_vm1, %v4408_v10, %v4410_v60  ;;  %v10926_v24 = vsub.f32 %v10856_v36, %v11925_v33  ;;  %vm7360_vm1 = vcmask 523264  }
 0x667   : > { %4433 = vrot.lane.b32.xlu1 %v10833_v0, %s9278_s24  ;;  %4422 = vrot.lane.b32.xlu0 %v10833_v0, %s9279_s25  ;;  %v11926_v56 = vand.u32 4294901760, %v10833_v0  ;;  %v11923_v31 = vand.u32 4294901760, %v10844_v17  ;;  %v12119_v62 = vand.u32 4294901760, %v10833_v0 }
 0x668   : > { %v11922_v12 = vand.u32 4294901760, %v10926_v24 }
 0x669   : > { %v10921_v32 = vsub.f32 %v10833_v0, %v11926_v56  ;;  %v10933_v30 = vsub.f32 %v10844_v17, %v11923_v31 }
 0x66b   : > { %4455 = vrot.lane.b32.xlu1 %v10833_v0, %s9280_s26  ;;  %4444 = vrot.lane.b32.xlu0 %v10833_v0, %s9281_s29 }
 0x66f   : > { %4466 = vrot.lane.b32.xlu0 %v10833_v0, %s9282_s30  ;;  %4435 = vrot.lane.b32.xlu1 %v10844_v17, %s9278_s24 }
 0x673   : > { %4446 = vrot.lane.b32.xlu1 %v10844_v17, %s9281_s29  ;;  %4424 = vrot.lane.b32.xlu0 %v10844_v17, %s9279_s25 }
 0x677   : > { %4457 = vrot.lane.b32.xlu1 %v10844_v17, %s9280_s26  ;;  %4437 = vrot.lane.b32.xlu0 %v10856_v36, %s9278_s24  ;;  %s9301_s24 = smov 85  }
 0x67b   : > { %4468 = vrot.lane.b32.xlu1 %v10844_v17, %s9282_s30  ;;  %4448 = vrot.lane.b32.xlu0 %v10856_v36, %s9281_s29 }
 0x67f   : > { %4426 = vrot.lane.b32.xlu1 %v10856_v36, %s9279_s25  ;;  %4459 = vrot.lane.b32.xlu0 %v10856_v36, %s9280_s26 }
 0x683   : > { %4479 = vrot.lane.b32.xlu1 %v10844_v17, %s9284_s9  ;;  %4470 = vrot.lane.b32.xlu0 %v10856_v36, %s9282_s30 }
 0x687   : > { %4490 = vrot.lane.b32.xlu1 %v10844_v17, %s9285_s10  ;;  %4481 = vrot.lane.b32.xlu0 %v10856_v36, %s9284_s9 }
 0x68b   : > { %4477 = vrot.lane.b32.xlu1 %v10833_v0, %s9284_s9  ;;  %4492 = vrot.lane.b32.xlu0 %v10856_v36, %s9285_s10  ;;  %s9288_s9 = smov 83  }
 0x68f   : > { %4501 = vrot.lane.b32.xlu1 %v10844_v17, %s9287_s11  ;;  %4488 = vrot.lane.b32.xlu0 %v10833_v0, %s9285_s10 }
 0x693   : > { %4499 = vrot.lane.b32.xlu1 %v10833_v0, %s9287_s11  ;;  %4503 = vrot.lane.b32.xlu0 %v10856_v36, %s9287_s11  ;;  %s9291_s11 = smov 97  }
 0x697   : > { %4516 = vperm.xlu1 %9254, %v7482_v29   ;;  %344 = vperm.xlu0 %9253, %v326_v51   ;;  %v11921_v51 = vand.u32 4294901760, %v10933_v30 }
 0x69b   : > { %5763 = vperm.xlu1 %9254, %v5753_v61   ;;  %5758 = vperm.xlu0 %9253, %v5752_v42   ;;  %v11920_v61 = vand.u32 4294901760, %v10921_v32 }
 0x69f   : > { %5773 = vperm.xlu1 %9254, %v5755_v28   ;;  %5768 = vperm.xlu0 %9253, %v5754_v25  }
 0x6d9   : > { %v4434_v20 = vpop.permute.xlu1 %4433  ;;  %v4423_v2 = vpop.permute.xlu0 %4422 }
 0x6dd   : > { %v4456_v15 = vpop.permute.xlu1 %4455  ;;  %v4445_v38 = vpop.permute.xlu0 %4444 }
 0x6e1   : > { %v4467_v9 = vpop.permute.xlu0 %4466  ;;  %v4436_v40 = vpop.permute.xlu1 %4435 }
 0x6e2   : > { %v4439_v21 = vsel %vm1733_vm5, %v4434_v20, %v4436_v40  ;;  %v10957_v20 = vand.u32 4294901760, %v10936_v22 }
 0x6e3   : > { %v4532_v3 = vand.u32 4294901760, %v4439_v21 }
 0x6e4   : > { %12117 = vst [vmem:[#allocation22_spill] sm:$0xff] %v10957_v20  ;;  %v4608_v50 = vsub.f32 %v10936_v22, %v10957_v20 }
 0x6e5   : > { %v4447_v11 = vpop.permute.xlu1 %4446  ;;  %v4425_v47 = vpop.permute.xlu0 %4424  ;;  %v10943_v48 = vsub.f32 %v4439_v21, %v4532_v3  ;;  %v10969_v21 = vsub.f32 %v10933_v30, %v11921_v51 }
 0x6e6   : > { %v4450_v63 = vsel %vm1745_vm7, %v4445_v38, %v4447_v11  ;;  %v4428_v46 = vsel %vm1721_vm6, %v4423_v2, %v4425_v47  ;;  %v11012_v56 = vand.u32 4294901760, %v4608_v50 }
 0x6e7   : > { %v4536_v13 = vand.u32 4294901760, %v4450_v63  ;;  %v4528_v1 = vand.u32 4294901760, %v4428_v46  ;;  %v11924_v44 = vand.u32 4294901760, %v10943_v48 }
 0x6e9   : > { %v10938_v60 = vpop.permute.xlu1 %4457  ;;  %v10940_v10 = vpop.permute.xlu0 %4437  ;;  %v10951_v42 = vsub.f32 %v4450_v63, %v4536_v13  ;;  %v10953_v28 = vsub.f32 %v4428_v46, %v4528_v1  ;;  %v10974_v63 = vsub.f32 %v10921_v32, %v11920_v61  ;;  %v11014_v51 = vpack.c.bf16 %v4536_v13, %v4532_v3 }
 0x6ea   : > { %v10947_v29 = vsel %vm1757_vm8, %v4456_v15, %v10938_v60  ;;  %v5202_v25 = vand.u32 4294901760, %v10940_v10  ;;  %v10963_v15 = vsub.f32 %v10926_v24, %v11922_v12  ;;  %v4440_v7 = vsel %vm1733_vm5, %v4436_v40, %v10940_v10 }
 0x6eb   : > { %v4540_v2 = vand.u32 4294901760, %v10947_v29  ;;  %v11927_v46 = vand.u32 4294901760, %v10951_v42  ;;  %v11930_v18 = vand.u32 4294901760, %v10953_v28  ;;  %v4530_v61 = vand.u32 4294901760, %v4440_v7  ;;  %12118 = vst [vmem:[#allocation23_spill] sm:$0xff] %v11014_v51 }
 0x6ec   : > { %v10982_v19 = vsub.f32 %v10940_v10, %v5202_v25  ;;  %vm7313_vm5 = vcmask 678912  }
 0x6ed   : > { %v4469_v38 = vpop.permute.xlu1 %4468  ;;  %v4449_v4 = vpop.permute.xlu0 %4448  ;;  %v10987_v23 = vsub.f32 %v10947_v29, %v4540_v2  ;;  %v11002_v29 = vsub.f32 %v10951_v42, %v11927_v46  ;;  %v11007_v12 = vsub.f32 %v10953_v28, %v11930_v18  ;;  %v11030_v46 = vsub.f32 %v4440_v7, %v4530_v61 }
 0x6ee   : > { %v4472_v27 = vsel %vm1769_vm9, %v4467_v9, %v4469_v38  ;;  %v10995_v9 = vsub.f32 %v10943_v48, %v11924_v44  ;;  %v4451_v33 = vsel %vm1745_vm7, %v4447_v11, %v4449_v4  ;;  %v5205_v59 = vand.u32 4294901760, %v4449_v4 }
 0x6ef   : > { %v4544_v40 = vand.u32 4294901760, %v4472_v27  ;;  %v12121_v11 = vand.u32 4294901760, %v10856_v36  ;;  %v4534_v39 = vand.u32 4294901760, %v4451_v33  ;;  %v12122_v14 = vand.u32 4294901760, %v10982_v19 }
 0x6f0   : > { %v12123_v36 = vand.u32 4294901760, %v10987_v23  ;;  %v11057_v13 = vpack.c.bf16 %v5205_v59, %v5202_v25  ;;  %v12138_v26 = vand.u32 4294901760, %v11007_v12 }
 0x6f1   : > { %v4427_v16 = vpop.permute.xlu1 %4426  ;;  %v10989_v6 = vpop.permute.xlu0 %4459  ;;  %v11022_v44 = vsub.f32 %v4472_v27, %v4544_v40  ;;  %v11035_v18 = vsub.f32 %v10982_v19, %v12122_v14  ;;  %v12124_v14 = vand.u32 4294901760, %v10844_v17 }
 0x6f2   : > { %v4429_v31 = vsel %vm1721_vm6, %v4425_v47, %v4427_v16  ;;  %v5199_v10 = vand.u32 4294901760, %v4427_v16  ;;  %v11020_v47 = vpack.c.bf16 %v4528_v1, %v12119_v62  ;;  %v5208_v27 = vand.u32 4294901760, %v10989_v6  ;;  %12126 = vst [vmem:[#allocation26_spill] sm:$0xff] %v11057_v13 }
 0x6f3   : > { %v4526_v49 = vand.u32 4294901760, %v4429_v31  ;;  %v11047_v7 = vsub.f32 %v10987_v23, %v12123_v36  ;;  %v11049_v1 = vsub.f32 %v4449_v4, %v5205_v59  ;;  %v4462_v4 = vsel %vm1757_vm8, %v10938_v60, %v10989_v6 }
 0x6f4   : > { %12120 = vst [vmem:[#allocation24_spill] sm:$0xff] %v11020_v47  ;;  %v11026_v50 = vpack.c.bf16 %v5199_v10, %v12121_v11  ;;  %v11037_v62 = vsub.f32 %v4427_v16, %v5199_v10  ;;  %v11064_v36 = vpack.c.bf16 %v4544_v40, %v4540_v2  ;;  %v11072_v59 = vsub.f32 %v4451_v33, %v4534_v39 }
 0x6f5   : > { %v4480_v37 = vpop.permute.xlu1 %4479  ;;  %v4471_v53 = vpop.permute.xlu0 %4470  ;;  %v11053_v3 = vpack.c.bf16 %v4526_v49, %v12124_v14  ;;  %v11059_v45 = vsub.f32 %v4429_v31, %v4526_v49  ;;  %v11068_v14 = vpack.c.bf16 %v4534_v39, %v4530_v61  ;;  %v11076_v31 = vsub.f32 %v10989_v6, %v5208_v27 }
 0x6f6   : > { %v11041_v0 = vsel %vm1769_vm9, %v4469_v38, %v4471_v53  ;;  %8838 = vmatpush3.bf16.msra.mxu0 %v11026_v50  ;;  %v5211_v11 = vand.u32 4294901760, %v4471_v53  ;;  %12127 = vst [vmem:[#allocation27_spill] sm:$0xff] %v11064_v36  ;;  %v4538_v25 = vand.u32 4294901760, %v4462_v4  ;;  %v12129_v6 = vand.u32 4294901760, %v11022_v44 }
 0x6f7   : > { %12125 = vst [vmem:[#allocation25_spill] sm:$0xff] %v11053_v3  ;;  %8839 = vmatprep.subr.bf16.mxu0 %v11982_v52  ;;  %v4542_v17 = vand.u32 4294901760, %v11041_v0  ;;  %8741 = vmatprep.subr.bf16.mxu1 %v11053_v3  ;;  %12128 = vst [vmem:[#allocation28_spill] sm:$0xff] %v11068_v14  ;;  %v12132_v57 = vand.u32 4294901760, %v11037_v62 }
 0x6f8   : > { %8743 = vmatpush1.bf16.msra.mxu1 %v11020_v47  ;;  %v11081_v61 = vsub.f32 %v4471_v53, %v5211_v11  ;;  %v11089_v40 = vsub.f32 %v11022_v44, %v12129_v6  ;;  %v11091_v38 = vpack.c.bf16 %v5211_v11, %v5208_v27  ;;  %v12133_v11 = vand.u32 4294901760, %v11049_v1 }
 0x6f9   : > { %v4491_v16 = vpop.permute.xlu1 %4490  ;;  %v4482_v10 = vpop.permute.xlu0 %4481  ;;  %8745 = vmatprep.subr.bf16.mxu1 %v11068_v14  ;;  %v11095_v35 = vpack.c.bf16 %v4542_v17, %v4538_v25  ;;  %v5290_v34 = vsub.f32 %v11037_v62, %v12132_v57  ;;  %v11112_v20 = vsub.f32 %v4462_v4, %v4538_v25  ;;  %v12139_v14 = vand.u32 4294901760, %v11076_v31 }
 0x6fa   : > { %8841 = vmatpush3.bf16.msra.mxu0 %v11057_v13  ;;  %v4484_v2 = vsel %vm1781_vm10, %v4480_v37, %v4482_v10  ;;  %12130 = vst [vmem:[#allocation29_spill] sm:$0xff] %v11091_v38  ;;  %v5214_v60 = vand.u32 4294901760, %v4482_v10  ;;  %v5304_v6 = vsub.f32 %v11049_v1, %v12133_v11  ;;  %v12136_v11 = vand.u32 4294901760, %v11059_v45 }
 0x6fb   : > { %8842 = vmatprep.subr.bf16.mxu0 %v11982_v52  ;;  %12131 = vst [vmem:[#allocation30_spill] sm:$0xff] %v11095_v35  ;;  %v4546_v8 = vand.u32 4294901760, %v4484_v2  ;;  %v12137_v13 = vand.u32 4294901760, %v10974_v63  ;;  %v5291_v25 = vand.u32 4294901760, %v5290_v34  ;;  %v12140_v63 = vand.u32 4294901760, %v11081_v61 }
 0x6fc   : > { %8747 = vmatpush1.bf16.msra.mxu1 %v11014_v51  ;;  %v4631_v53 = vsub.f32 %v11059_v45, %v12136_v11  ;;  %v11135_v47 = vsub.f32 %v4482_v10, %v5214_v60 }
 0x6fd   : > { %v4478_v39 = vpop.permute.xlu1 %4477  ;;  %v4493_v33 = vpop.permute.xlu0 %4492  ;;  %8749 = vmatprep.subr.bf16.mxu1 %v11095_v35  ;;  %v8758_v4 = vpack.c.bf16 %v12138_v26, %v12137_v13  ;;  %v11142_v26 = vsub.f32 %v11081_v61, %v12140_v63  ;;  %v11157_v11 = vsub.f32 %v4484_v2, %v4546_v8 }
 0x6fe   : > { %v4495_v54 = vsel %vm1793_vm11, %v4491_v16, %v4493_v33  ;;  %v5217_v41 = vand.u32 4294901760, %v4493_v33  ;;  %v4483_v27 = vsel %vm1781_vm10, %v4478_v39, %v4480_v37  ;;  %8844 = vmatpush3.bf16.msra.mxu0 %v11091_v38 }
 0x6ff   : > { %v4550_v49 = vand.u32 4294901760, %v4495_v54  ;;  %8845 = vmatprep.subr.bf16.mxu0 %v11982_v52  ;;  %v4548_v38 = vand.u32 4294901760, %v4483_v27  ;;  %v5319_v2 = vand.u32 4294901760, %v11142_v26 }
 0x700   : > { %v11108_v58 = vpack.c.bf16 %v5217_v41, %v5214_v60  ;;  %v11121_v51 = vsub.f32 %v4493_v33, %v5217_v41  ;;  %8751 = vmatpush1.bf16.msra.mxu1 %v11064_v36  ;;  %v5305_v41 = vand.u32 4294901760, %v5304_v6  ;;  %v4632_v60 = vand.u32 4294901760, %v4631_v53 }
 0x701   : > { %v4502_v57 = vpop.permute.xlu1 %4501  ;;  %v4489_v43 = vpop.permute.xlu0 %4488  ;;  %v11116_v39 = vpack.c.bf16 %v4550_v49, %v4546_v8  ;;  %v12142_v33 = vand.u32 4294901760, %v11030_v46  ;;  %v11162_v36 = vsub.f32 %v4495_v54, %v4550_v49  ;;  %v12143_v53 = vand.u32 4294901760, %v10963_v15 }
 0x702   : > { %12134 = vst [vmem:[#allocation31_spill] sm:$0xff] %v11108_v58  ;;  %v4494_v37 = vsel %vm1793_vm11, %v4489_v43, %v4491_v16  ;;  %v11130_v43 = vsub.f32 %v11076_v31, %v12139_v14  ;;  %v11133_v16 = vsub.f32 %v11041_v0, %v4542_v17  ;;  %8847 = vmatpush3.bf16.msra.mxu0 %v11108_v58  ;;  %v12141_v0 = vand.u32 4294901760, %v11072_v59 }
 0x703   : > { %12135 = vst [vmem:[#allocation32_spill] sm:$0xff] %v11116_v39  ;;  %v4552_v35 = vand.u32 4294901760, %v4494_v37  ;;  %8753 = vmatprep.subr.bf16.mxu1 %v11116_v39  ;;  %8114 = vmatprep.subr.mxu0 %v11993_v5  ;;  %v4643_v6 = vsub.f32 %v11030_v46, %v12142_v33  ;;  %v11964_v63 = vand.u32 4294901760, %v11121_v51  ;;  %v4666_v39 = vand.u32 4294901760, %v11112_v20 }
 0x704   : > { %v4655_v10 = vsub.f32 %v11072_v59, %v12141_v0  ;;  %v8849_v8 = vpack.c.bf16 %v5291_v25, %v12143_v53  ;;  %v5324_v33 = vand.u32 4294901760, %v11135_v47  ;;  %v11177_v49 = vsub.f32 %v4483_v27, %v4548_v38 }
 0x705   : > { %v11144_v34 = vpack.c.bf16 %v4552_v35, %v4548_v38  ;;  %v4500_v12 = vpop.permute.xlu1 %4499  ;;  %v4504_v13 = vpop.permute.xlu0 %4503  ;;  %v11164_v0 = vsub.f32 %v4494_v37, %v4552_v35  ;;  %v4678_v35 = vand.u32 4294901760, %v11133_v16  ;;  %v12144_v15 = vand.u32 4294901760, %v10969_v21 }
 0x706   : > { %v4506_v17 = vsel %vm1805_vm12, %v4502_v57, %v4504_v13  ;;  %v11152_v14 = vand.u32 4294901760, %v4504_v13  ;;  %v4505_v58 = vsel %vm1805_vm12, %v4500_v12, %v4502_v57  ;;  %v4656_v54 = vand.u32 4294901760, %v4655_v10 }
 0x707   : > { %v11166_v3 = vand.u32 4294901760, %v4506_v17  ;;  %8755 = vmatpush1.bf16.msra.mxu1 %v11144_v34  ;;  %v11179_v57 = vand.u32 4294901760, %v4505_v58  ;;  %v8756_v37 = vpack.c.bf16 %v4632_v60, %v12144_v15  ;;  %v12145_v25 = vand.u32 4294901760, %v11035_v18 }
 0x708   : > { %8115 = vmatpush3.msra.mxu0 %v11152_v14  ;;  %v5332_v12 = vsub.f32 %v11121_v51, %v11964_v63  ;;  %v4644_v10 = vand.u32 4294901760, %v4643_v6  ;;  %v4667_v38 = vsub.f32 %v11112_v20, %v4666_v39  ;;  %v4679_v27 = vsub.f32 %v11133_v16, %v4678_v35 }
 0x709   : > { %8848 = vmatprep.subr.bf16.mxu0 %v11982_v52  ;;  %8117 = vmatmul.mubr.f32.vlgmr.msra.gmra.mrb[12].mxu0 %v11012_v56  ;;  %v8852_v26 = vpack.c.bf16 %v5305_v41, %v12145_v25  ;;  %v11965_v18 = vand.u32 4294901760, %v11164_v0  ;;  %v11200_v21 = vsub.f32 %v4504_v13, %v11152_v14  ;;  %v4690_v41 = vand.u32 4294901760, %v11157_v11 }
 0x70a   : > { %4555 = vmatprep.subr.mxu1 %v11166_v3  ;;  %8850 = vmatpush3.bf16.msra.mxu0 %v8849_v8  ;;  %v4702_v60 = vand.u32 4294901760, %v11162_v36  ;;  %v4686_v6 = vand.u32 4294901760, %v11089_v40  ;;  %v11207_v53 = vsub.f32 %v4506_v17, %v11166_v3  ;;  %v8760_v8 = vpack.c.bf16 %v4656_v54, %v4644_v10 }
 0x70b   : > { %8851 = vmatprep.subr.bf16.mxu0 %v11982_v52  ;;  %8137 = vmatprep.mubr.msk.f32.mxu0 %vm9286_vm3, %v11993_v5  ;;  %v4680_v15 = vand.u32 4294901760, %v4679_v27  ;;  %v5312_v25 = vand.u32 4294901760, %v11130_v43  ;;  %v5325_v13 = vsub.f32 %v11135_v47, %v5324_v33  ;;  %v4696_v63 = vand.u32 4294901760, %v11177_v49 }
 0x70c   : > { %4557 = vmatpush1.msra.mxu1 %v11179_v57  ;;  %v4703_v40 = vsub.f32 %v11162_v36, %v4702_v60  ;;  %v5333_v17 = vand.u32 4294901760, %v5332_v12  ;;  %v12147_v54 = vand.u32 4294901760, %v11002_v29  ;;  %v4668_v43 = vand.u32 4294901760, %v4667_v38 }
 0x70d   : > { %8757 = vmatprep.subr.bf16.mxu1 %v8756_v37  ;;  %4610 = vmatmul.mubr.f32.vlgmr.msra.gmra.mrb[8].mxu1 %v11012_v56  ;;  %v12146_v56 = vand.u32 4294901760, %v10995_v9  ;;  %v4691_v10 = vsub.f32 %v11157_v11, %v4690_v41  ;;  %v5338_v12 = vand.u32 4294901760, %v11200_v21  ;;  %v8855_v9 = vpack.c.bf16 %v5319_v2, %v5312_v25 }
 0x70e   : > { %8759 = vmatpush1.bf16.msra.mxu1 %v8758_v4  ;;  %8853 = vmatpush3.bf16.msra.mxu0 %v8852_v26  ;;  %v4709_v4 = vsub.f32 %v11164_v0, %v11965_v18  ;;  %v11230_v26 = vsub.f32 %v4505_v58, %v11179_v57  ;;  %v4674_v29 = vand.u32 4294901760, %v11047_v7  ;;  %v8764_v27 = vpack.c.bf16 %v4680_v15, %v4668_v43 }
 0x70f   : > { %8761 = vmatprep.subr.bf16.mxu1 %v8760_v8  ;;  %v8762_v37 = vpack.c.bf16 %v12147_v54, %v12146_v56  ;;  %8854 = vmatprep.subr.bf16.mxu0 %v11982_v52  ;;  %v4704_v38 = vand.u32 4294901760, %v4703_v40  ;;  %v4714_v8 = vand.u32 4294901760, %v11207_v53  ;;  %v5326_v56 = vand.u32 4294901760, %v5325_v13 }
 0x710   : > { %4770 = vmatprep.mubr.f32.mxu1 %v11993_v5  ;;  %v4697_v54 = vsub.f32 %v11177_v49, %v4696_v63  ;;  %v8766_v58 = vpack.c.bf16 %v4686_v6, %v4674_v29  ;;  %v4692_v2 = vand.u32 4294901760, %v4691_v10  ;;  %v4710_v25 = vand.u32 4294901760, %v4709_v4 }
 0x711   : > { %v4720_v18 = vand.u32 4294901760, %v11230_v26  ;;  %v8858_v7 = vpack.c.bf16 %v5333_v17, %v5326_v56  ;;  %v5339_v15 = vsub.f32 %v11200_v21, %v5338_v12  ;;  %v4715_v40 = vsub.f32 %v11207_v53, %v4714_v8 }
 0x712   : > { %8763 = vmatpush1.bf16.msra.mxu1 %v8762_v37  ;;  %8856 = vmatpush3.bf16.msra.mxu0 %v8855_v9  ;;  %v8768_v13 = vpack.c.bf16 %v4704_v38, %v4692_v2  ;;  %v4698_v37 = vand.u32 4294901760, %v4697_v54  ;;  %v8861_v4 = vpack.c.bf16 %v11037_v62, %v10926_v24  ;;  %v8772_v29 = vpack.c.bf16 %v11059_v45, %v10933_v30 }
 0x713   : > { %8765 = vmatprep.subr.bf16.mxu1 %v8764_v27  ;;  %8857 = vmatprep.subr.bf16.mxu0 %v11982_v52  ;;  %v4721_v6 = vsub.f32 %v11230_v26, %v4720_v18  ;;  %v5340_v43 = vand.u32 4294901760, %v5339_v15  ;;  %v4716_v10 = vand.u32 4294901760, %v4715_v40  ;;  %v8774_v27 = vpack.c.bf16 %v10953_v28, %v10921_v32  ;;  %v12148_v40 = vld [vmem:[#allocation25_spill] sm:$0xff] }
 0x714   : > { %v8770_v17 = vpack.c.bf16 %v4710_v25, %v4698_v37  ;;  %v8776_v38 = vpack.c.bf16 %v11072_v59, %v11030_v46  ;;  %v8864_v56 = vpack.c.bf16 %v11049_v1, %v10982_v19  ;;  %v8778_v54 = vpack.c.bf16 %v10951_v42, %v10943_v48  ;;  %v12149_v37 = vld [vmem:[#allocation24_spill] sm:$0xff] }
 0x715   : > { %v4722_v9 = vand.u32 4294901760, %v4721_v6  ;;  %v8867_v2 = vpack.c.bf16 %v11081_v61, %v11076_v31  ;;  %v8782_v25 = vpack.c.bf16 %v11022_v44, %v10987_v23  ;;  %v8870_v15 = vpack.c.bf16 %v11121_v51, %v11135_v47  ;;  %v12150_v6 = vld [vmem:[#allocation28_spill] sm:$0xff] }
 0x716   : > { %8767 = vmatpush1.bf16.msra.mxu1 %v8766_v58  ;;  %8859 = vmatpush3.bf16.msra.mxu0 %v8858_v7  ;;  %v8780_v58 = vpack.c.bf16 %v11133_v16, %v11112_v20  ;;  %v8784_v7 = vpack.c.bf16 %v11162_v36, %v11157_v11  ;;  %v8816_v20 = vpack.c.bf16 %v4702_v60, %v4690_v41  ;;  %v12183_v11 = vld [vmem:[#allocation20_spill] sm:$0xff] }
 0x717   : > { %8769 = vmatprep.subr.bf16.mxu1 %v8768_v13  ;;  %8135 = vmatprep.subr.mxu0 %v11993_v5  ;;  %v8786_v13 = vpack.c.bf16 %v11164_v0, %v11177_v49 }
 0x71a   : > { %8771 = vmatpush1.bf16.msra.mxu1 %v8770_v17  ;;  %8136 = vmatpush3.msra.mxu0 %v5340_v43  ;;  %v12151_v17 = vld [vmem:[#allocation26_spill] sm:$0xff]  ;;  %v12152_v43 = vld [vmem:[#allocation23_spill] sm:$0xff] }
 0x71b   : > { %4717 = vmatprep.subr.mxu1 %v4716_v10  ;;  %8860 = vmatprep.subr.bf16.mxu0 %v11982_v52  ;;  %v12153_v10 = vld [vmem:[#allocation30_spill] sm:$0xff] }
 0x71c   : > { %8138 = vmatmul.mubr.f32.vlgmr.msra.gmra.mrb[12].mxu0 %v10916_v55 }
 0x71d   : > { %8862 = vmatpush3.bf16.msra.mxu0 %v8861_v4  ;;  %8158 = vmatprep.mubr.msk.f32.mxu0 %vm9286_vm3, %v11993_v5  ;;  %v12154_v4 = vld [vmem:[#allocation29_spill] sm:$0xff] }
 0x71e   : > { %4723 = vmatpush1.msra.mxu1 %v4722_v9  ;;  %8863 = vmatprep.subr.bf16.mxu0 %v11982_v52  ;;  %v12155_v9 = vld [vmem:[#allocation27_spill] sm:$0xff] }
 0x71f   : > { %8773 = vmatprep.subr.bf16.mxu1 %v8772_v29  ;;  %4772 = vmatmul.mubr.f32.vlgmr.msra.gmra.mrb[8].mxu1 %v10916_v55  ;;  %v12157_v29 = vld [vmem:[#allocation31_spill] sm:$0xff] }
 0x720   : > { %8775 = vmatpush1.bf16.msra.mxu1 %v8774_v27  ;;  %4878 = vmatprep.mubr.f32.mxu1 %v11993_v5  ;;  %v12158_v27 = vand.u32 4294901760, %v10926_v24  ;;  %v12163_v24 = vand.u32 4294901760, %v10921_v32  ;;  %v12169_v32 = vand.u32 4294901760, %v10943_v48  ;;  %v12173_v48 = vand.u32 4294901760, %v10987_v23 }
 0x721   : > { %8777 = vmatprep.subr.bf16.mxu1 %v8776_v38  ;;  %8865 = vmatpush3.bf16.msra.mxu0 %v8864_v56  ;;  %v12159_v38 = vand.u32 4294901760, %v11037_v62  ;;  %v12164_v62 = vand.u32 4294901760, %v10953_v28  ;;  %v12170_v28 = vand.u32 4294901760, %v10951_v42  ;;  %v12174_v42 = vand.u32 4294901760, %v11022_v44 }
 0x722   : > { %8866 = vmatprep.subr.bf16.mxu0 %v11982_v52  ;;  %v12176_v23 = vand.u32 4294901760, %v11164_v0 }
 0x723   : > { %v8885_v56 = vpack.c.bf16 %v12159_v38, %v12158_v27  ;;  %v12168_v27 = vand.u32 4294901760, %v11049_v1  ;;  %v12172_v1 = vand.u32 4294901760, %v11081_v61 }
 0x724   : > { %8779 = vmatpush1.bf16.msra.mxu1 %v8778_v54  ;;  %v12160_v54 = vld [vmem:[#allocation22_spill] sm:$0xff]  ;;  %v8818_v44 = vpack.c.bf16 %v12176_v23, %v4696_v63  ;;  %v12184_v63 = vand.u32 4294901760, %v12183_v11 }
 0x725   : > { %8781 = vmatprep.subr.bf16.mxu1 %v8780_v58  ;;  %8868 = vmatpush3.bf16.msra.mxu0 %v8867_v2  ;;  %v12161_v58 = vand.u32 4294901760, %v10933_v30  ;;  %v12162_v2 = vand.u32 4294901760, %v11059_v45  ;;  %v12165_v30 = vand.u32 4294901760, %v11030_v46  ;;  %v12166_v45 = vand.u32 4294901760, %v11072_v59 }
 0x726   : > { %8869 = vmatprep.subr.bf16.mxu0 %v11982_v52  ;;  %v12171_v46 = vand.u32 4294901760, %v11076_v31  ;;  %v12175_v31 = vand.u32 4294901760, %v11121_v51  ;;  %v12177_v51 = vld [vmem:[#allocation16_spill] sm:$0xff] }
 0x727   : > { %v12178_v47 = vand.u32 4294901760, %v12177_v51 }
 0x728   : > { %8783 = vmatpush1.bf16.msra.mxu1 %v8782_v25  ;;  %v8804_v25 = vpack.c.bf16 %v12162_v2, %v12161_v58  ;;  %v8891_v59 = vpack.c.bf16 %v12172_v1, %v12171_v46  ;;  %v8894_v61 = vpack.c.bf16 %v12175_v31, %v5324_v33  ;;  %v12185_v33 = vld [vmem:[#allocation15_spill] sm:$0xff] }
 0x729   : > { %8785 = vmatprep.subr.bf16.mxu1 %v8784_v7  ;;  %8871 = vmatpush3.bf16.msra.mxu0 %v8870_v15  ;;  %v8806_v7 = vpack.c.bf16 %v12164_v62, %v12163_v24  ;;  %v8808_v15 = vpack.c.bf16 %v12166_v45, %v12165_v30 }
 0x72a   : > { %8156 = vmatprep.subr.mxu0 %v11993_v5 }
 0x72c   : > { %8787 = vmatpush1.bf16.msra.mxu1 %v8786_v13  ;;  %v12167_v13 = vand.u32 4294901760, %v10982_v19  ;;  %v8812_v19 = vpack.c.bf16 %v4678_v35, %v4666_v39  ;;  %v12187_v35 = vld [vmem:[#allocation2_spill] sm:$0xff] }
 0x72d   : > { %4828 = vmatprep.subr.mxu1 %v11207_v53  ;;  %8157 = vmatpush3.msra.mxu0 %v11200_v21  ;;  %v345_v53 = vpop.permute.xlu0 %344 }
 0x72e   : > { %8872 = vmatprep.subr.bf16.mxu0 %v11982_v52  ;;  %8159 = vmatmul.mubr.f32.vlgmr.msra.gmra.mrb[12].mxu0 %v10936_v22  ;;  %v8888_v38 = vpack.c.bf16 %v12168_v27, %v12167_v13  ;;  %v4517_v13 = vpop.permute.xlu1 %4516 }
 0x72f   : > { %8874 = vmatpush3.bf16.msra.mxu0 %v11026_v50  ;;  %8179 = vmatprep.mubr.msk.f32.mxu0 %vm9286_vm3, %v11993_v5 }
 0x730   : > { %4831 = vmatpush1.msra.mxu1 %v11230_v26  ;;  %8875 = vmatprep.subr.bf16.mxu0 %v11982_v52  ;;  %v5749_v26 = vld [vmem:[%s11842_s6 + $0x8] sm:$0xff] }
 0x731   : > { %8789 = vmatprep.subr.bf16.mxu1 %v12148_v40  ;;  %4881 = vmatmul.mubr.f32.vlgmr.msra.gmra.mrb[8].mxu1 %v10936_v22  ;;  %v12156_v22 = vld [vmem:[#allocation32_spill] sm:$0xff] }
 0x732   : > { %8791 = vmatpush1.bf16.msra.mxu1 %v12149_v37  ;;  %4969 = vmatprep.mubr.f32.mxu1 %v11993_v5 }
 0x733   : > { %8793 = vmatprep.subr.bf16.mxu1 %v12150_v6  ;;  %8877 = vmatpush3.bf16.msra.mxu0 %v12151_v17 }
 0x734   : > { %8878 = vmatprep.subr.bf16.mxu0 %v11982_v52 }
 0x736   : > { %8795 = vmatpush1.bf16.msra.mxu1 %v12152_v43 }
 0x737   : > { %8797 = vmatprep.subr.bf16.mxu1 %v12153_v10  ;;  %8880 = vmatpush3.bf16.msra.mxu0 %v12154_v4 }
 0x738   : > { %8881 = vmatprep.subr.bf16.mxu0 %v11982_v52 }
 0x73a   : > { %8799 = vmatpush1.bf16.msra.mxu1 %v12155_v9 }
 0x73b   : > { %8801 = vmatprep.subr.bf16.mxu1 %v12156_v22  ;;  %8883 = vmatpush3.bf16.msra.mxu0 %v12157_v29 }
 0x73c   : > { %8177 = vmatprep.subr.mxu0 %v11993_v5 }
 0x73e   : > { %8803 = vmatpush1.bf16.msra.mxu1 %v11144_v34 }
 0x73f   : > { %4920 = vmatprep.subr.mxu1 %v11166_v3  ;;  %8178 = vmatpush3.msra.mxu0 %v11152_v14 }
 0x740   : > { %8884 = vmatprep.subr.bf16.mxu0 %v11982_v52  ;;  %8180 = vmatmul.mubr.f32.vlgmr.msra.gmra.mrb[12].mxu0 %v12160_v54 }
 0x741   : > { %8886 = vmatpush3.bf16.msra.mxu0 %v8885_v56  ;;  %8200 = vmatprep.mubr.msk.f32.mxu0 %vm9286_vm3, %v11993_v5  ;;  %v8810_v56 = vpack.c.bf16 %v12170_v28, %v12169_v32 }
 0x742   : > { %4922 = vmatpush1.msra.mxu1 %v11179_v57  ;;  %8887 = vmatprep.subr.bf16.mxu0 %v11982_v52 }
 0x743   : > { %8805 = vmatprep.subr.bf16.mxu1 %v8804_v25  ;;  %4973 = vmatmul.mubr.f32.vlgmr.msra.gmra.mrb[8].mxu1 %v12160_v54  ;;  %v8814_v54 = vpack.c.bf16 %v12174_v42, %v12173_v48 }
 0x744   : > { %8807 = vmatpush1.bf16.msra.mxu1 %v8806_v7  ;;  %5097 = vmatprep.mubr.f32.mxu1 %v11993_v5 }
 0x745   : > { %8809 = vmatprep.subr.bf16.mxu1 %v8808_v15  ;;  %8889 = vmatpush3.bf16.msra.mxu0 %v8888_v38 }
 0x746   : > { %8890 = vmatprep.subr.bf16.mxu0 %v11982_v52 }
 0x748   : > { %8811 = vmatpush1.bf16.msra.mxu1 %v8810_v56 }
 0x749   : > { %8813 = vmatprep.subr.bf16.mxu1 %v8812_v19  ;;  %8892 = vmatpush3.bf16.msra.mxu0 %v8891_v59 }
 0x74a   : > { %8893 = vmatprep.subr.bf16.mxu0 %v11982_v52 }
 0x74c   : > { %8815 = vmatpush1.bf16.msra.mxu1 %v8814_v54 }
 0x74d   : > { %8817 = vmatprep.subr.bf16.mxu1 %v8816_v20  ;;  %8895 = vmatpush3.bf16.msra.mxu0 %v8894_v61 }
 0x74e   : > { %8198 = vmatprep.subr.mxu0 %v11993_v5 }
 0x750   : > { %8819 = vmatpush1.bf16.msra.mxu1 %v8818_v44 }
 0x751   : > { %5046 = vmatprep.subr.mxu1 %v4714_v8  ;;  %8199 = vmatpush3.msra.mxu0 %v5338_v12  ;;  %v12189_v12 = vld [vmem:[#allocation4_spill] sm:$0xff] }
 0x752   : > { %8896 = vmatprep.subr.bf16.mxu0 %v11982_v52  ;;  %8201 = vmatmul.mubr.f32.vlgmr.msra.gmra.mrb[12].mxu0 %v10916_v55  ;;  %v9014_v8 = vadd.f32 %v12189_v12, %v345_v53 }
 0x753   : > { %8898 = vmatpush3.bf16.msra.mxu0 %v11026_v50  ;;  %8221 = vmatprep.mubr.msk.f32.mxu0 %vm9286_vm3, %v11993_v5  ;;  %v12179_v50 = vld [vmem:[#allocation21_spill] sm:$0xff]  ;;  %vm7370_vm3 = vcmask 785408  }
 0x754   : > { %5050 = vmatpush1.msra.mxu1 %v4720_v18  ;;  %8899 = vmatprep.subr.bf16.mxu0 %v11982_v52  ;;  %v12180_v36 = vand.u32 4294901760, %v12179_v50 }
 0x755   : > { %8821 = vmatprep.subr.bf16.mxu1 %v12148_v40  ;;  %5099 = vmatmul.mubr.f32.vlgmr.msra.gmra.mrb[8].mxu1 %v10916_v55  ;;  %v5750_v40 = vld [vmem:[%s11842_s6 + $0x10] sm:$0xff] }
 0x756   : > { %8823 = vmatpush1.bf16.msra.mxu1 %v12149_v37  ;;  %5187 = vmatprep.mubr.f32.mxu1 %v11993_v5  ;;  %v11402_v39 = vpack.c.bf16 %v12180_v36, %v12178_v47  ;;  %v12190_v37 = vld [vmem:[#allocation13_spill] sm:$0xff] }
 0x757   : > { %8825 = vmatprep.subr.bf16.mxu1 %v12150_v6  ;;  %8901 = vmatpush3.bf16.msra.mxu0 %v12151_v17  ;;  %v9011_v6 = vadd.f32 %v12190_v37, %v345_v53  ;;  %v5780_v17 = vsel %vm347_vm0, %v5749_v26, 0 }
 0x758   : > { %8902 = vmatprep.subr.bf16.mxu0 %v11982_v52 }
 0x759   : > { %v1674_v2 = vmax.f32 %v9011_v6, 0.0  ;;  %v12192_v6 = vld [vmem:[#allocation11_spill] sm:$0xff] }
 0x75a   : > { %8827 = vmatpush1.bf16.msra.mxu1 %v12152_v43  ;;  %v5751_v43 = vld [vmem:[%s11842_s6 + $0x18] sm:$0xff] }
 0x75b   : > { %8829 = vmatprep.subr.bf16.mxu1 %v12153_v10  ;;  %8904 = vmatpush3.bf16.msra.mxu0 %v12154_v4  ;;  %v5783_v10 = vsel %vm347_vm0, %v5750_v40, 0  ;;  %v12191_v4 = vld [vmem:[#allocation12_spill] sm:$0xff]  ;;  %v5786_v58 = vsel %vm347_vm0, %v5751_v43, 0  ;;  %v5800_v45 = vand.u32 4294901760, %v1674_v2 }
 0x75c   : > { %8905 = vmatprep.subr.bf16.mxu0 %v11982_v52  ;;  %v12181_v52 = vld [vmem:[#allocation18_spill] sm:$0xff]  ;;  %v11461_v25 = vand.u32 4294901760, %v5783_v10  ;;  %v11463_v7 = vand.u32 4294901760, %v5786_v58 }
 0x75d   : > { %v12182_v16 = vand.u32 4294901760, %v12181_v52  ;;  %v11477_v1 = vsub.f32 %v1674_v2, %v5800_v45 }
 0x75e   : > { %8831 = vmatpush1.bf16.msra.mxu1 %v12155_v9  ;;  %v9010_v9 = vadd.f32 %v12191_v4, %v345_v53  ;;  %v11469_v15 = vsub.f32 %v5783_v10, %v11461_v25  ;;  %v11472_v28 = vsub.f32 %v5786_v58, %v11463_v7 }
 0x75f   : > { %8833 = vmatprep.subr.bf16.mxu1 %v12156_v22  ;;  %8907 = vmatpush3.bf16.msra.mxu0 %v12157_v29  ;;  %v11414_v0 = vpack.c.bf16 %v12184_v63, %v12182_v16  ;;  %v1675_v22 = vmax.f32 %v9014_v8, 0.0  ;;  %v11458_v29 = vand.u32 4294901760, %v5780_v17  ;;  %v5943_v52 = vand.u32 4294901760, %v11477_v1 }
 0x760   : > { %8219 = vmatprep.subr.mxu0 %v11993_v5  ;;  %v1673_v24 = vmax.f32 %v9010_v9, 0.0  ;;  %v11480_v59 = vand.u32 4294901760, %v11469_v15  ;;  %v11485_v61 = vand.u32 4294901760, %v11472_v28 }
 0x761   : > { %v6488_v62 = vand.u32 4294901760, %v1675_v22  ;;  %v11466_v30 = vsub.f32 %v5780_v17, %v11458_v29  ;;  %v5944_v40 = vsub.f32 %v11477_v1, %v5943_v52 }
 0x762   : > { %8835 = vmatpush1.bf16.msra.mxu1 %v11144_v34  ;;  %v12186_v34 = vand.u32 4294901760, %v12185_v33  ;;  %v5802_v27 = vand.u32 4294901760, %v1673_v24  ;;  %v5886_v36 = vsub.f32 %v11469_v15, %v11480_v59 }
 0x763   : > { %5138 = vmatprep.subr.mxu1 %v11166_v3  ;;  %8220 = vmatpush3.msra.mxu0 %v11152_v14  ;;  %v12188_v3 = vand.u32 4294901760, %v12187_v35  ;;  %v5748_v14 = vld [vmem:[%s11842_s6] sm:$0xff]  ;;  %v6610_v38 = vsub.f32 %v1675_v22, %v6488_v62  ;;  %v11475_v46 = vand.u32 4294901760, %v11466_v30  ;;  %v5897_v35 = vsub.f32 %v11472_v28, %v11485_v61 }
 0x764   : > { %8222 = vmatmul.mubr.f32.vlgmr.msra.gmra.mrb[12].mxu0 %v10916_v55  ;;  %8957 = vmatprep.subr.bf16.mxu0 %v11402_v39  ;;  %v11482_v54 = vsub.f32 %v1673_v24, %v5802_v27  ;;  %v5887_v8 = vand.u32 4294901760, %v5886_v36  ;;  %v12200_v36 = vld [vmem:[#allocation17_spill] sm:$0xff] }
 0x765   : > { %8959 = vmatpush3.bf16.msra.mxu0 %v11402_v39  ;;  %v11421_v49 = vpack.c.bf16 %v12188_v3, %v12186_v34  ;;  %v6611_v23 = vand.u32 4294901760, %v6610_v38  ;;  %v5875_v47 = vsub.f32 %v11466_v30, %v11475_v46  ;;  %v5898_v24 = vand.u32 4294901760, %v5897_v35 }
 0x766   : > { %5140 = vmatpush1.msra.mxu1 %v11179_v57  ;;  %v5777_v57 = vsel %vm347_vm0, %v5748_v14, 0  ;;  %v5949_v33 = vand.u32 4294901760, %v11482_v54 }
 0x767   : > { %5189 = vmatmul.mubr.f32.vlgmr.msra.gmra.mrb[8].mxu1 %v10916_v55  ;;  %8909 = vmatprep.subr.bf16.mxu1 %v11414_v0  ;;  %v11431_v18 = vand.u32 4294901760, %v5777_v57  ;;  %v6612_v3 = vsub.f32 %v6610_v38, %v6611_v23 }
 0x768   : > { %8911 = vmatpush1.bf16.msra.mxu1 %v11421_v49  ;;  %5860 = vmatprep.mubr.f32.mxu1 %v11993_v5  ;;  %v5950_v22 = vsub.f32 %v11482_v54, %v5949_v33 }
 0x769   : > { %v11434_v21 = vsub.f32 %v5777_v57, %v11431_v18  ;;  %v6613_v9 = vand.u32 4294901760, %v6612_v3 }
 0x76b   : > { %v11437_v41 = vand.u32 4294901760, %v11434_v21 }
 0x76d   : > { %v5864_v55 = vsub.f32 %v11434_v21, %v11437_v41 }
 0x76f   : > { %v11441_v60 = vand.u32 4294901760, %v5864_v55  ;;  %v5876_v55 = vand.u32 4294901760, %v5875_v47 }
 0x771   : > { %8232 = vmatprep.mubr.f32.mxu0 %v11441_v60 }
 0x837   : > { %v5741_v32 = vpop.f32.mrb[12].mxu0 }
 0x838   : > { %v9024_v56 = vadd.f32 %v5741_v32, %v4517_v13  ;;  %v8223_v19 = vpop.f32.mrb[13].mxu0 }
 0x83a   : > { %v5747_v48 = vmax.f32 %v9024_v56, 0.0  ;;  %v5190_v42 = vpop.f32.mrb[8].mxu1 }
 0x83b   : > { %v9022_v20 = vadd.f32 %v5190_v42, %v4517_v13  ;;  %v5192_v31 = vpop.f32.mrb[9].mxu1  ;;  %v5951_v42 = vand.u32 4294901760, %v5950_v22 }
 0x83c   : > { %v6485_v44 = vand.u32 4294901760, %v5747_v48  ;;  %v9023_v51 = vadd.f32 %v5192_v31, %v4517_v13 }
 0x83d   : > { %v5745_v50 = vmax.f32 %v9022_v20, 0.0  ;;  %v12194_v20 = vld [vmem:[#allocation7_spill] sm:$0xff] }
 0x83e   : > { %v11492_v16 = vpack.c.bf16 %v6488_v62, %v6485_v44  ;;  %v6603_v11 = vsub.f32 %v5747_v48, %v6485_v44  ;;  %v5746_v63 = vmax.f32 %v9023_v51, 0.0  ;;  %v12195_v44 = vld [vmem:[#allocation9_spill] sm:$0xff]  ;;  %v12197_v51 = vld [vmem:[#allocation14_spill] sm:$0xff] }
 0x83f   : > { %v5798_v34 = vand.u32 4294901760, %v5745_v50 }
 0x840   : > { %v6604_v14 = vand.u32 4294901760, %v6603_v11  ;;  %v5796_v57 = vand.u32 4294901760, %v5746_v63  ;;  %8961 = vmatprep.subr.bf16.mxu0 %v11492_v16  ;;  %v8976_v53 = vpack.c.bf16 %v6610_v38, %v6603_v11  ;;  %v12193_v38 = vld [vmem:[#allocation6_spill] sm:$0xff] }
 0x841   : > { %v11498_v26 = vpack.c.bf16 %v5802_v27, %v5798_v34  ;;  %v11500_v12 = vsub.f32 %v5745_v50, %v5798_v34  ;;  %8963 = vmatpush3.bf16.msra.mxu0 %v11492_v16  ;;  %v12199_v50 = vld [vmem:[#allocation8_spill] sm:$0xff] }
 0x842   : > { %v5930_v37 = vsub.f32 %v5746_v63, %v5796_v57  ;;  %8965 = vmatprep.subr.bf16.mxu0 %v12192_v6  ;;  %v11505_v17 = vpack.c.bf16 %v5800_v45, %v5796_v57  ;;  %v6605_v43 = vsub.f32 %v6603_v11, %v6604_v14  ;;  %v11507_v10 = vpack.c.bf16 %v6611_v23, %v6604_v14  ;;  %v12202_v11 = vld [vmem:[#allocation5_spill] sm:$0xff] }
 0x843   : > { %v5937_v4 = vand.u32 4294901760, %v11500_v12  ;;  %v8930_v58 = vpack.c.bf16 %v11482_v54, %v11500_v12  ;;  %v5945_v54 = vand.u32 4294901760, %v5944_v40  ;;  %v9258_v57 = vld [vmem:[%s9401_s20 + $0x58] sm:$0xff] }
 0x844   : > { %v5931_v2 = vand.u32 4294901760, %v5930_v37  ;;  %8913 = vmatprep.subr.bf16.mxu1 %v11505_v17  ;;  %8233 = vmatmul.mubr.f32.vlgmr.msra.gmra.mrb[14].mxu0 %v5876_v55  ;;  %v6606_v62 = vand.u32 4294901760, %v6605_v43  ;;  %v8928_v45 = vpack.c.bf16 %v11477_v1, %v5930_v37 }
 0x845   : > { %v5938_v13 = vsub.f32 %v11500_v12, %v5937_v4  ;;  %8915 = vmatpush1.bf16.msra.mxu1 %v11498_v26  ;;  %8967 = vmatpush3.bf16.msra.mxu0 %v12192_v6  ;;  %v11518_v27 = vpack.c.bf16 %v5949_v33, %v5937_v4  ;;  %v9257_v33 = vld [vmem:[%s9401_s20 + $0x40] sm:$0xff] }
 0x846   : > { %8917 = vmatprep.subr.bf16.mxu1 %v12193_v38  ;;  %8235 = vmatprep.mubr.f32.mxu0 %v5887_v8  ;;  %v8968_v32 = vpack.c.bf16 %v6613_v9, %v6606_v62  ;;  %v5932_v56 = vsub.f32 %v5930_v37, %v5931_v2  ;;  %v11521_v19 = vpack.c.bf16 %v5943_v52, %v5931_v2  ;;  %v9259_v37 = vld [vmem:[%s9401_s20] sm:$0xff]  ;;  %v9261_v2 = vld [vmem:[%s9401_s20 + $0x18] sm:$0xff] }
 0x847   : > { %v5939_v48 = vand.u32 4294901760, %v5938_v13  ;;  %v12201_v52 = vpack.c.bf16 %v12199_v50, %v12200_v36 }
 0x848   : > { %5866 = vmatmul.mubr.f32.vlgmr.msra.gmra.mrb[10].mxu1 %v11441_v60  ;;  %8236 = vmatmul.mubr.f32.gmra.mrb[16].mxu0 %v5898_v24  ;;  %v5933_v1 = vand.u32 4294901760, %v5932_v56  ;;  %v12196_v60 = vld [vmem:[#allocation19_spill] sm:$0xff]  ;;  %v9262_v56 = vld [vmem:[%s9401_s20 + $0x20] sm:$0xff] }
 0x849   : > { %8969 = vmatprep.subr.bf16.mxu0 %v8968_v32  ;;  %8919 = vmatpush1.bf16.msra.mxu1 %v12194_v20  ;;  %v8922_v31 = vpack.c.bf16 %v5951_v42, %v5939_v48  ;;  %v12198_v47 = vpack.c.bf16 %v12196_v60, %v12197_v51  ;;  %v9265_v51 = vld [vmem:[%s9401_s20 + $0x30] sm:$0xff] }
 0x84a   : > { %8971 = vmatpush3.bf16.msra.mxu0 %v8968_v32  ;;  %5871 = vmatprep.mubr.f32.mxu1 %v11993_v5  ;;  %v8920_v23 = vpack.c.bf16 %v5945_v54, %v5933_v1  ;;  %v9263_v1 = vld [vmem:[%s9401_s20 + $0x38] sm:$0xff] }
 0x84b   : > { %8973 = vmatprep.subr.bf16.mxu0 %v12195_v44  ;;  %8246 = vmatprep.mubr.f32.mxu0 %v11431_v18 }
 0x84c   : > { %5877 = vmatmul.mubr.f32.gmra.mrb[12].mxu1 %v5876_v55  ;;  %8921 = vmatprep.subr.bf16.mxu1 %v8920_v23 }
 0x84d   : > { %8247 = vmatmul.mubr.f32.vlgmr.msra.gmra.mrb[14].mxu0 %v11458_v29  ;;  %8923 = vmatpush1.bf16.msra.mxu1 %v8922_v31 }
 0x84e   : > { %8975 = vmatpush3.bf16.msra.mxu0 %v12195_v44  ;;  %8925 = vmatprep.subr.bf16.mxu1 %v12198_v47  ;;  %v9264_v44 = vld [vmem:[%s9401_s20 + $0x48] sm:$0xff] }
 0x84f   : > { %8977 = vmatprep.subr.bf16.mxu0 %v8976_v53  ;;  %5882 = vmatprep.mubr.f32.mxu1 %v11993_v5 }
 0x850   : > { %8249 = vmatprep.mubr.f32.mxu0 %v11461_v25  ;;  %5888 = vmatmul.mubr.f32.gmra.mrb[14].mxu1 %v5887_v8 }
 0x851   : > { %8250 = vmatmul.mubr.f32.gmra.mrb[16].mxu0 %v11463_v7  ;;  %5893 = vmatprep.mubr.f32.mxu1 %v11993_v5 }
 0x852   : > { %8979 = vmatpush3.bf16.msra.mxu0 %v8976_v53  ;;  %8260 = vmatprep.mubr.f32.mxu0 %v11434_v21 }
 0x853   : > { %8981 = vmatprep.subr.bf16.mxu0 %v11402_v39 }
 0x854   : > { %5899 = vmatmul.mubr.f32.gmra.mrb[16].mxu1 %v5898_v24 }
 0x855   : > { %8261 = vmatmul.mubr.f32.vlgmr.msra.gmra.mrb[14].mxu0 %v11466_v30  ;;  %6009 = vmatprep.mubr.f32.mxu1 %v11993_v5 }
 0x856   : > { %8983 = vmatpush3.bf16.msra.mxu0 %v11402_v39  ;;  %8263 = vmatprep.mubr.f32.mxu0 %v11469_v15 }
 0x857   : > { %8985 = vmatprep.subr.bf16.mxu0 %v11492_v16 }
 0x858   : > { %6011 = vmatmul.mubr.f32.vlgmr.msra.gmra.mrb[10].mxu1 %v11431_v18 }
 0x859   : > { %8927 = vmatpush1.bf16.msra.mxu1 %v12201_v52  ;;  %8264 = vmatmul.mubr.f32.gmra.mrb[16].mxu0 %v11472_v28 }
 0x85a   : > { %8929 = vmatprep.subr.bf16.mxu1 %v8928_v45  ;;  %8987 = vmatpush3.bf16.msra.mxu0 %v11492_v16 }
 0x85b   : > { %8989 = vmatprep.subr.bf16.mxu0 %v12202_v11  ;;  %6016 = vmatprep.mubr.f32.mxu1 %v11993_v5 }
 0x85c   : > { %8274 = vmatprep.mubr.f32.mxu0 %v11437_v41  ;;  %6018 = vmatmul.mubr.f32.gmra.mrb[12].mxu1 %v11458_v29 }
 0x85d   : > { %8931 = vmatpush1.bf16.msra.mxu1 %v8930_v58  ;;  %8275 = vmatmul.mubr.f32.vlgmr.msra.gmra.mrb[14].mxu0 %v11475_v46 }
 0x85e   : > { %8933 = vmatprep.subr.bf16.mxu1 %v11414_v0  ;;  %8991 = vmatpush3.bf16.msra.mxu0 %v12202_v11 }
 0x85f   : > { %8993 = vmatprep.subr.bf16.mxu0 %v11507_v10  ;;  %6023 = vmatprep.mubr.f32.mxu1 %v11993_v5 }
 0x860   : > { %8277 = vmatprep.mubr.f32.mxu0 %v11480_v59  ;;  %6025 = vmatmul.mubr.f32.gmra.mrb[14].mxu1 %v11461_v25 }
 0x861   : > { %8278 = vmatmul.mubr.f32.gmra.mrb[16].mxu0 %v11485_v61  ;;  %6030 = vmatprep.mubr.f32.mxu1 %v11993_v5 }
 0x862   : > { %8995 = vmatpush3.bf16.msra.mxu0 %v11507_v10  ;;  %8288 = vmatprep.mubr.f32.mxu0 %v11431_v18 }
 0x863   : > { %8997 = vmatprep.subr.bf16.mxu0 %v11402_v39 }
 0x864   : > { %6032 = vmatmul.mubr.f32.gmra.mrb[16].mxu1 %v11463_v7 }
 0x865   : > { %8289 = vmatmul.mubr.f32.vlgmr.msra.gmra.mrb[14].mxu0 %v11458_v29  ;;  %6118 = vmatprep.mubr.f32.mxu1 %v11993_v5 }
 0x866   : > { %8999 = vmatpush3.bf16.msra.mxu0 %v11402_v39  ;;  %8291 = vmatprep.mubr.f32.mxu0 %v11461_v25  ;;  %v12203_v39 = vld [vmem:[#allocation3_spill] sm:$0xff] }
 0x867   : > { %9001 = vmatprep.subr.bf16.mxu0 %v11492_v16 }
 0x868   : > { %6121 = vmatmul.mubr.f32.vlgmr.msra.gmra.mrb[10].mxu1 %v11434_v21  ;;  %v12204_v21 = vld [vmem:[#allocation10_spill] sm:$0xff] }
 0x869   : > { %8935 = vmatpush1.bf16.msra.mxu1 %v11421_v49  ;;  %8292 = vmatmul.mubr.f32.gmra.mrb[16].mxu0 %v11463_v7 }
 0x86a   : > { %8937 = vmatprep.subr.bf16.mxu1 %v11505_v17  ;;  %9003 = vmatpush3.bf16.msra.mxu0 %v11492_v16 }
 0x86b   : > { %6126 = vmatprep.mubr.f32.mxu1 %v11993_v5  ;;  %8302 = vmatprep.mubr.f32.mxu0 %v11431_v18 }
 0x86c   : > { %6129 = vmatmul.mubr.f32.gmra.mrb[12].mxu1 %v11466_v30 }
 0x86d   : > { %8939 = vmatpush1.bf16.msra.mxu1 %v11498_v26  ;;  %8303 = vmatmul.mubr.f32.vlgmr.msra.gmra.mrb[14].mxu0 %v11458_v29 }
 0x86e   : > { %8941 = vmatprep.subr.bf16.mxu1 %v12203_v39  ;;  %6134 = vmatprep.mubr.f32.mxu1 %v11993_v5  ;;  %v9266_v39 = vld [vmem:[%s9401_s20 + $0x50] sm:$0xff] }
 0x86f   : > { %8305 = vmatprep.mubr.f32.mxu0 %v11461_v25 }
 0x870   : > { %6137 = vmatmul.mubr.f32.gmra.mrb[14].mxu1 %v11469_v15 }
 0x871   : > { %8306 = vmatmul.mubr.f32.gmra.mrb[16].mxu0 %v11463_v7  ;;  %6142 = vmatprep.mubr.f32.mxu1 %v11993_v5 }
 0x874   : > { %6145 = vmatmul.mubr.f32.gmra.mrb[16].mxu1 %v11472_v28  ;;  %v9255_v28 = vld [vmem:[%s9401_s20 + $0x28] sm:$0xff] }
 0x875   : > { %6223 = vmatprep.mubr.f32.mxu1 %v11993_v5 }
 0x878   : > { %6227 = vmatmul.mubr.f32.vlgmr.msra.gmra.mrb[10].mxu1 %v11437_v41 }
 0x879   : > { %8943 = vmatpush1.bf16.msra.mxu1 %v12204_v21  ;;  %6232 = vmatprep.mubr.f32.mxu1 %v11993_v5 }
 0x87a   : > { %8945 = vmatprep.subr.bf16.mxu1 %v11521_v19 }
 0x87c   : > { %6236 = vmatmul.mubr.f32.gmra.mrb[12].mxu1 %v11475_v46 }
 0x87d   : > { %8947 = vmatpush1.bf16.msra.mxu1 %v11518_v27  ;;  %6241 = vmatprep.mubr.f32.mxu1 %v11993_v5 }
 0x87e   : > { %8949 = vmatprep.subr.bf16.mxu1 %v11414_v0  ;;  %v5759_v0 = vpop.permute.xlu0 %5758 }
 0x880   : > { %6245 = vmatmul.mubr.f32.gmra.mrb[14].mxu1 %v11480_v59 }
 0x881   : > { %6250 = vmatprep.mubr.f32.mxu1 %v11993_v5 }
 0x882   : > { %v11625_v16 = vpop.permute.xlu0 %5768 }
 0x884   : > { %6254 = vmatmul.mubr.f32.gmra.mrb[16].mxu1 %v11485_v61 }
 0x885   : > { %6348 = vmatprep.mubr.f32.mxu1 %v11993_v5 }
 0x888   : > { %6350 = vmatmul.mubr.f32.vlgmr.msra.gmra.mrb[10].mxu1 %v11431_v18 }
 0x889   : > { %8951 = vmatpush1.bf16.msra.mxu1 %v11421_v49  ;;  %6355 = vmatprep.mubr.f32.mxu1 %v11993_v5  ;;  %v11620_v49 = vpop.permute.xlu1 %5763 }
 0x88a   : > { %8953 = vmatprep.subr.bf16.mxu1 %v11505_v17  ;;  %v9260_v17 = vld [vmem:[%s9401_s20 + $0x8] sm:$0xff] }
 0x88c   : > { %6357 = vmatmul.mubr.f32.gmra.mrb[12].mxu1 %v11458_v29 }
 0x88d   : > { %8955 = vmatpush1.bf16.msra.mxu1 %v11498_v26  ;;  %6362 = vmatprep.mubr.f32.mxu1 %v11993_v5  ;;  %v11630_v35 = vpop.permute.xlu1 %5773 }
 0x890   : > { %6364 = vmatmul.mubr.f32.gmra.mrb[14].mxu1 %v11461_v25 }
 0x891   : > { %6369 = vmatprep.mubr.f32.mxu1 %v11993_v5 }
 0x894   : > { %6371 = vmatmul.mubr.f32.gmra.mrb[16].mxu1 %v11463_v7 }
 0x895   : > { %6449 = vmatprep.mubr.f32.mxu1 %v11993_v5 }
 0x898   : > { %6451 = vmatmul.mubr.f32.vlgmr.msra.gmra.mrb[10].mxu1 %v11431_v18 }
 0x899   : > { %6456 = vmatprep.mubr.f32.mxu1 %v11993_v5 }
 0x89c   : > { %6458 = vmatmul.mubr.f32.gmra.mrb[12].mxu1 %v11458_v29  ;;  %v9256_v29 = vld [vmem:[%s9401_s20 + $0x10] sm:$0xff]  ;;  %s7485_s20 = sshll.u32 %s12206_s28, 6 }
 0x89d   : > { %6463 = vmatprep.mubr.f32.mxu1 %v11993_v5  ;;  %s11755_s25 = scalar_lea.vmem %s11844_s8, %s7485_s20 }
 0x8a0   : > { %6465 = vmatmul.mubr.f32.gmra.mrb[14].mxu1 %v11461_v25 }
 0x8a1   : > { %6470 = vmatprep.mubr.f32.mxu1 %v11993_v5 }
 0x8a4   : > { %6472 = vmatmul.mubr.f32.gmra.mrb[16].mxu1 %v11463_v7 }
 0x940   : > { %v8304_v41 = vpop.f32.mrb[14].mxu0 }
 0x941   : > { %v9033_v30 = vadd.f32 %v8304_v41, %v11620_v49  ;;  %v7070_v15 = vpop.f32.mrb[15].mxu0 }
 0x942   : > { %v9034_v18 = vadd.f32 %v7070_v15, %v5759_v0 }
 0x943   : > { %v7097_v46 = vadd.f32 %v9255_v28, %v9033_v30 }
 0x944   : > { %v7094_v59 = vadd.f32 %v9256_v29, %v9034_v18  ;;  %v8307_v61 = vpop.f32.mrb[16].mxu0 }
 0x945   : > { %v7109_v25 = vmax.f32 %v7097_v46, 0.0  ;;  %v7082_v5 = vpop.f32.mrb[17].mxu0  ;;  %v9035_v3 = vadd.f32 %v8307_v61, %v11630_v35 }
 0x946   : > { %v7106_v63 = vmax.f32 %v7094_v59, 0.0  ;;  %v9036_v7 = vadd.f32 %v7082_v5, %v11625_v16 }
 0x947   : > { %7303 = vrot.lane.b32.xlu1 %v7109_v25, %s9288_s9  ;;  %v7103_v55 = vadd.f32 %v9258_v57, %v9035_v3 }
 0x948   : > { %7322 = vrot.lane.b32.xlu0 %v7106_v63, %s9289_s14  ;;  %v7100_v34 = vadd.f32 %v9257_v33, %v9036_v7 }
 0x949   : > { %v11640_v53 = vmax.f32 %v7103_v55, 0.0 }
 0x94a   : > { %v11634_v14 = vmax.f32 %v7100_v34, 0.0 }
 0x94b   : > { %7324 = vrot.lane.b32.xlu1 %v7109_v25, %s9289_s14 }
 0x94c   : > { %7334 = vrot.lane.b32.xlu0 %v7106_v63, %s9290_s15 }
 0x94f   : > { %7336 = vrot.lane.b32.xlu1 %v7109_v25, %s9290_s15 }
 0x950   : > { %7326 = vrot.lane.b32.xlu0 %v11634_v14, %s9289_s14 }
 0x953   : > { %7299 = vrot.lane.b32.xlu1 %v7106_v63, %s9288_s9 }
 0x957   : > { %7311 = vrot.lane.b32.xlu1 %v11640_v53, %s9288_s9 }
 0x95b   : > { %7328 = vrot.lane.b32.xlu1 %v11640_v53, %s9289_s14 }
 0x95f   : > { %7307 = vrot.lane.b32.xlu1 %v11634_v14, %s9288_s9 }
 0x96b   : > { %v6452_v26 = vpop.f32.mrb[10].mxu1 }
 0x96c   : > { %v9025_v12 = vadd.f32 %v6452_v26, %v5759_v0  ;;  %v6454_v8 = vpop.f32.mrb[11].mxu1 }
 0x96d   : > { %v9026_v40 = vadd.f32 %v6454_v8, %v5759_v0 }
 0x96e   : > { %v7092_v6 = vadd.f32 %v9259_v37, %v9025_v12 }
 0x96f   : > { %v7093_v43 = vadd.f32 %v9260_v17, %v9026_v40  ;;  %v6459_v10 = vpop.f32.mrb[12].mxu1 }
 0x970   : > { %v7104_v4 = vmax.f32 %v7092_v6, 0.0  ;;  %v9027_v9 = vadd.f32 %v6459_v10, %v11620_v49  ;;  %v6461_v22 = vpop.f32.mrb[13].mxu1 }
 0x971   : > { %v7105_v58 = vmax.f32 %v7093_v43, 0.0  ;;  %v9028_v32 = vadd.f32 %v6461_v22, %v11620_v49 }
 0x972   : > { %v7095_v24 = vadd.f32 %v9261_v2, %v9027_v9  ;;  %7120 = vrot.lane.b32.xlu0 %v7104_v4, %s9280_s26 }
 0x973   : > { %v6466_v62 = vpop.f32.mrb[14].mxu1  ;;  %7198 = vrot.lane.b32.xlu1 %v7105_v58, %s9291_s11  ;;  %v7096_v19 = vadd.f32 %v9262_v56, %v9028_v32 }
 0x974   : > { %v7107_v45 = vmax.f32 %v7095_v24, 0.0  ;;  %v6468_v13 = vpop.f32.mrb[15].mxu1  ;;  %v9029_v31 = vadd.f32 %v6466_v62, %v11625_v16 }
 0x975   : > { %v7108_v48 = vmax.f32 %v7096_v19, 0.0  ;;  %v9030_v42 = vadd.f32 %v6468_v13, %v11625_v16 }
 0x976   : > { %7132 = vrot.lane.b32.xlu0 %v7104_v4, %s9292_s16  ;;  %v7098_v47 = vadd.f32 %v9265_v51, %v9029_v31 }
 0x977   : > { %v6473_v27 = vpop.f32.mrb[16].mxu1  ;;  %7122 = vrot.lane.b32.xlu1 %v7107_v45, %s9280_s26  ;;  %v7099_v54 = vadd.f32 %v9263_v1, %v9030_v42 }
 0x978   : > { %v6475_v38 = vpop.f32.mrb[17].mxu1  ;;  %v9031_v20 = vadd.f32 %v6473_v27, %v11630_v35  ;;  %v7110_v36 = vmax.f32 %v7098_v47, 0.0 }
 0x979   : > { %v7111_v23 = vmax.f32 %v7099_v54, 0.0  ;;  %v9032_v52 = vadd.f32 %v6475_v38, %v11630_v35 }
 0x97a   : > { %7144 = vrot.lane.b32.xlu0 %v7104_v4, %s9293_s17  ;;  %v7101_v60 = vadd.f32 %v9264_v44, %v9031_v20 }
 0x97b   : > { %7134 = vrot.lane.b32.xlu1 %v7107_v45, %s9292_s16  ;;  %v7102_v21 = vadd.f32 %v9266_v39, %v9032_v52 }
 0x97c   : > { %v7113_v50 = vmax.f32 %v7101_v60, 0.0 }
 0x97d   : > { %v7114_v49 = vmax.f32 %v7102_v21, 0.0 }
 0x97e   : > { %7156 = vrot.lane.b32.xlu0 %v7104_v4, %s9294_s18 }
 0x97f   : > { %7146 = vrot.lane.b32.xlu1 %v7107_v45, %s9293_s17 }
 0x982   : > { %7168 = vrot.lane.b32.xlu0 %v7104_v4, %s9295_s19 }
 0x983   : > { %7158 = vrot.lane.b32.xlu1 %v7107_v45, %s9294_s18 }
 0x986   : > { %7180 = vrot.lane.b32.xlu0 %v7104_v4, %s9296_s21 }
 0x987   : > { %7170 = vrot.lane.b32.xlu1 %v7107_v45, %s9295_s19 }
 0x98a   : > { %7196 = vrot.lane.b32.xlu0 %v7104_v4, %s9291_s11 }
 0x98b   : > { %7182 = vrot.lane.b32.xlu1 %v7107_v45, %s9296_s21 }
 0x98e   : > { %7221 = vrot.lane.b32.xlu0 %v7105_v58, %s9297_s22 }
 0x98f   : > { %7202 = vrot.lane.b32.xlu1 %v7108_v48, %s9291_s11 }
 0x992   : > { %7233 = vrot.lane.b32.xlu0 %v7105_v58, %s9298_s12 }
 0x993   : > { %7223 = vrot.lane.b32.xlu1 %v7108_v48, %s9297_s22 }
 0x996   : > { %7245 = vrot.lane.b32.xlu0 %v7105_v58, %s9285_s10 }
 0x997   : > { %7235 = vrot.lane.b32.xlu1 %v7108_v48, %s9298_s12 }
 0x99a   : > { %7257 = vrot.lane.b32.xlu0 %v7105_v58, %s9299_s13 }
 0x99b   : > { %7247 = vrot.lane.b32.xlu1 %v7108_v48, %s9285_s10 }
 0x99e   : > { %7269 = vrot.lane.b32.xlu0 %v7105_v58, %s9300_s23 }
 0x99f   : > { %7259 = vrot.lane.b32.xlu1 %v7108_v48, %s9299_s13 }
 0x9a2   : > { %7281 = vrot.lane.b32.xlu0 %v7105_v58, %s9301_s24 }
 0x9a3   : > { %7271 = vrot.lane.b32.xlu1 %v7108_v48, %s9300_s23 }
 0x9a6   : > { %7297 = vrot.lane.b32.xlu0 %v7105_v58, %s9288_s9 }
 0x9a7   : > { %7283 = vrot.lane.b32.xlu1 %v7108_v48, %s9301_s24 }
 0x9aa   : > { %7200 = vrot.lane.b32.xlu0 %v7107_v45, %s9291_s11 }
 0x9ab   : > { %7206 = vrot.lane.b32.xlu1 %v7111_v23, %s9291_s11 }
 0x9ae   : > { %7301 = vrot.lane.b32.xlu0 %v7108_v48, %s9288_s9 }
 0x9af   : > { %7126 = vrot.lane.b32.xlu1 %v7113_v50, %s9280_s26 }
 0x9b2   : > { %7124 = vrot.lane.b32.xlu0 %v7110_v36, %s9280_s26 }
 0x9b3   : > { %7138 = vrot.lane.b32.xlu1 %v7113_v50, %s9292_s16 }
 0x9b6   : > { %7136 = vrot.lane.b32.xlu0 %v7110_v36, %s9292_s16 }
 0x9b7   : > { %7150 = vrot.lane.b32.xlu1 %v7113_v50, %s9293_s17 }
 0x9b9   : > { %v11698_v11 = vpop.permute.xlu1 %7303 }
 0x9ba   : > { %7148 = vrot.lane.b32.xlu0 %v7110_v36, %s9293_s17  ;;  %v11719_v15 = vpop.permute.xlu0 %7322 }
 0x9bb   : > { %7162 = vrot.lane.b32.xlu1 %v7113_v50, %s9294_s18 }
 0x9bd   : > { %v11704_v0 = vpop.permute.xlu1 %7324 }
 0x9be   : > { %7160 = vrot.lane.b32.xlu0 %v7110_v36, %s9294_s18  ;;  %v11725_v28 = vpop.permute.xlu0 %7334 }
 0x9bf   : > { %7174 = vrot.lane.b32.xlu1 %v7113_v50, %s9295_s19 }
 0x9c1   : > { %v11709_v41 = vpop.permute.xlu1 %7336 }
 0x9c2   : > { %7172 = vrot.lane.b32.xlu0 %v7110_v36, %s9295_s19  ;;  %v11733_v29 = vpop.permute.xlu0 %7326 }
 0x9c3   : > { %7186 = vrot.lane.b32.xlu1 %v7113_v50, %s9296_s21 }
 0x9c5   : > { %v11714_v30 = vpop.permute.xlu1 %7299 }
 0x9c6   : > { %7184 = vrot.lane.b32.xlu0 %v7110_v36, %s9296_s21 }
 0x9c7   : > { %7210 = vrot.lane.b32.xlu1 %v7114_v49, %s9291_s11 }
 0x9c9   : > { %v11721_v18 = vpop.permute.xlu1 %7311 }
 0x9ca   : > { %7204 = vrot.lane.b32.xlu0 %v7110_v36, %s9291_s11 }
 0x9cb   : > { %7227 = vrot.lane.b32.xlu1 %v7114_v49, %s9297_s22 }
 0x9cd   : > { %v11728_v46 = vpop.permute.xlu1 %7328 }
 0x9ce   : > { %7225 = vrot.lane.b32.xlu0 %v7111_v23, %s9297_s22 }
 0x9cf   : > { %7239 = vrot.lane.b32.xlu1 %v7114_v49, %s9298_s12 }
 0x9d1   : > { %v11735_v59 = vpop.permute.xlu1 %7307 }
 0x9d2   : > { %7237 = vrot.lane.b32.xlu0 %v7111_v23, %s9298_s12 }
 0x9d3   : > { %7251 = vrot.lane.b32.xlu1 %v7114_v49, %s9285_s10 }
 0x9d6   : > { %7249 = vrot.lane.b32.xlu0 %v7111_v23, %s9285_s10 }
 0x9d7   : > { %7263 = vrot.lane.b32.xlu1 %v7114_v49, %s9299_s13 }
 0x9da   : > { %7261 = vrot.lane.b32.xlu0 %v7111_v23, %s9299_s13 }
 0x9db   : > { %7275 = vrot.lane.b32.xlu1 %v7114_v49, %s9300_s23 }
 0x9de   : > { %7273 = vrot.lane.b32.xlu0 %v7111_v23, %s9300_s23 }
 0x9df   : > { %7287 = vrot.lane.b32.xlu1 %v7114_v49, %s9301_s24 }
 0x9e2   : > { %7285 = vrot.lane.b32.xlu0 %v7111_v23, %s9301_s24 }
 0x9e3   : > { %7340 = vrot.lane.b32.xlu1 %v11640_v53, %s9290_s15 }
 0x9e4   : > { %v7121_v61 = vpop.permute.xlu0 %7120 }
 0x9e5   : > { %v7199_v16 = vpop.permute.xlu1 %7198 }
 0x9e6   : > { %7305 = vrot.lane.b32.xlu0 %v7111_v23, %s9288_s9 }
 0x9e8   : > { %v7133_v25 = vpop.permute.xlu0 %7132 }
 0x9e9   : > { %v7123_v5 = vpop.permute.xlu1 %7122  ;;  %v7347_v53 = vsel %vm7346_vm13, %v7121_v61, %v7133_v25 }
 0x9ea   : > { %7208 = vrot.lane.b32.xlu0 %v7113_v50, %s9291_s11 }
 0x9ec   : > { %v7145_v63 = vpop.permute.xlu0 %7144 }
 0x9ed   : > { %v7135_v7 = vpop.permute.xlu1 %7134  ;;  %v7351_v26 = vsel %vm347_vm0, %v7347_v53, %v7145_v63 }
 0x9ee   : > { %7309 = vrot.lane.b32.xlu0 %v7114_v49, %s9288_s9  ;;  %v7348_v42 = vsel %vm7346_vm13, %v7123_v5, %v7135_v7 }
 0x9f0   : > { %v7157_v33 = vpop.permute.xlu0 %7156 }
 0x9f1   : > { %v7147_v34 = vpop.permute.xlu1 %7146  ;;  %v7356_v8 = vsel %vm7355_vm14, %v7351_v26, %v7157_v33 }
 0x9f2   : > { %7338 = vrot.lane.b32.xlu0 %v11634_v14, %s9290_s15  ;;  %v7352_v31 = vsel %vm347_vm0, %v7348_v42, %v7147_v34 }
 0x9f4   : > { %v7169_v35 = vpop.permute.xlu0 %7168 }
 0x9f5   : > { %v7159_v3 = vpop.permute.xlu1 %7158  ;;  %v7361_v37 = vsel %vm7360_vm1, %v7356_v8, %v7169_v35 }
 0x9f6   : > { %v7357_v44 = vsel %vm7355_vm14, %v7352_v31, %v7159_v3 }
 0x9f8   : > { %v7181_v57 = vpop.permute.xlu0 %7180 }
 0x9f9   : > { %v7171_v55 = vpop.permute.xlu1 %7170  ;;  %v7366_v6 = vsel %vm7365_vm2, %v7361_v37, %v7181_v57 }
 0x9fa   : > { %v7362_v51 = vsel %vm7360_vm1, %v7357_v44, %v7171_v55 }
 0x9fc   : > { %v7197_v12 = vpop.permute.xlu0 %7196 }
 0x9fd   : > { %v7213_v40 = vsel %vm7212_vm15, %v7197_v12, %v7199_v16  ;;  %v7183_v14 = vpop.permute.xlu1 %7182 }
 0x9fe   : > { %v7371_v17 = vsel %vm7370_vm3, %v7366_v6, %v7213_v40  ;;  %v7367_v36 = vsel %vm7365_vm2, %v7362_v51, %v7183_v14 }
 0xa00   : > { %v7222_v43 = vpop.permute.xlu0 %7221 }
 0xa01   : > { %v7376_v10 = vsel %vm7375_vm4, %v7371_v17, %v7222_v43  ;;  %v7203_v4 = vpop.permute.xlu1 %7202 }
 0xa02   : > { %7408 = vst [vmem:[%s11755_s25] sm:$0xff] %v7376_v10 }
 0xa04   : > { %v7234_v9 = vpop.permute.xlu0 %7233 }
 0xa05   : > { %v7224_v22 = vpop.permute.xlu1 %7223 }
 0xa08   : > { %v7246_v58 = vpop.permute.xlu0 %7245 }
 0xa09   : > { %v7236_v2 = vpop.permute.xlu1 %7235  ;;  %v7380_v32 = vsel %vm7346_vm13, %v7234_v9, %v7246_v58 }
 0xa0c   : > { %v7258_v24 = vpop.permute.xlu0 %7257 }
 0xa0d   : > { %v7248_v62 = vpop.permute.xlu1 %7247  ;;  %v7384_v56 = vsel %vm347_vm0, %v7380_v32, %v7258_v24 }
 0xa0e   : > { %v7381_v21 = vsel %vm7346_vm13, %v7236_v2, %v7248_v62 }
 0xa10   : > { %v7270_v45 = vpop.permute.xlu0 %7269 }
 0xa11   : > { %v7260_v13 = vpop.permute.xlu1 %7259  ;;  %v7388_v19 = vsel %vm7355_vm14, %v7384_v56, %v7270_v45 }
 0xa14   : > { %v7282_v27 = vpop.permute.xlu0 %7281 }
 0xa15   : > { %v7272_v38 = vpop.permute.xlu1 %7271  ;;  %v7392_v1 = vsel %vm7360_vm1, %v7388_v19, %v7282_v27 }
 0xa18   : > { %v7298_v48 = vpop.permute.xlu0 %7297 }
 0xa19   : > { %v7314_v54 = vsel %vm7313_vm5, %v7298_v48, %v11714_v30  ;;  %v7284_v20 = vpop.permute.xlu1 %7283  ;;  %v7385_v30 = vsel %vm347_vm0, %v7381_v21, %v7260_v13 }
 0xa1a   : > { %v7396_v23 = vsel %vm7365_vm2, %v7392_v1, %v7314_v54  ;;  %v7389_v61 = vsel %vm7355_vm14, %v7385_v30, %v7272_v38 }
 0xa1b   : > { %v7400_v60 = vsel %vm7370_vm3, %v7396_v23, %v11719_v15  ;;  %v7393_v16 = vsel %vm7360_vm1, %v7389_v61, %v7284_v20 }
 0xa1c   : > { %v7404_v47 = vsel %vm7375_vm4, %v7400_v60, %v11725_v28  ;;  %v7201_v50 = vpop.permute.xlu0 %7200 }
 0xa1d   : > { %7409 = vst [vmem:[%s11755_s25 + $0x8] sm:$0xff] %v7404_v47  ;;  %v7214_v52 = vsel %vm7212_vm15, %v7201_v50, %v7203_v4  ;;  %v7207_v39 = vpop.permute.xlu1 %7206 }
 0xa1e   : > { %v7372_v49 = vsel %vm7370_vm3, %v7367_v36, %v7214_v52 }
 0xa1f   : > { %v7377_v15 = vsel %vm7375_vm4, %v7372_v49, %v7224_v22 }
 0xa20   : > { %7410 = vst [vmem:[%s11755_s25 + $0x10] sm:$0xff] %v7377_v15  ;;  %v7302_v28 = vpop.permute.xlu0 %7301 }
 0xa21   : > { %v7315_v25 = vsel %vm7313_vm5, %v7302_v28, %v11698_v11  ;;  %v7127_v5 = vpop.permute.xlu1 %7126 }
 0xa22   : > { %v7397_v63 = vsel %vm7365_vm2, %v7393_v16, %v7315_v25 }
 0xa23   : > { %v7401_v7 = vsel %vm7370_vm3, %v7397_v63, %v11704_v0 }
 0xa24   : > { %v7405_v33 = vsel %vm7375_vm4, %v7401_v7, %v11709_v41  ;;  %v7125_v34 = vpop.permute.xlu0 %7124 }
 0xa25   : > { %7411 = vst [vmem:[%s11755_s25 + $0x18] sm:$0xff] %v7405_v33  ;;  %v7139_v35 = vpop.permute.xlu1 %7138 }
 0xa26   : > { %v7350_v48 = vsel %vm7346_vm13, %v7127_v5, %v7139_v35 }
 0xa28   : > { %v7137_v3 = vpop.permute.xlu0 %7136 }
 0xa29   : > { %v7151_v57 = vpop.permute.xlu1 %7150  ;;  %v7349_v37 = vsel %vm7346_vm13, %v7125_v34, %v7137_v3 }
 0xa2a   : > { %v7354_v42 = vsel %vm347_vm0, %v7350_v48, %v7151_v57 }
 0xa2c   : > { %v7149_v55 = vpop.permute.xlu0 %7148 }
 0xa2d   : > { %v7163_v53 = vpop.permute.xlu1 %7162  ;;  %v7353_v0 = vsel %vm347_vm0, %v7349_v37, %v7149_v55 }
 0xa2e   : > { %v7359_v1 = vsel %vm7355_vm14, %v7354_v42, %v7163_v53 }
 0xa30   : > { %v7161_v26 = vpop.permute.xlu0 %7160 }
 0xa31   : > { %v7175_v12 = vpop.permute.xlu1 %7174  ;;  %v7358_v41 = vsel %vm7355_vm14, %v7353_v0, %v7161_v26 }
 0xa32   : > { %v7364_v54 = vsel %vm7360_vm1, %v7359_v1, %v7175_v12 }
 0xa34   : > { %v7173_v11 = vpop.permute.xlu0 %7172 }
 0xa35   : > { %v7187_v8 = vpop.permute.xlu1 %7186  ;;  %v7363_v43 = vsel %vm7360_vm1, %v7358_v41, %v7173_v11 }
 0xa36   : > { %v7369_v31 = vsel %vm7365_vm2, %v7364_v54, %v7187_v8 }
 0xa38   : > { %v7185_v40 = vpop.permute.xlu0 %7184 }
 0xa39   : > { %v7211_v14 = vpop.permute.xlu1 %7210  ;;  %v7368_v10 = vsel %vm7365_vm2, %v7363_v43, %v7185_v40 }
 0xa3c   : > { %v7205_v6 = vpop.permute.xlu0 %7204 }
 0xa3d   : > { %v7215_v17 = vsel %vm7212_vm15, %v7205_v6, %v7207_v39  ;;  %v7228_v4 = vpop.permute.xlu1 %7227 }
 0xa3e   : > { %v7373_v9 = vsel %vm7370_vm3, %v7368_v10, %v7215_v17 }
 0xa40   : > { %v7226_v22 = vpop.permute.xlu0 %7225 }
 0xa41   : > { %v7378_v58 = vsel %vm7375_vm4, %v7373_v9, %v7226_v22  ;;  %v7240_v24 = vpop.permute.xlu1 %7239 }
 0xa42   : > { %7412 = vst [vmem:[%s11755_s25 + $0x20] sm:$0xff] %v7378_v58 }
 0xa44   : > { %v7238_v2 = vpop.permute.xlu0 %7237 }
 0xa45   : > { %v7252_v45 = vpop.permute.xlu1 %7251 }
 0xa46   : > { %v7383_v51 = vsel %vm7346_vm13, %v7240_v24, %v7252_v45 }
 0xa48   : > { %v7250_v62 = vpop.permute.xlu0 %7249 }
 0xa49   : > { %v7264_v38 = vpop.permute.xlu1 %7263  ;;  %v7382_v23 = vsel %vm7346_vm13, %v7238_v2, %v7250_v62 }
 0xa4a   : > { %v7387_v52 = vsel %vm347_vm0, %v7383_v51, %v7264_v38 }
 0xa4c   : > { %v7262_v13 = vpop.permute.xlu0 %7261 }
 0xa4d   : > { %v7276_v56 = vpop.permute.xlu1 %7275  ;;  %v7386_v47 = vsel %vm347_vm0, %v7382_v23, %v7262_v13 }
 0xa4e   : > { %v7391_v49 = vsel %vm7355_vm14, %v7387_v52, %v7276_v56 }
 0xa50   : > { %v7274_v27 = vpop.permute.xlu0 %7273 }
 0xa51   : > { %v7288_v44 = vpop.permute.xlu1 %7287  ;;  %v7390_v39 = vsel %vm7355_vm14, %v7386_v47, %v7274_v27 }
 0xa52   : > { %v7395_v61 = vsel %vm7360_vm1, %v7391_v49, %v7288_v44 }
 0xa54   : > { %v7286_v32 = vpop.permute.xlu0 %7285 }
 0xa55   : > { %v7394_v30 = vsel %vm7360_vm1, %v7390_v39, %v7286_v32  ;;  %v7341_v25 = vpop.permute.xlu1 %7340 }
 0xa58   : > { %v7306_v19 = vpop.permute.xlu0 %7305 }
 0xa59   : > { %v7316_v50 = vsel %vm7313_vm5, %v7306_v19, %v11735_v59 }
 0xa5a   : > { %v7398_v59 = vsel %vm7365_vm2, %v7394_v30, %v7316_v50 }
 0xa5b   : > { %v7402_v7 = vsel %vm7370_vm3, %v7398_v59, %v11733_v29 }
 0xa5c   : > { %v7209_v20 = vpop.permute.xlu0 %7208 }
 0xa5d   : > { %v7216_v60 = vsel %vm7212_vm15, %v7209_v20, %v7211_v14 }
 0xa5e   : > { %v7374_v36 = vsel %vm7370_vm3, %v7369_v31, %v7216_v60 }
 0xa5f   : > { %v7379_v21 = vsel %vm7375_vm4, %v7374_v36, %v7228_v4 }
 0xa60   : > { %7414 = vst [vmem:[%s11755_s25 + $0x30] sm:$0xff] %v7379_v21  ;;  %v7310_v15 = vpop.permute.xlu0 %7309 }
 0xa61   : > { %v7317_v28 = vsel %vm7313_vm5, %v7310_v15, %v11721_v18 }
 0xa62   : > { %v7399_v16 = vsel %vm7365_vm2, %v7395_v61, %v7317_v28 }
 0xa63   : > { %v7403_v5 = vsel %vm7370_vm3, %v7399_v16, %v11728_v46 }
 0xa64   : > { %v7407_v63 = vsel %vm7375_vm4, %v7403_v5, %v7341_v25  ;;  %v7339_v33 = vpop.permute.xlu0 %7338 }
 0xa65   : > { %7415 = vst [vmem:[%s11755_s25 + $0x38] sm:$0xff] %v7407_v63  ;;  %v7406_v34 = vsel %vm7375_vm4, %v7402_v7, %v7339_v33 }
 0xa66   : > { %7413 = vst [vmem:[%s11755_s25 + $0x28] sm:$0xff] %v7406_v34 }
 0xa67 PF: > { %s18_s27 = sadd.s32 1, %s9273_s27  }
 0xa68   : > { %p15_p4 = scmp.ge.s32.totalorder %s18_s27, 4  }
 0xa6a   :  { %17 = sbr.rel (!%p15_p4) target bundleno = 1 (0x1), region = 86 }

</bundles_post_ra>
